<compile_context>
chip_gen: v7x
topology: tpu7x:2x2x1
jax: 0.10.0
libtpu: 0.0.40
codegen_flags: <defaults>
</compile_context>

<pallas_src>
import functools

import jax
import jax.numpy as jnp
from jax import lax
from jax.experimental import pallas as pl
from jax.experimental.pallas import tpu as pltpu

_LH = 16  # left halo width of the padded W axis (bf16 sublane-tile aligned)


# ------------------------------- Pallas kernel ------------------------------ #

def _residual_stack_kernel(*refs, N, H, W, C, bn, eps):
    """One grid step == one ResidualBlock; activations persist in VMEM."""
    if bn:
        (x_ref, w_ref, gamma_ref, beta_ref, o_ref,
         xbf_ref, hbf_ref, patch_ref) = refs
    else:
        x_ref, w_ref, o_ref, xbf_ref, hbf_ref, patch_ref = refs
        gamma_ref = beta_ref = None

    b = pl.program_id(0)
    NC = N * C          # lane-packed channel dim (batch folded into lanes)
    P = H * W           # pixels per image == matmul M dim
    LH = _LH

    @pl.when(b == 0)
    def _init():
        # Zero once: halo / gutter columns stay zero for every conv of every
        # block.  Interior writes below never touch them.
        xbf_ref[...] = jnp.zeros_like(xbf_ref)
        hbf_ref[...] = jnp.zeros_like(hbf_ref)
        o_ref[...] = x_ref[...]                                  # f32 residual
        xbf_ref[1:H + 1, LH:LH + W, :] = (
            x_ref[...].reshape(H, W, NC).astype(jnp.bfloat16))

    def im2col(src_ref):
        # 3 kw-shifted reads per conv (the only sublane relayouts); kh taps are
        # leading-axis slices; all 9 patch stores are 128-lane aligned.
        for kw in range(3):
            shifted = src_ref[:, LH - 1 + kw:LH - 1 + kw + W, :]  # (H+2, W, NC)
            for kh in range(3):
                t = kh * 3 + kw
                patch_ref[:, t * NC:(t + 1) * NC] = (
                    shifted[kh:kh + H].reshape(P, NC))

    def fold_batch(v):
        # v: (1, NC) per-(image, channel) sums -> per-channel totals replicated
        # into every image's lane slot (XLU lane roll + VPU add).
        tot = v
        for k in range(1, N):
            tot = tot + pltpu.roll(v, shift=k * C, axis=1)
        return tot

    def conv_bn(src_ref, layer):
        im2col(src_ref)
        acc = jnp.dot(patch_ref[...], w_ref[layer],
                      preferred_element_type=jnp.float32)         # (P, NC) f32
        if bn:
            # Training-mode BatchNorm2d, single fused pass:
            # var = E[x^2] - mean^2; one acc*scale + shift epilogue.
            inv_n = 1.0 / (N * H * W)
            s1 = fold_batch(jnp.sum(acc, axis=0, keepdims=True))
            s2 = fold_batch(jnp.sum(acc * acc, axis=0, keepdims=True))
            mean = s1 * inv_n
            var = s2 * inv_n - mean * mean
            scale = gamma_ref[layer] * lax.rsqrt(var + eps)
            shift = beta_ref[layer] - mean * scale
            acc = acc * scale + shift
        return acc

    # out_1 = relu(BN1(conv1(x)))  -> bf16 padded source buffer for conv2
    h = jnp.maximum(conv_bn(xbf_ref, 0), 0.0)
    hbf_ref[1:H + 1, LH:LH + W, :] = h.reshape(H, W, NC).astype(jnp.bfloat16)

    # out_2 = x + BN2(conv2(out_1)); the f32 residual is carried in the
    # resident output block (constant out index_map -> same VMEM buffer).
    new_x = o_ref[...] + conv_bn(hbf_ref, 1)
    o_ref[...] = new_x
    xbf_ref[1:H + 1, LH:LH + W, :] = (
        new_x.reshape(H, W, NC).astype(jnp.bfloat16))


# ------------------------------ Pallas wrapper ------------------------------ #

def residual_stack_forward(x_nchw, w_hwio, gamma=None, beta=None, *,
                           bn=True, eps=1e-5):
    """Applies B ResidualBlocks in one fused pallas_call.

    x_nchw : (N, C, H, W) float32           (PyTorch layout at the boundary)
    w_hwio : (B, 2, 3, 3, C, C) float32     (per block: conv1, conv2; HWIO)
    gamma  : (B, 2, C) float32              (BatchNorm weight; ignored if bn=False)
    beta   : (B, 2, C) float32              (BatchNorm bias;  ignored if bn=False)
    """
    N, C, H, W = x_nchw.shape
    B = w_hwio.shape[0]
    NC = N * C
    P = H * W
    WP = _LH + W + 16        # interior at [LH, LH+W); halo cols LH-1 and LH+W

    # Lane-pack batch into channels: rows = pixels, lanes = (image, channel).
    x_packed = (jnp.transpose(x_nchw, (2, 3, 0, 1))
                .reshape(P, NC).astype(jnp.float32))

    # Block-diagonal per-tap weights: wmat[t*NC + n*C + i, m*C + o] =
    # W[t, i, o] * (n == m), so the lane-packed conv is one deep-K matmul.
    wt = w_hwio.reshape(B, 2, 9, C, C).astype(jnp.float32)
    eye_n = jnp.eye(N, dtype=jnp.float32)
    wblk = jnp.einsum('bltio,nm->bltnimo', wt, eye_n)
    wmat = wblk.reshape(B, 2, 9 * NC, NC).astype(jnp.bfloat16)

    kernel = functools.partial(_residual_stack_kernel,
                               N=N, H=H, W=W, C=C, bn=bn, eps=float(eps))

    in_specs = [
        pl.BlockSpec((P, NC), lambda b: (0, 0)),                      # x (fetched once)
        pl.BlockSpec((None, 2, 9 * NC, NC), lambda b: (b, 0, 0, 0)),  # per-block weights
    ]
    args = [x_packed, wmat]
    if bn:
        g = jnp.tile(gamma.reshape(B, 2, 1, C).astype(jnp.float32), (1, 1, 1, N))
        bt = jnp.tile(beta.reshape(B, 2, 1, C).astype(jnp.float32), (1, 1, 1, N))
        in_specs += [pl.BlockSpec((None, 2, 1, NC), lambda b: (b, 0, 0, 0)),
                     pl.BlockSpec((None, 2, 1, NC), lambda b: (b, 0, 0, 0))]
        args += [g, bt]

    out = pl.pallas_call(
        kernel,
        out_shape=jax.ShapeDtypeStruct((P, NC), jnp.float32),
        grid=(B,),
        in_specs=in_specs,
        # NOTE: the constant out index_map on a sequential ("arbitrary") block
        # axis keeps this block resident in VMEM across all blocks; it doubles
        # as the f32 residual carrier and is flushed to HBM once at the end.
        # Do NOT mark this axis "parallel" or change this index_map.
        out_specs=pl.BlockSpec((P, NC), lambda b: (0, 0)),
        scratch_shapes=[
            pltpu.VMEM((H + 2, WP, NC), jnp.bfloat16),   # padded bf16 conv1 src
            pltpu.VMEM((H + 2, WP, NC), jnp.bfloat16),   # padded bf16 conv2 src
            pltpu.VMEM((P, 9 * NC), jnp.bfloat16),       # im2col patch matrix
        ],
        input_output_aliases={0: 0},                     # x buffer reused as out
        compiler_params=pltpu.CompilerParams(
            dimension_semantics=("arbitrary",)),         # blocks are sequential
    )(*args)

    return jnp.transpose(out.reshape(H, W, N, C), (2, 3, 0, 1))      # back to NCHW


# ----------------------------- Pure-JAX reference ---------------------------- #

def _conv3x3_ref(x, w, mxu_dtype=None):
    if mxu_dtype is not None:
        x = x.astype(mxu_dtype)
        w = w.astype(mxu_dtype)
        prec = None
    else:
        prec = lax.Precision.HIGHEST
    return lax.conv_general_dilated(
        x, w, (1, 1), ((1, 1), (1, 1)),
        dimension_numbers=('NHWC', 'HWIO', 'NHWC'),
        preferred_element_type=jnp.float32, precision=prec)


def _bn_train_ref(y, gamma, beta, eps):
    mean = jnp.mean(y, axis=(0, 1, 2), keepdims=True)
    var = jnp.mean(jnp.square(y - mean), axis=(0, 1, 2), keepdims=True)
    return (y - mean) * lax.rsqrt(var + eps) * gamma + beta


def residual_stack_ref(x_nchw, w_hwio, gamma, beta, *, bn=True, eps=1e-5,
                       mxu_dtype=None):
    x = jnp.transpose(x_nchw, (0, 2, 3, 1)).astype(jnp.float32)
    B = w_hwio.shape[0]
    for bi in range(B):
        h = _conv3x3_ref(x, w_hwio[bi, 0], mxu_dtype)
        if bn:
            h = _bn_train_ref(h, gamma[bi, 0], beta[bi, 0], eps)
        h = jnp.maximum(h, 0.0)
        y = _conv3x3_ref(h, w_hwio[bi, 1], mxu_dtype)
        if bn:
            y = _bn_train_ref(y, gamma[bi, 1], beta[bi, 1], eps)
        x = x + y
    return jnp.transpose(x, (0, 3, 1, 2))


# ------------------------------------ Main ----------------------------------- #

if __name__ == "__main__":
    key = jax.random.PRNGKey(0)
    kx, kw1, kw2, kg, kb = jax.random.split(key, 5)

    N, C, H, W = 2, 64, 16, 16              # conv_dim = 64 (GTwo hard-codes 64)
    x = jax.random.normal(kx, (N, C, H, W), jnp.float32)
    bound = 1.0 / (C * 9) ** 0.5            # PyTorch Conv2d default init bound

    # --- Test 1: single ResidualBlock(conv_dim=64), bn=True, random affine ---
    B1 = 1
    w1 = jax.random.uniform(kw1, (B1, 2, 3, 3, C, C), jnp.float32, -bound, bound)
    g1 = 1.0 + 0.1 * jax.random.normal(kg, (B1, 2, C), jnp.float32)
    b1 = 0.1 * jax.random.normal(kb, (B1, 2, C), jnp.float32)

    fwd_bn = jax.jit(functools.partial(residual_stack_forward, bn=True))
    y1 = jax.block_until_ready(fwd_bn(x, w1, g1, b1))
    assert y1.shape == (N, C, H, W), y1.shape

    ref1_t = residual_stack_ref(x, w1, g1, b1, bn=True, mxu_dtype=jnp.bfloat16)
    ref1_l = residual_stack_ref(x, w1, g1, b1, bn=True)
    err1_t = float(jnp.max(jnp.abs(y1 - ref1_t)))
    err1_l = float(jnp.max(jnp.abs(y1 - ref1_l)))
    assert err1_t < 1e-2, f"bn=True: bf16-ref max abs err {err1_t}"
    assert err1_l < 7e-2, f"bn=True: f32-ref max abs err {err1_l}"

    # --- Test 2: GTwo usage — fused stack of 6 blocks, batchnorm=False -------
    B6 = 6
    w6 = jax.random.uniform(kw2, (B6, 2, 3, 3, C, C), jnp.float32, -bound, bound)

    fwd = jax.jit(functools.partial(residual_stack_forward, bn=False))
    y6 = jax.block_until_ready(fwd(x, w6))
    assert y6.shape == (N, C, H, W), y6.shape

    g6 = jnp.ones((B6, 2, C), jnp.float32)
    b6 = jnp.zeros((B6, 2, C), jnp.float32)
    ref6_t = residual_stack_ref(x, w6, g6, b6, bn=False, mxu_dtype=jnp.bfloat16)
    ref6_l = residual_stack_ref(x, w6, g6, b6, bn=False)
    err6_t = float(jnp.max(jnp.abs(y6 - ref6_t)))
    err6_l = float(jnp.max(jnp.abs(y6 - ref6_l)))
    assert err6_t < 1e-2, f"bn=False: bf16-ref max abs err {err6_t}"
    assert err6_l < 7e-2, f"bn=False: f32-ref max abs err {err6_l}"

    print("KERNEL_OK")
</pallas_src>

<mosaic_0001>
module attributes {stable_mosaic.version = 11 : i64} {
  func.func @_residual_stack_kernel(%arg0: i32, %arg1: memref<256x128xf32, #tpu.memory_space<vmem>>, %arg2: memref<1x2x1152x128xbf16, #tpu.memory_space<vmem>>, %arg3: memref<1x2x1x128xf32, #tpu.memory_space<vmem>>, %arg4: memref<1x2x1x128xf32, #tpu.memory_space<vmem>>, %arg5: memref<256x128xf32, #tpu.memory_space<vmem>>, %arg6: memref<18x48x128xbf16, #tpu.memory_space<vmem>>, %arg7: memref<18x48x128xbf16, #tpu.memory_space<vmem>>, %arg8: memref<256x1152xbf16, #tpu.memory_space<vmem>>) attributes {dimension_semantics = [#tpu.dimension_semantics<arbitrary>], iteration_bounds = array<i64: 1>, scalar_prefetch = 0 : i64, scratch_operands = 3 : i64, tpu.core_type = #tpu.core_type<tc>, window_params = [{pipeline_mode = #tpu.pipeline_mode<synchronous>, transform_indices = @transform_0, window_bounds = array<i64: 256, 128>}, {transform_indices = @transform_1, window_bounds = array<i64: 1, 2, 1152, 128>}, {transform_indices = @transform_2, window_bounds = array<i64: 1, 2, 1, 128>}, {transform_indices = @transform_3, window_bounds = array<i64: 1, 2, 1, 128>}, {pipeline_mode = #tpu.pipeline_mode<synchronous>, transform_indices = @transform_4, window_bounds = array<i64: 256, 128>}]} {
    %c0_i32 = arith.constant 0 : i32
    %0 = arith.cmpi eq, %arg0, %c0_i32 : i32
    %1 = arith.extui %0 : i1 to i32
    %c0_i32_0 = arith.constant 0 : i32
    %2 = arith.cmpi ne, %1, %c0_i32_0 : i32
    scf.if %2 {
      %cst_95 = arith.constant 0.000000e+00 : bf16
      %140 = vector.broadcast %cst_95 : bf16 to vector<18x48x128xbf16>
      %c0_96 = arith.constant 0 : index
      %c0_97 = arith.constant 0 : index
      %c0_98 = arith.constant 0 : index
      %141 = vector.load %arg6[%c0_96, %c0_97, %c0_98] : memref<18x48x128xbf16, #tpu.memory_space<vmem>>, vector<18x48x128xbf16>
      tpu.vector_store %arg6[%c0_96, %c0_97, %c0_98], %140 {strides = array<i32>} : memref<18x48x128xbf16, #tpu.memory_space<vmem>>, vector<18x48x128xbf16>,
      %cst_99 = arith.constant 0.000000e+00 : bf16
      %142 = vector.broadcast %cst_99 : bf16 to vector<18x48x128xbf16>
      %c0_100 = arith.constant 0 : index
      %c0_101 = arith.constant 0 : index
      %c0_102 = arith.constant 0 : index
      %143 = vector.load %arg7[%c0_100, %c0_101, %c0_102] : memref<18x48x128xbf16, #tpu.memory_space<vmem>>, vector<18x48x128xbf16>
      tpu.vector_store %arg7[%c0_100, %c0_101, %c0_102], %142 {strides = array<i32>} : memref<18x48x128xbf16, #tpu.memory_space<vmem>>, vector<18x48x128xbf16>,
      %c0_103 = arith.constant 0 : index
      %c0_104 = arith.constant 0 : index
      %144 = vector.load %arg1[%c0_103, %c0_104] : memref<256x128xf32, #tpu.memory_space<vmem>>, vector<256x128xf32>
      %c0_105 = arith.constant 0 : index
      %c0_106 = arith.constant 0 : index
      %145 = vector.load %arg5[%c0_105, %c0_106] : memref<256x128xf32, #tpu.memory_space<vmem>>, vector<256x128xf32>
      tpu.vector_store %arg5[%c0_105, %c0_106], %144 {strides = array<i32>} : memref<256x128xf32, #tpu.memory_space<vmem>>, vector<256x128xf32>,
      %c0_107 = arith.constant 0 : index
      %c0_108 = arith.constant 0 : index
      %146 = vector.load %arg1[%c0_107, %c0_108] : memref<256x128xf32, #tpu.memory_space<vmem>>, vector<256x128xf32>
      %147 = vector.shape_cast %146 : vector<256x128xf32> to vector<16x16x128xf32>
      %148 = arith.truncf %147 : vector<16x16x128xf32> to vector<16x16x128xbf16>
      %c1_109 = arith.constant 1 : index
      %c16_110 = arith.constant 16 : index
      %c0_111 = arith.constant 0 : index
      %149 = vector.load %arg6[%c1_109, %c16_110, %c0_111] : memref<18x48x128xbf16, #tpu.memory_space<vmem>>, vector<16x16x128xbf16>
      tpu.vector_store %arg6[%c1_109, %c16_110, %c0_111], %148 {strides = array<i32>} : memref<18x48x128xbf16, #tpu.memory_space<vmem>>, vector<16x16x128xbf16>,
    } else {
    }
    %c0 = arith.constant 0 : index
    %c15 = arith.constant 15 : index
    %c0_1 = arith.constant 0 : index
    %3 = vector.load %arg6[%c0, %c15, %c0_1] : memref<18x48x128xbf16, #tpu.memory_space<vmem>>, vector<18x16x128xbf16>
    %4 = vector.extract_strided_slice %3 {offsets = [0, 0, 0], sizes = [16, 16, 128], strides = [1, 1, 1]} : vector<18x16x128xbf16> to vector<16x16x128xbf16>
    %5 = vector.shape_cast %4 : vector<16x16x128xbf16> to vector<256x128xbf16>
    %c0_2 = arith.constant 0 : index
    %c0_3 = arith.constant 0 : index
    %6 = vector.load %arg8[%c0_2, %c0_3] : memref<256x1152xbf16, #tpu.memory_space<vmem>>, vector<256x128xbf16>
    tpu.vector_store %arg8[%c0_2, %c0_3], %5 {strides = array<i32>} : memref<256x1152xbf16, #tpu.memory_space<vmem>>, vector<256x128xbf16>,
    %7 = vector.extract_strided_slice %3 {offsets = [1, 0, 0], sizes = [16, 16, 128], strides = [1, 1, 1]} : vector<18x16x128xbf16> to vector<16x16x128xbf16>
    %8 = vector.shape_cast %7 : vector<16x16x128xbf16> to vector<256x128xbf16>
    %c0_4 = arith.constant 0 : index
    %c384 = arith.constant 384 : index
    %9 = vector.load %arg8[%c0_4, %c384] : memref<256x1152xbf16, #tpu.memory_space<vmem>>, vector<256x128xbf16>
    tpu.vector_store %arg8[%c0_4, %c384], %8 {strides = array<i32>} : memref<256x1152xbf16, #tpu.memory_space<vmem>>, vector<256x128xbf16>,
    %10 = vector.extract_strided_slice %3 {offsets = [2, 0, 0], sizes = [16, 16, 128], strides = [1, 1, 1]} : vector<18x16x128xbf16> to vector<16x16x128xbf16>
    %11 = vector.shape_cast %10 : vector<16x16x128xbf16> to vector<256x128xbf16>
    %c0_5 = arith.constant 0 : index
    %c768 = arith.constant 768 : index
    %12 = vector.load %arg8[%c0_5, %c768] : memref<256x1152xbf16, #tpu.memory_space<vmem>>, vector<256x128xbf16>
    tpu.vector_store %arg8[%c0_5, %c768], %11 {strides = array<i32>} : memref<256x1152xbf16, #tpu.memory_space<vmem>>, vector<256x128xbf16>,
    %c0_6 = arith.constant 0 : index
    %c16 = arith.constant 16 : index
    %c0_7 = arith.constant 0 : index
    %13 = vector.load %arg6[%c0_6, %c16, %c0_7] : memref<18x48x128xbf16, #tpu.memory_space<vmem>>, vector<18x16x128xbf16>
    %14 = vector.extract_strided_slice %13 {offsets = [0, 0, 0], sizes = [16, 16, 128], strides = [1, 1, 1]} : vector<18x16x128xbf16> to vector<16x16x128xbf16>
    %15 = vector.shape_cast %14 : vector<16x16x128xbf16> to vector<256x128xbf16>
    %c0_8 = arith.constant 0 : index
    %c128 = arith.constant 128 : index
    %16 = vector.load %arg8[%c0_8, %c128] : memref<256x1152xbf16, #tpu.memory_space<vmem>>, vector<256x128xbf16>
    tpu.vector_store %arg8[%c0_8, %c128], %15 {strides = array<i32>} : memref<256x1152xbf16, #tpu.memory_space<vmem>>, vector<256x128xbf16>,
    %17 = vector.extract_strided_slice %13 {offsets = [1, 0, 0], sizes = [16, 16, 128], strides = [1, 1, 1]} : vector<18x16x128xbf16> to vector<16x16x128xbf16>
    %18 = vector.shape_cast %17 : vector<16x16x128xbf16> to vector<256x128xbf16>
    %c0_9 = arith.constant 0 : index
    %c512 = arith.constant 512 : index
    %19 = vector.load %arg8[%c0_9, %c512] : memref<256x1152xbf16, #tpu.memory_space<vmem>>, vector<256x128xbf16>
    tpu.vector_store %arg8[%c0_9, %c512], %18 {strides = array<i32>} : memref<256x1152xbf16, #tpu.memory_space<vmem>>, vector<256x128xbf16>,
    %20 = vector.extract_strided_slice %13 {offsets = [2, 0, 0], sizes = [16, 16, 128], strides = [1, 1, 1]} : vector<18x16x128xbf16> to vector<16x16x128xbf16>
    %21 = vector.shape_cast %20 : vector<16x16x128xbf16> to vector<256x128xbf16>
    %c0_10 = arith.constant 0 : index
    %c896 = arith.constant 896 : index
    %22 = vector.load %arg8[%c0_10, %c896] : memref<256x1152xbf16, #tpu.memory_space<vmem>>, vector<256x128xbf16>
    tpu.vector_store %arg8[%c0_10, %c896], %21 {strides = array<i32>} : memref<256x1152xbf16, #tpu.memory_space<vmem>>, vector<256x128xbf16>,
    %c0_11 = arith.constant 0 : index
    %c17 = arith.constant 17 : index
    %c0_12 = arith.constant 0 : index
    %23 = vector.load %arg6[%c0_11, %c17, %c0_12] : memref<18x48x128xbf16, #tpu.memory_space<vmem>>, vector<18x16x128xbf16>
    %24 = vector.extract_strided_slice %23 {offsets = [0, 0, 0], sizes = [16, 16, 128], strides = [1, 1, 1]} : vector<18x16x128xbf16> to vector<16x16x128xbf16>
    %25 = vector.shape_cast %24 : vector<16x16x128xbf16> to vector<256x128xbf16>
    %c0_13 = arith.constant 0 : index
    %c256 = arith.constant 256 : index
    %26 = vector.load %arg8[%c0_13, %c256] : memref<256x1152xbf16, #tpu.memory_space<vmem>>, vector<256x128xbf16>
    tpu.vector_store %arg8[%c0_13, %c256], %25 {strides = array<i32>} : memref<256x1152xbf16, #tpu.memory_space<vmem>>, vector<256x128xbf16>,
    %27 = vector.extract_strided_slice %23 {offsets = [1, 0, 0], sizes = [16, 16, 128], strides = [1, 1, 1]} : vector<18x16x128xbf16> to vector<16x16x128xbf16>
    %28 = vector.shape_cast %27 : vector<16x16x128xbf16> to vector<256x128xbf16>
    %c0_14 = arith.constant 0 : index
    %c640 = arith.constant 640 : index
    %29 = vector.load %arg8[%c0_14, %c640] : memref<256x1152xbf16, #tpu.memory_space<vmem>>, vector<256x128xbf16>
    tpu.vector_store %arg8[%c0_14, %c640], %28 {strides = array<i32>} : memref<256x1152xbf16, #tpu.memory_space<vmem>>, vector<256x128xbf16>,
    %30 = vector.extract_strided_slice %23 {offsets = [2, 0, 0], sizes = [16, 16, 128], strides = [1, 1, 1]} : vector<18x16x128xbf16> to vector<16x16x128xbf16>
    %31 = vector.shape_cast %30 : vector<16x16x128xbf16> to vector<256x128xbf16>
    %c0_15 = arith.constant 0 : index
    %c1024 = arith.constant 1024 : index
    %32 = vector.load %arg8[%c0_15, %c1024] : memref<256x1152xbf16, #tpu.memory_space<vmem>>, vector<256x128xbf16>
    tpu.vector_store %arg8[%c0_15, %c1024], %31 {strides = array<i32>} : memref<256x1152xbf16, #tpu.memory_space<vmem>>, vector<256x128xbf16>,
    %c0_16 = arith.constant 0 : index
    %c0_17 = arith.constant 0 : index
    %33 = vector.load %arg8[%c0_16, %c0_17] : memref<256x1152xbf16, #tpu.memory_space<vmem>>, vector<256x1152xbf16>
    %c0_18 = arith.constant 0 : index
    %c0_19 = arith.constant 0 : index
    %c0_20 = arith.constant 0 : index
    %c0_21 = arith.constant 0 : index
    %34 = vector.load %arg2[%c0_18, %c0_19, %c0_20, %c0_21] : memref<1x2x1152x128xbf16, #tpu.memory_space<vmem>>, vector<1x1x1152x128xbf16>
    %35 = vector.shape_cast %34 : vector<1x1x1152x128xbf16> to vector<1152x128xbf16>
    %cst = arith.constant dense<0.000000e+00> : vector<256x128xf32>
    %36 = tpu.matmul %33, %35, %cst {dimension_numbers = #tpu.dot_dimension_numbers<[1], [0], [0], [1], [0, 0, 1, 1], [], []>} : vector<256x1152xbf16>, vector<1152x128xbf16>, vector<256x128xf32> -> vector<256x128xf32>
    %cst_22 = arith.constant dense<0.000000e+00> : vector<128xf32>
    %37 = vector.multi_reduction <add>, %36, %cst_22 [0] : vector<256x128xf32> to vector<128xf32>
    %38 = vector.shape_cast %37 : vector<128xf32> to vector<1x128xf32>
    %c64_i32 = arith.constant 64 : i32
    %39 = tpu.dynamic_rotate %38 by %c64_i32 dim 1 : vector<1x128xf32>, i32 -> vector<1x128xf32>
    %40 = arith.addf %38, %39 : vector<1x128xf32>
    %41 = arith.mulf %36, %36 : vector<256x128xf32>
    %cst_23 = arith.constant dense<0.000000e+00> : vector<128xf32>
    %42 = vector.multi_reduction <add>, %41, %cst_23 [0] : vector<256x128xf32> to vector<128xf32>
    %43 = vector.shape_cast %42 : vector<128xf32> to vector<1x128xf32>
    %c64_i32_24 = arith.constant 64 : i32
    %44 = tpu.dynamic_rotate %43 by %c64_i32_24 dim 1 : vector<1x128xf32>, i32 -> vector<1x128xf32>
    %45 = arith.addf %43, %44 : vector<1x128xf32>
    %cst_25 = arith.constant 0.001953125 : f32
    %46 = vector.broadcast %cst_25 : f32 to vector<1x128xf32>
    %47 = arith.mulf %40, %46 : vector<1x128xf32>
    %cst_26 = arith.constant 0.001953125 : f32
    %48 = vector.broadcast %cst_26 : f32 to vector<1x128xf32>
    %49 = arith.mulf %45, %48 : vector<1x128xf32>
    %50 = arith.mulf %47, %47 : vector<1x128xf32>
    %51 = arith.subf %49, %50 : vector<1x128xf32>
    %c0_27 = arith.constant 0 : index
    %c0_28 = arith.constant 0 : index
    %c0_29 = arith.constant 0 : index
    %c0_30 = arith.constant 0 : index
    %52 = vector.load %arg3[%c0_27, %c0_28, %c0_29, %c0_30] : memref<1x2x1x128xf32, #tpu.memory_space<vmem>>, vector<1x1x1x128xf32>
    %53 = vector.shape_cast %52 : vector<1x1x1x128xf32> to vector<1x128xf32>
    %cst_31 = arith.constant 9.99999974E-6 : f32
    %54 = vector.broadcast %cst_31 : f32 to vector<1x128xf32>
    %55 = arith.addf %51, %54 : vector<1x128xf32>
    %56 = math.rsqrt %55 : vector<1x128xf32>
    %57 = arith.mulf %53, %56 : vector<1x128xf32>
    %c0_32 = arith.constant 0 : index
    %c0_33 = arith.constant 0 : index
    %c0_34 = arith.constant 0 : index
    %c0_35 = arith.constant 0 : index
    %58 = vector.load %arg4[%c0_32, %c0_33, %c0_34, %c0_35] : memref<1x2x1x128xf32, #tpu.memory_space<vmem>>, vector<1x1x1x128xf32>
    %59 = vector.shape_cast %58 : vector<1x1x1x128xf32> to vector<1x128xf32>
    %60 = arith.mulf %47, %57 : vector<1x128xf32>
    %61 = arith.subf %59, %60 : vector<1x128xf32>
    %62 = vector.broadcast %57 : vector<1x128xf32> to vector<256x128xf32>
    %63 = arith.mulf %36, %62 : vector<256x128xf32>
    %64 = vector.broadcast %61 : vector<1x128xf32> to vector<256x128xf32>
    %65 = arith.addf %63, %64 : vector<256x128xf32>
    %cst_36 = arith.constant 0.000000e+00 : f32
    %66 = vector.broadcast %cst_36 : f32 to vector<256x128xf32>
    %67 = arith.maximumf %65, %66 : vector<256x128xf32>
    %68 = vector.shape_cast %67 : vector<256x128xf32> to vector<16x16x128xf32>
    %69 = arith.truncf %68 : vector<16x16x128xf32> to vector<16x16x128xbf16>
    %c1 = arith.constant 1 : index
    %c16_37 = arith.constant 16 : index
    %c0_38 = arith.constant 0 : index
    %70 = vector.load %arg7[%c1, %c16_37, %c0_38] : memref<18x48x128xbf16, #tpu.memory_space<vmem>>, vector<16x16x128xbf16>
    tpu.vector_store %arg7[%c1, %c16_37, %c0_38], %69 {strides = array<i32>} : memref<18x48x128xbf16, #tpu.memory_space<vmem>>, vector<16x16x128xbf16>,
    %c0_39 = arith.constant 0 : index
    %c0_40 = arith.constant 0 : index
    %71 = vector.load %arg5[%c0_39, %c0_40] : memref<256x128xf32, #tpu.memory_space<vmem>>, vector<256x128xf32>
    %c0_41 = arith.constant 0 : index
    %c15_42 = arith.constant 15 : index
    %c0_43 = arith.constant 0 : index
    %72 = vector.load %arg7[%c0_41, %c15_42, %c0_43] : memref<18x48x128xbf16, #tpu.memory_space<vmem>>, vector<18x16x128xbf16>
    %73 = vector.extract_strided_slice %72 {offsets = [0, 0, 0], sizes = [16, 16, 128], strides = [1, 1, 1]} : vector<18x16x128xbf16> to vector<16x16x128xbf16>
    %74 = vector.shape_cast %73 : vector<16x16x128xbf16> to vector<256x128xbf16>
    %c0_44 = arith.constant 0 : index
    %c0_45 = arith.constant 0 : index
    %75 = vector.load %arg8[%c0_44, %c0_45] : memref<256x1152xbf16, #tpu.memory_space<vmem>>, vector<256x128xbf16>
    tpu.vector_store %arg8[%c0_44, %c0_45], %74 {strides = array<i32>} : memref<256x1152xbf16, #tpu.memory_space<vmem>>, vector<256x128xbf16>,
    %76 = vector.extract_strided_slice %72 {offsets = [1, 0, 0], sizes = [16, 16, 128], strides = [1, 1, 1]} : vector<18x16x128xbf16> to vector<16x16x128xbf16>
    %77 = vector.shape_cast %76 : vector<16x16x128xbf16> to vector<256x128xbf16>
    %c0_46 = arith.constant 0 : index
    %c384_47 = arith.constant 384 : index
    %78 = vector.load %arg8[%c0_46, %c384_47] : memref<256x1152xbf16, #tpu.memory_space<vmem>>, vector<256x128xbf16>
    tpu.vector_store %arg8[%c0_46, %c384_47], %77 {strides = array<i32>} : memref<256x1152xbf16, #tpu.memory_space<vmem>>, vector<256x128xbf16>,
    %79 = vector.extract_strided_slice %72 {offsets = [2, 0, 0], sizes = [16, 16, 128], strides = [1, 1, 1]} : vector<18x16x128xbf16> to vector<16x16x128xbf16>
    %80 = vector.shape_cast %79 : vector<16x16x128xbf16> to vector<256x128xbf16>
    %c0_48 = arith.constant 0 : index
    %c768_49 = arith.constant 768 : index
    %81 = vector.load %arg8[%c0_48, %c768_49] : memref<256x1152xbf16, #tpu.memory_space<vmem>>, vector<256x128xbf16>
    tpu.vector_store %arg8[%c0_48, %c768_49], %80 {strides = array<i32>} : memref<256x1152xbf16, #tpu.memory_space<vmem>>, vector<256x128xbf16>,
    %c0_50 = arith.constant 0 : index
    %c16_51 = arith.constant 16 : index
    %c0_52 = arith.constant 0 : index
    %82 = vector.load %arg7[%c0_50, %c16_51, %c0_52] : memref<18x48x128xbf16, #tpu.memory_space<vmem>>, vector<18x16x128xbf16>
    %83 = vector.extract_strided_slice %82 {offsets = [0, 0, 0], sizes = [16, 16, 128], strides = [1, 1, 1]} : vector<18x16x128xbf16> to vector<16x16x128xbf16>
    %84 = vector.shape_cast %83 : vector<16x16x128xbf16> to vector<256x128xbf16>
    %c0_53 = arith.constant 0 : index
    %c128_54 = arith.constant 128 : index
    %85 = vector.load %arg8[%c0_53, %c128_54] : memref<256x1152xbf16, #tpu.memory_space<vmem>>, vector<256x128xbf16>
    tpu.vector_store %arg8[%c0_53, %c128_54], %84 {strides = array<i32>} : memref<256x1152xbf16, #tpu.memory_space<vmem>>, vector<256x128xbf16>,
    %86 = vector.extract_strided_slice %82 {offsets = [1, 0, 0], sizes = [16, 16, 128], strides = [1, 1, 1]} : vector<18x16x128xbf16> to vector<16x16x128xbf16>
    %87 = vector.shape_cast %86 : vector<16x16x128xbf16> to vector<256x128xbf16>
    %c0_55 = arith.constant 0 : index
    %c512_56 = arith.constant 512 : index
    %88 = vector.load %arg8[%c0_55, %c512_56] : memref<256x1152xbf16, #tpu.memory_space<vmem>>, vector<256x128xbf16>
    tpu.vector_store %arg8[%c0_55, %c512_56], %87 {strides = array<i32>} : memref<256x1152xbf16, #tpu.memory_space<vmem>>, vector<256x128xbf16>,
    %89 = vector.extract_strided_slice %82 {offsets = [2, 0, 0], sizes = [16, 16, 128], strides = [1, 1, 1]} : vector<18x16x128xbf16> to vector<16x16x128xbf16>
    %90 = vector.shape_cast %89 : vector<16x16x128xbf16> to vector<256x128xbf16>
    %c0_57 = arith.constant 0 : index
    %c896_58 = arith.constant 896 : index
    %91 = vector.load %arg8[%c0_57, %c896_58] : memref<256x1152xbf16, #tpu.memory_space<vmem>>, vector<256x128xbf16>
    tpu.vector_store %arg8[%c0_57, %c896_58], %90 {strides = array<i32>} : memref<256x1152xbf16, #tpu.memory_space<vmem>>, vector<256x128xbf16>,
    %c0_59 = arith.constant 0 : index
    %c17_60 = arith.constant 17 : index
    %c0_61 = arith.constant 0 : index
    %92 = vector.load %arg7[%c0_59, %c17_60, %c0_61] : memref<18x48x128xbf16, #tpu.memory_space<vmem>>, vector<18x16x128xbf16>
    %93 = vector.extract_strided_slice %92 {offsets = [0, 0, 0], sizes = [16, 16, 128], strides = [1, 1, 1]} : vector<18x16x128xbf16> to vector<16x16x128xbf16>
    %94 = vector.shape_cast %93 : vector<16x16x128xbf16> to vector<256x128xbf16>
    %c0_62 = arith.constant 0 : index
    %c256_63 = arith.constant 256 : index
    %95 = vector.load %arg8[%c0_62, %c256_63] : memref<256x1152xbf16, #tpu.memory_space<vmem>>, vector<256x128xbf16>
    tpu.vector_store %arg8[%c0_62, %c256_63], %94 {strides = array<i32>} : memref<256x1152xbf16, #tpu.memory_space<vmem>>, vector<256x128xbf16>,
    %96 = vector.extract_strided_slice %92 {offsets = [1, 0, 0], sizes = [16, 16, 128], strides = [1, 1, 1]} : vector<18x16x128xbf16> to vector<16x16x128xbf16>
    %97 = vector.shape_cast %96 : vector<16x16x128xbf16> to vector<256x128xbf16>
    %c0_64 = arith.constant 0 : index
    %c640_65 = arith.constant 640 : index
    %98 = vector.load %arg8[%c0_64, %c640_65] : memref<256x1152xbf16, #tpu.memory_space<vmem>>, vector<256x128xbf16>
    tpu.vector_store %arg8[%c0_64, %c640_65], %97 {strides = array<i32>} : memref<256x1152xbf16, #tpu.memory_space<vmem>>, vector<256x128xbf16>,
    %99 = vector.extract_strided_slice %92 {offsets = [2, 0, 0], sizes = [16, 16, 128], strides = [1, 1, 1]} : vector<18x16x128xbf16> to vector<16x16x128xbf16>
    %100 = vector.shape_cast %99 : vector<16x16x128xbf16> to vector<256x128xbf16>
    %c0_66 = arith.constant 0 : index
    %c1024_67 = arith.constant 1024 : index
    %101 = vector.load %arg8[%c0_66, %c1024_67] : memref<256x1152xbf16, #tpu.memory_space<vmem>>, vector<256x128xbf16>
    tpu.vector_store %arg8[%c0_66, %c1024_67], %100 {strides = array<i32>} : memref<256x1152xbf16, #tpu.memory_space<vmem>>, vector<256x128xbf16>,
    %c0_68 = arith.constant 0 : index
    %c0_69 = arith.constant 0 : index
    %102 = vector.load %arg8[%c0_68, %c0_69] : memref<256x1152xbf16, #tpu.memory_space<vmem>>, vector<256x1152xbf16>
    %c0_70 = arith.constant 0 : index
    %c1_71 = arith.constant 1 : index
    %c0_72 = arith.constant 0 : index
    %c0_73 = arith.constant 0 : index
    %103 = vector.load %arg2[%c0_70, %c1_71, %c0_72, %c0_73] : memref<1x2x1152x128xbf16, #tpu.memory_space<vmem>>, vector<1x1x1152x128xbf16>
    %104 = vector.shape_cast %103 : vector<1x1x1152x128xbf16> to vector<1152x128xbf16>
    %cst_74 = arith.constant dense<0.000000e+00> : vector<256x128xf32>
    %105 = tpu.matmul %102, %104, %cst_74 {dimension_numbers = #tpu.dot_dimension_numbers<[1], [0], [0], [1], [0, 0, 1, 1], [], []>} : vector<256x1152xbf16>, vector<1152x128xbf16>, vector<256x128xf32> -> vector<256x128xf32>
    %cst_75 = arith.constant dense<0.000000e+00> : vector<128xf32>
    %106 = vector.multi_reduction <add>, %105, %cst_75 [0] : vector<256x128xf32> to vector<128xf32>
    %107 = vector.shape_cast %106 : vector<128xf32> to vector<1x128xf32>
    %c64_i32_76 = arith.constant 64 : i32
    %108 = tpu.dynamic_rotate %107 by %c64_i32_76 dim 1 : vector<1x128xf32>, i32 -> vector<1x128xf32>
    %109 = arith.addf %107, %108 : vector<1x128xf32>
    %110 = arith.mulf %105, %105 : vector<256x128xf32>
    %cst_77 = arith.constant dense<0.000000e+00> : vector<128xf32>
    %111 = vector.multi_reduction <add>, %110, %cst_77 [0] : vector<256x128xf32> to vector<128xf32>
    %112 = vector.shape_cast %111 : vector<128xf32> to vector<1x128xf32>
    %c64_i32_78 = arith.constant 64 : i32
    %113 = tpu.dynamic_rotate %112 by %c64_i32_78 dim 1 : vector<1x128xf32>, i32 -> vector<1x128xf32>
    %114 = arith.addf %112, %113 : vector<1x128xf32>
    %cst_79 = arith.constant 0.001953125 : f32
    %115 = vector.broadcast %cst_79 : f32 to vector<1x128xf32>
    %116 = arith.mulf %109, %115 : vector<1x128xf32>
    %cst_80 = arith.constant 0.001953125 : f32
    %117 = vector.broadcast %cst_80 : f32 to vector<1x128xf32>
    %118 = arith.mulf %114, %117 : vector<1x128xf32>
    %119 = arith.mulf %116, %116 : vector<1x128xf32>
    %120 = arith.subf %118, %119 : vector<1x128xf32>
    %c0_81 = arith.constant 0 : index
    %c1_82 = arith.constant 1 : index
    %c0_83 = arith.constant 0 : index
    %c0_84 = arith.constant 0 : index
    %121 = vector.load %arg3[%c0_81, %c1_82, %c0_83, %c0_84] : memref<1x2x1x128xf32, #tpu.memory_space<vmem>>, vector<1x1x1x128xf32>
    %122 = vector.shape_cast %121 : vector<1x1x1x128xf32> to vector<1x128xf32>
    %cst_85 = arith.constant 9.99999974E-6 : f32
    %123 = vector.broadcast %cst_85 : f32 to vector<1x128xf32>
    %124 = arith.addf %120, %123 : vector<1x128xf32>
    %125 = math.rsqrt %124 : vector<1x128xf32>
    %126 = arith.mulf %122, %125 : vector<1x128xf32>
    %c0_86 = arith.constant 0 : index
    %c1_87 = arith.constant 1 : index
    %c0_88 = arith.constant 0 : index
    %c0_89 = arith.constant 0 : index
    %127 = vector.load %arg4[%c0_86, %c1_87, %c0_88, %c0_89] : memref<1x2x1x128xf32, #tpu.memory_space<vmem>>, vector<1x1x1x128xf32>
    %128 = vector.shape_cast %127 : vector<1x1x1x128xf32> to vector<1x128xf32>
    %129 = arith.mulf %116, %126 : vector<1x128xf32>
    %130 = arith.subf %128, %129 : vector<1x128xf32>
    %131 = vector.broadcast %126 : vector<1x128xf32> to vector<256x128xf32>
    %132 = arith.mulf %105, %131 : vector<256x128xf32>
    %133 = vector.broadcast %130 : vector<1x128xf32> to vector<256x128xf32>
    %134 = arith.addf %132, %133 : vector<256x128xf32>
    %135 = arith.addf %71, %134 : vector<256x128xf32>
    %c0_90 = arith.constant 0 : index
    %c0_91 = arith.constant 0 : index
    %136 = vector.load %arg5[%c0_90, %c0_91] : memref<256x128xf32, #tpu.memory_space<vmem>>, vector<256x128xf32>
    tpu.vector_store %arg5[%c0_90, %c0_91], %135 {strides = array<i32>} : memref<256x128xf32, #tpu.memory_space<vmem>>, vector<256x128xf32>,
    %137 = vector.shape_cast %135 : vector<256x128xf32> to vector<16x16x128xf32>
    %138 = arith.truncf %137 : vector<16x16x128xf32> to vector<16x16x128xbf16>
    %c1_92 = arith.constant 1 : index
    %c16_93 = arith.constant 16 : index
    %c0_94 = arith.constant 0 : index
    %139 = vector.load %arg6[%c1_92, %c16_93, %c0_94] : memref<18x48x128xbf16, #tpu.memory_space<vmem>>, vector<16x16x128xbf16>
    tpu.vector_store %arg6[%c1_92, %c16_93, %c0_94], %138 {strides = array<i32>} : memref<18x48x128xbf16, #tpu.memory_space<vmem>>, vector<16x16x128xbf16>,
    return
  }
  func.func @transform_0(%arg0: i32) -> (i32, i32) {
    %c0_i32 = arith.constant 0 : i32
    %c0_i32_0 = arith.constant 0 : i32
    %c0_i32_1 = arith.constant 0 : i32
    return %c0_i32, %c0_i32_0 : i32, i32
  }
  func.func @transform_1(%arg0: i32) -> (i32, i32, i32, i32) {
    %c0_i32 = arith.constant 0 : i32
    %c0_i32_0 = arith.constant 0 : i32
    %c0_i32_1 = arith.constant 0 : i32
    %c0_i32_2 = arith.constant 0 : i32
    return %arg0, %c0_i32, %c0_i32_0, %c0_i32_1 : i32, i32, i32, i32
  }
  func.func @transform_2(%arg0: i32) -> (i32, i32, i32, i32) {
    %c0_i32 = arith.constant 0 : i32
    %c0_i32_0 = arith.constant 0 : i32
    %c0_i32_1 = arith.constant 0 : i32
    %c0_i32_2 = arith.constant 0 : i32
    return %arg0, %c0_i32, %c0_i32_0, %c0_i32_1 : i32, i32, i32, i32
  }
  func.func @transform_3(%arg0: i32) -> (i32, i32, i32, i32) {
    %c0_i32 = arith.constant 0 : i32
    %c0_i32_0 = arith.constant 0 : i32
    %c0_i32_1 = arith.constant 0 : i32
    %c0_i32_2 = arith.constant 0 : i32
    return %arg0, %c0_i32, %c0_i32_0, %c0_i32_1 : i32, i32, i32, i32
  }
  func.func @transform_4(%arg0: i32) -> (i32, i32) {
    %c0_i32 = arith.constant 0 : i32
    %c0_i32_0 = arith.constant 0 : i32
    %c0_i32_1 = arith.constant 0 : i32
    return %c0_i32, %c0_i32_0 : i32, i32
  }
}

</mosaic_0001>

<bundles_post_ra>
// kernel: residual_stack_forward.1
= control target key start
LH: loop header
LB: loop body
LE: loop exit
PB: predicated region body
PF: predicated region fallthrough
CT: control target
= control target key end

     0   :  { %v6829_v1 = vmov 0   ;;  %vm295_vm0 = vsmask.f32 256  ;;  %vm680_vm1 = vsmask.f32 7424  ;;  %s6830_s9 = smov 64   ;;  %s9580_s1 = inlined_call_operand.vmem [shape: bf16[1,2,1152,128], index: 1, kind: input, shape index: {}]   ;;  %s9581_s0 = inlined_call_operand.vmem [shape: f32[256,128], index: 0, kind: input, shape index: {}, may-alias: {0,4}]   ;;  %s9582_s4 = inlined_call_operand.vmem [shape: f32[256,128], index: 4, kind: output, shape index: {}, may-alias: {0,4}]   ;;  %s9583_s2 = inlined_call_operand.vmem [shape: f32[1,2,1,128], index: 2, kind: input, shape index: {}]   ;;  %s9584_s3 = inlined_call_operand.vmem [shape: f32[1,2,1,128], index: 3, kind: input, shape index: {}]  }
   0x1   :  { %v6859_v0 = vld [vmem:[%s9580_s1 + $0x40] sm:$0xff]   ;;  %23 = vst [vmem:[#allocation2 + $0x8] sm:$0xff] %v6829_v1  ;;  %1715 = vmatprep.mubr.bf16.mxu0 %v6829_v1  ;;  %22 = vst [vmem:[#allocation2] sm:$0xff] %v6829_v1  ;;  %v6650_v5 = vld [vmem:[%s9580_s1 + $0x48] sm:$0xff]   ;;  %v303_v32 = vrot.slane %v6829_v1, 7  ;;  %v686_v49 = vrot.slane %v6829_v1, 1 }
   0x2   :  { %24 = vst [vmem:[#allocation2 + $0x10] sm:$0xff] %v6829_v1  ;;  %25 = vst [vmem:[#allocation2 + $0x18] sm:$0xff] %v6829_v1  ;;  %v6647_v2 = vld [vmem:[%s9580_s1 + $0xc0] sm:$0xff]   ;;  %5604 = vmatprep.subr.bf16.mxu0 %v6859_v0  ;;  %v6651_v6 = vld [vmem:[%s9580_s1 + $0xc8] sm:$0xff]  }
   0x3   :  { %27 = vst [vmem:[#allocation2 + $0x28] sm:$0xff] %v6829_v1  ;;  %28 = vst [vmem:[#allocation2 + $0x30] sm:$0xff] %v6829_v1  ;;  %v6648_v3 = vld [vmem:[%s9580_s1] sm:$0xff]   ;;  %5716 = vmatprep.subr.bf16.mxu1 %v6647_v2  ;;  %v6652_v7 = vld [vmem:[%s9580_s1 + $0x8] sm:$0xff]  }
   0x4   :  { %30 = vst [vmem:[#allocation2 + $0x40] sm:$0xff] %v6829_v1  ;;  %31 = vst [vmem:[#allocation2 + $0x48] sm:$0xff] %v6829_v1  ;;  %v6649_v4 = vld [vmem:[%s9580_s1 + $0x80] sm:$0xff]   ;;  %5605 = vmatpush3.bf16.msra.mxu0 %v6648_v3  ;;  %v6653_v8 = vld [vmem:[%s9580_s1 + $0x88] sm:$0xff]  }
   0x5   :  { %33 = vst [vmem:[#allocation2 + $0x58] sm:$0xff] %v6829_v1  ;;  %34 = vst [vmem:[#allocation2 + $0x60] sm:$0xff] %v6829_v1  ;;  %5717 = vmatpush3.bf16.msra.mxu1 %v6649_v4  ;;  %5606 = vmatprep.subr.bf16.mxu0 %v6650_v5  ;;  %v6654_v9 = vld [vmem:[%s9580_s1 + $0x50] sm:$0xff]   ;;  %v6658_v13 = vld [vmem:[%s9580_s1 + $0x58] sm:$0xff]  }
   0x6   :  { %36 = vst [vmem:[#allocation2 + $0x70] sm:$0xff] %v6829_v1  ;;  %37 = vst [vmem:[#allocation2 + $0x78] sm:$0xff] %v6829_v1  ;;  %5718 = vmatprep.subr.bf16.mxu1 %v6651_v6  ;;  %v6655_v10 = vld [vmem:[%s9580_s1 + $0xd0] sm:$0xff]   ;;  %v6659_v14 = vld [vmem:[%s9580_s1 + $0xd8] sm:$0xff]  }
   0x7   :  { %39 = vst [vmem:[#allocation2 + $0x88] sm:$0xff] %v6829_v1  ;;  %40 = vst [vmem:[#allocation2 + $0x90] sm:$0xff] %v6829_v1  ;;  %v6656_v11 = vld [vmem:[%s9580_s1 + $0x10] sm:$0xff]   ;;  %v6660_v15 = vld [vmem:[%s9580_s1 + $0x18] sm:$0xff]  }
   0x8   :  { %42 = vst [vmem:[#allocation2 + $0xa0] sm:$0xff] %v6829_v1  ;;  %43 = vst [vmem:[#allocation2 + $0xa8] sm:$0xff] %v6829_v1  ;;  %5607 = vmatpush3.bf16.msra.mxu0 %v6652_v7  ;;  %v6657_v12 = vld [vmem:[%s9580_s1 + $0x90] sm:$0xff]   ;;  %v6661_v16 = vld [vmem:[%s9580_s1 + $0x98] sm:$0xff]  }
   0x9   :  { %45 = vst [vmem:[#allocation2 + $0xb8] sm:$0xff] %v6829_v1  ;;  %46 = vst [vmem:[#allocation2 + $0xc0] sm:$0xff] %v6829_v1  ;;  %5719 = vmatpush3.bf16.msra.mxu1 %v6653_v8  ;;  %5608 = vmatprep.subr.bf16.mxu0 %v6654_v9  ;;  %v6662_v17 = vld [vmem:[%s9580_s1 + $0x60] sm:$0xff]   ;;  %v6666_v21 = vld [vmem:[%s9580_s1 + $0x68] sm:$0xff]  }
   0xa   :  { %48 = vst [vmem:[#allocation2 + $0xd0] sm:$0xff] %v6829_v1  ;;  %49 = vst [vmem:[#allocation2 + $0xd8] sm:$0xff] %v6829_v1  ;;  %5720 = vmatprep.subr.bf16.mxu1 %v6655_v10  ;;  %v6663_v18 = vld [vmem:[%s9580_s1 + $0xe0] sm:$0xff]   ;;  %v6667_v22 = vld [vmem:[%s9580_s1 + $0xe8] sm:$0xff]  }
   0xb   :  { %51 = vst [vmem:[#allocation2 + $0xe8] sm:$0xff] %v6829_v1  ;;  %52 = vst [vmem:[#allocation2 + $0xf0] sm:$0xff] %v6829_v1  ;;  %v6664_v19 = vld [vmem:[%s9580_s1 + $0x20] sm:$0xff]   ;;  %v6668_v23 = vld [vmem:[%s9580_s1 + $0x28] sm:$0xff]  }
   0xc   :  { %54 = vst [vmem:[#allocation2 + $0x100] sm:$0xff] %v6829_v1  ;;  %55 = vst [vmem:[#allocation2 + $0x108] sm:$0xff] %v6829_v1  ;;  %5609 = vmatpush3.bf16.msra.mxu0 %v6656_v11  ;;  %v6665_v20 = vld [vmem:[%s9580_s1 + $0xa0] sm:$0xff]   ;;  %v6669_v24 = vld [vmem:[%s9580_s1 + $0xa8] sm:$0xff]  }
   0xd   :  { %57 = vst [vmem:[#allocation2 + $0x118] sm:$0xff] %v6829_v1  ;;  %58 = vst [vmem:[#allocation2 + $0x120] sm:$0xff] %v6829_v1  ;;  %5721 = vmatpush3.bf16.msra.mxu1 %v6657_v12  ;;  %5610 = vmatprep.subr.bf16.mxu0 %v6658_v13  ;;  %v6670_v25 = vld [vmem:[%s9580_s1 + $0x70] sm:$0xff]   ;;  %v6674_v29 = vld [vmem:[%s9580_s1 + $0x78] sm:$0xff]  }
   0xe   :  { %60 = vst [vmem:[#allocation2 + $0x130] sm:$0xff] %v6829_v1  ;;  %61 = vst [vmem:[#allocation2 + $0x138] sm:$0xff] %v6829_v1  ;;  %5722 = vmatprep.subr.bf16.mxu1 %v6659_v14  ;;  %v6671_v26 = vld [vmem:[%s9580_s1 + $0xf0] sm:$0xff]   ;;  %v6675_v30 = vld [vmem:[%s9580_s1 + $0xf8] sm:$0xff]  }
   0xf   :  { %63 = vst [vmem:[#allocation2 + $0x148] sm:$0xff] %v6829_v1  ;;  %64 = vst [vmem:[#allocation2 + $0x150] sm:$0xff] %v6829_v1  ;;  %v6672_v27 = vld [vmem:[%s9580_s1 + $0x30] sm:$0xff]   ;;  %v6676_v31 = vld [vmem:[%s9580_s1 + $0x38] sm:$0xff]  }
  0x10   :  { %66 = vst [vmem:[#allocation2 + $0x160] sm:$0xff] %v6829_v1  ;;  %67 = vst [vmem:[#allocation2 + $0x168] sm:$0xff] %v6829_v1  ;;  %5611 = vmatpush3.bf16.msra.mxu0 %v6660_v15  ;;  %v6673_v28 = vld [vmem:[%s9580_s1 + $0xb0] sm:$0xff]   ;;  %v6677_v33 = vld [vmem:[%s9580_s1 + $0xb8] sm:$0xff]  }
  0x11   :  { %69 = vst [vmem:[#allocation2 + $0x178] sm:$0xff] %v6829_v1  ;;  %70 = vst [vmem:[#allocation2 + $0x180] sm:$0xff] %v6829_v1  ;;  %5723 = vmatpush3.bf16.msra.mxu1 %v6661_v16  ;;  %5612 = vmatprep.subr.bf16.mxu0 %v6662_v17  ;;  %v130_v34 = vld [vmem:[%s9581_s0] sm:$0xff]  ;;  %v131_v35 = vld [vmem:[%s9581_s0 + $0x8] sm:$0xff] }
  0x12   :  { %72 = vst [vmem:[#allocation2 + $0x190] sm:$0xff] %v6829_v1  ;;  %73 = vst [vmem:[#allocation2 + $0x198] sm:$0xff] %v6829_v1  ;;  %5724 = vmatprep.subr.bf16.mxu1 %v6663_v18  ;;  %v259_v36 = vld [vmem:[#allocation2] sm:$0x80]  ;;  %v645_v39 = vld [vmem:[#allocation2 + $0x10] sm:$0x1] }
  0x13   :  { %75 = vst [vmem:[#allocation2 + $0x1a8] sm:$0xff] %v6829_v1  ;;  %76 = vst [vmem:[#allocation3] sm:$0xff] %v6829_v1  ;;  %v6678_v37 = vld [vmem:[%s9580_s1 + $0x140] sm:$0xff]   ;;  %v297_v38 = vshrl.u32 %v259_v36, 16  ;;  %v261_v44 = vld [vmem:[#allocation2 + $0x18] sm:$0x80] }
  0x14   :  { %78 = vst [vmem:[#allocation3 + $0x10] sm:$0xff] %v6829_v1  ;;  %79 = vst [vmem:[#allocation3 + $0x18] sm:$0xff] %v6829_v1  ;;  %5613 = vmatpush3.bf16.msra.mxu0 %v6664_v19  ;;  %v6679_v41 = vld [vmem:[%s9580_s1 + $0x100] sm:$0xff]   ;;  %v6680_v48 = vld [vmem:[%s9580_s1 + $0x148] sm:$0xff]   ;;  %v689_v50 = vshll.u32 %v645_v39, 16  ;;  %v309_v54 = vshrl.u32 %v261_v44, 16 }
  0x15   :  { %81 = vst [vmem:[#allocation3 + $0x28] sm:$0xff] %v6829_v1  ;;  %82 = vst [vmem:[#allocation3 + $0x30] sm:$0xff] %v6829_v1  ;;  %5725 = vmatpush3.bf16.msra.mxu1 %v6665_v20  ;;  %5614 = vmatprep.subr.bf16.mxu0 %v6666_v21  ;;  %v299_v40 = vrot.slane %v297_v38, 7  ;;  %v6681_v51 = vld [vmem:[%s9580_s1 + $0x108] sm:$0xff]   ;;  %v263_v56 = vld [vmem:[#allocation2 + $0x30] sm:$0x80] }
  0x16   :  { %84 = vst [vmem:[#allocation3 + $0x40] sm:$0xff] %v6829_v1  ;;  %85 = vst [vmem:[#allocation3 + $0x48] sm:$0xff] %v6829_v1  ;;  %5726 = vmatprep.subr.bf16.mxu1 %v6667_v22  ;;  %v647_v57 = vld [vmem:[#allocation2 + $0x28] sm:$0x1]  ;;  %v691_v62 = vrot.slane %v689_v50, 1  ;;  %v321_v3 = vshrl.u32 %v263_v56, 16 }
  0x17   :  { %87 = vst [vmem:[#allocation3 + $0x58] sm:$0xff] %v6829_v1  ;;  %88 = vst [vmem:[#allocation3 + $0x60] sm:$0xff] %v6829_v1  ;;  %v307_v47 = vsel %vm295_vm0, %v299_v40, %v303_v32  ;;  %v265_v63 = vld [vmem:[#allocation2 + $0x48] sm:$0x80]  ;;  %v311_v5 = vrot.slane %v309_v54, 7  ;;  %v6682_v10 = vld [vmem:[%s9580_s1 + $0x150] sm:$0xff]  }
  0x18   :  { %90 = vst [vmem:[#allocation3 + $0x70] sm:$0xff] %v6829_v1  ;;  %91 = vst [vmem:[#allocation3 + $0x78] sm:$0xff] %v6829_v1  ;;  %5615 = vmatpush3.bf16.msra.mxu0 %v6668_v23  ;;  %v701_v11 = vshll.u32 %v647_v57, 16  ;;  %v6683_v13 = vld [vmem:[%s9580_s1 + $0x110] sm:$0xff]   ;;  %v692_v15 = vsel %vm680_vm1, %v686_v49, %v691_v62  ;;  %v323_v18 = vrot.slane %v321_v3, 7  ;;  %v333_v20 = vshrl.u32 %v265_v63, 16 }
  0x19   :  { %93 = vst [vmem:[#allocation3 + $0x88] sm:$0xff] %v6829_v1  ;;  %94 = vst [vmem:[#allocation3 + $0x90] sm:$0xff] %v6829_v1  ;;  %5727 = vmatpush3.bf16.msra.mxu1 %v6669_v24  ;;  %5616 = vmatprep.subr.bf16.mxu0 %v6670_v25  ;;  %v267_v40 = vld [vmem:[#allocation2 + $0x60] sm:$0x80]  ;;  %v6684_v44 = vld [vmem:[%s9580_s1 + $0x158] sm:$0xff]  }
  0x1a   :  { %96 = vst [vmem:[#allocation3 + $0xa0] sm:$0xff] %v6829_v1  ;;  %97 = vst [vmem:[#allocation3 + $0xa8] sm:$0xff] %v6829_v1  ;;  %5728 = vmatprep.subr.bf16.mxu1 %v6671_v26  ;;  %v335_v38 = vrot.slane %v333_v20, 7  ;;  %v6685_v49 = vld [vmem:[%s9580_s1 + $0x118] sm:$0xff]   ;;  %v653_v63 = vld [vmem:[#allocation2 + $0x70] sm:$0x1] }
  0x1b   :  { %99 = vst [vmem:[#allocation3 + $0xb8] sm:$0xff] %v6829_v1  ;;  %100 = vst [vmem:[#allocation3 + $0xc0] sm:$0xff] %v6829_v1  ;;  %v269_v62 = vld [vmem:[#allocation2 + $0x78] sm:$0x80]  ;;  %v6688_v20 = vld [vmem:[%s9580_s1 + $0x120] sm:$0xff]  }
  0x1c   :  { %102 = vst [vmem:[#allocation3 + $0xd0] sm:$0xff] %v6829_v1  ;;  %103 = vst [vmem:[#allocation3 + $0xd8] sm:$0xff] %v6829_v1  ;;  %5617 = vmatpush3.bf16.msra.mxu0 %v6672_v27 }
  0x1d   :  { %105 = vst [vmem:[#allocation3 + $0xe8] sm:$0xff] %v6829_v1  ;;  %106 = vst [vmem:[#allocation3 + $0xf0] sm:$0xff] %v6829_v1  ;;  %5729 = vmatpush3.bf16.msra.mxu1 %v6673_v28  ;;  %5618 = vmatprep.subr.bf16.mxu0 %v6674_v29 }
  0x1e   :  { %108 = vst [vmem:[#allocation3 + $0x100] sm:$0xff] %v6829_v1  ;;  %109 = vst [vmem:[#allocation3 + $0x108] sm:$0xff] %v6829_v1  ;;  %5730 = vmatprep.subr.bf16.mxu1 %v6675_v30 }
  0x1f   :  { %111 = vst [vmem:[#allocation3 + $0x118] sm:$0xff] %v6829_v1  ;;  %112 = vst [vmem:[#allocation3 + $0x120] sm:$0xff] %v6829_v1 }
  0x20   :  { %114 = vst [vmem:[#allocation3 + $0x130] sm:$0xff] %v6829_v1  ;;  %115 = vst [vmem:[#allocation3 + $0x138] sm:$0xff] %v6829_v1  ;;  %5619 = vmatpush3.bf16.msra.mxu0 %v6676_v31 }
  0x21   :  { %117 = vst [vmem:[#allocation3 + $0x148] sm:$0xff] %v6829_v1  ;;  %118 = vst [vmem:[#allocation3 + $0x150] sm:$0xff] %v6829_v1  ;;  %5731 = vmatpush3.bf16.msra.mxu1 %v6677_v33  ;;  %5828 = vmatprep.subr.bf16.mxu0 %v6678_v37  ;;  %v703_v33 = vrot.slane %v701_v11, 1 }
  0x22   :  { %120 = vst [vmem:[#allocation3 + $0x160] sm:$0xff] %v6829_v1  ;;  %121 = vst [vmem:[#allocation3 + $0x168] sm:$0xff] %v6829_v1 }
  0x23   :  { %123 = vst [vmem:[#allocation3 + $0x178] sm:$0xff] %v6829_v1  ;;  %124 = vst [vmem:[#allocation3 + $0x180] sm:$0xff] %v6829_v1  ;;  %1716 = vmatmul.mubr.bf16.vlgmr.msra.gmra.mrb[0].mxu0 %v307_v47 }
  0x24   :  { %126 = vst [vmem:[#allocation3 + $0x190] sm:$0xff] %v6829_v1  ;;  %127 = vst [vmem:[#allocation3 + $0x198] sm:$0xff] %v6829_v1  ;;  %5829 = vmatpush3.bf16.msra.mxu0 %v6679_v41 }
  0x25   :  { %129 = vst [vmem:[#allocation3 + $0x1a8] sm:$0xff] %v6829_v1  ;;  %162 = vst [vmem:[%s9582_s4] sm:$0xff] %v130_v34  ;;  %5830 = vmatprep.subr.bf16.mxu0 %v6680_v48  ;;  %v649_v34 = vld [vmem:[#allocation2 + $0x40] sm:$0x1]  ;;  %v345_v48 = vshrl.u32 %v267_v40, 16 }
  0x26   :  { %163 = vst [vmem:[%s9582_s4 + $0x8] sm:$0xff] %v131_v35 }
  0x28   :  { %5831 = vmatpush3.bf16.msra.mxu0 %v6681_v51 }
  0x29   :  { %5832 = vmatprep.subr.bf16.mxu0 %v6682_v10 }
  0x2c   :  { %5833 = vmatpush3.bf16.msra.mxu0 %v6683_v13  ;;  %v6687_v13 = vld [vmem:[%s9580_s1 + $0x1c0] sm:$0xff]  }
  0x2d   :  { %v132_v42 = vld [vmem:[%s9581_s0 + $0x10] sm:$0xff]  ;;  %v133_v43 = vld [vmem:[%s9581_s0 + $0x18] sm:$0xff]  ;;  %5834 = vmatprep.subr.bf16.mxu0 %v6684_v44  ;;  %5940 = vmatprep.subr.bf16.mxu1 %v6687_v13 }
  0x2e   :  { %164 = vst [vmem:[%s9582_s4 + $0x10] sm:$0xff] %v132_v42  ;;  %165 = vst [vmem:[%s9582_s4 + $0x18] sm:$0xff] %v133_v43 }
  0x30   :  { %5835 = vmatpush3.bf16.msra.mxu0 %v6685_v49  ;;  %v277_v49 = vld [vmem:[#allocation2 + $0xd8] sm:$0x80] }
  0x35   :  { %v134_v45 = vld [vmem:[%s9581_s0 + $0x20] sm:$0xff]  ;;  %v135_v46 = vld [vmem:[%s9581_s0 + $0x28] sm:$0xff] }
  0x36   :  { %166 = vst [vmem:[%s9582_s4 + $0x20] sm:$0xff] %v134_v45  ;;  %167 = vst [vmem:[%s9582_s4 + $0x28] sm:$0xff] %v135_v46  ;;  %v713_v45 = vshll.u32 %v649_v34, 16 }
  0x38   :  { %v715_v57 = vrot.slane %v713_v45, 1 }
  0x3d   :  { %v194_v52 = vld [vmem:[%s9581_s0] sm:$0xff]  ;;  %v195_v53 = vld [vmem:[%s9581_s0 + $0x8] sm:$0xff]  ;;  %v136_v58 = vld [vmem:[%s9581_s0 + $0x30] sm:$0xff] }
  0x3e   :  { %v7086_v55 = vpack.c.bf16 %v195_v53, %v194_v52  ;;  %v137_v59 = vld [vmem:[%s9581_s0 + $0x38] sm:$0xff] }
  0x3f   :  { %168 = vst [vmem:[%s9582_s4 + $0x30] sm:$0xff] %v136_v58  ;;  %169 = vst [vmem:[%s9582_s4 + $0x38] sm:$0xff] %v137_v59 }
  0x40   :  { %v313_v60 = vshrl.u32 %v7086_v55, 16  ;;  %v316_v61 = vshll.u32 %v7086_v55, 16  ;;  %1723 = vmatprep.mubr.bf16.mxu0 %v7086_v55 }
  0x42   :  { %v315_v6 = vrot.slane %v313_v60, 7  ;;  %v698_v19 = vrot.slane %v316_v61, 1 }
  0x44   :  { %v318_v14 = vor.u32 %v316_v61, %v315_v6  ;;  %v699_v32 = vor.u32 %v698_v19, %v313_v60  ;;  %v651_v61 = vld [vmem:[#allocation2 + $0x58] sm:$0x1]  ;;  %v655_v19 = vld [vmem:[#allocation2 + $0x88] sm:$0x1] }
  0x45   :  { %v725_v6 = vshll.u32 %v651_v61, 16 }
  0x46   :  { %v138_v0 = vld [vmem:[%s9581_s0 + $0x40] sm:$0xff]  ;;  %v196_v1 = vld [vmem:[%s9581_s0 + $0x10] sm:$0xff]  ;;  %v197_v2 = vld [vmem:[%s9581_s0 + $0x18] sm:$0xff]  ;;  %v319_v22 = vsel %vm295_vm0, %v311_v5, %v318_v14  ;;  %v7195_v46 = vsel %vm680_vm1, %v699_v32, %v703_v33 }
  0x47   :  { %v139_v4 = vld [vmem:[%s9581_s0 + $0x48] sm:$0xff]  ;;  %v7118_v7 = vpack.c.bf16 %v197_v2, %v196_v1  ;;  %1876 = vmatprep.mubr.bf16.mxu1 %v319_v22  ;;  %1724 = vmatmul.mubr.bf16.gmra.mrb[4].mxu0 %v319_v22 }
  0x48   :  { %170 = vst [vmem:[%s9582_s4 + $0x40] sm:$0xff] %v138_v0  ;;  %1877 = vmatmul.mubr.bf16.vlgmr.msra.gmra.mrb[0].mxu1 %v692_v15  ;;  %v347_v0 = vrot.slane %v345_v48, 7  ;;  %v273_v22 = vld [vmem:[#allocation2 + $0xa8] sm:$0x80] }
  0x49   :  { %v325_v16 = vshrl.u32 %v7118_v7, 16  ;;  %v328_v17 = vshll.u32 %v7118_v7, 16  ;;  %1731 = vmatprep.mubr.bf16.mxu0 %v7118_v7  ;;  %v381_v45 = vshrl.u32 %v273_v22, 16 }
  0x4b   :  { %v327_v23 = vrot.slane %v325_v16, 7  ;;  %v710_v47 = vrot.slane %v328_v17, 1 }
  0x4d   :  { %v330_v30 = vor.u32 %v328_v17, %v327_v23  ;;  %v711_v60 = vor.u32 %v710_v47, %v325_v16  ;;  %v7268_v23 = vld [vmem:[#allocation2 + $0xa0] sm:$0x1] }
  0x4e   :  { %v761_v47 = vshll.u32 %v7268_v23, 16 }
  0x4f   :  { %v198_v8 = vld [vmem:[%s9581_s0 + $0x20] sm:$0xff]  ;;  %v199_v9 = vld [vmem:[%s9581_s0 + $0x28] sm:$0xff]  ;;  %v7173_v37 = vsel %vm295_vm0, %v323_v18, %v330_v30  ;;  %v7249_v10 = vsel %vm680_vm1, %v711_v60, %v715_v57  ;;  %v271_v18 = vld [vmem:[#allocation2 + $0x90] sm:$0x80] }
  0x50   :  { %171 = vst [vmem:[%s9582_s4 + $0x48] sm:$0xff] %v139_v4  ;;  %v7132_v12 = vpack.c.bf16 %v199_v9, %v198_v8  ;;  %1884 = vmatprep.mubr.bf16.mxu1 %v7173_v37  ;;  %1732 = vmatmul.mubr.bf16.gmra.mrb[8].mxu0 %v7173_v37  ;;  %v6686_v4 = vld [vmem:[%s9580_s1 + $0x160] sm:$0xff]   ;;  %v357_v8 = vshrl.u32 %v269_v62, 16  ;;  %v737_v9 = vshll.u32 %v653_v63, 16 }
  0x51   :  { %1885 = vmatmul.mubr.bf16.gmra.mrb[4].mxu1 %v7195_v46  ;;  %5836 = vmatprep.subr.bf16.mxu0 %v6686_v4  ;;  %v6692_v4 = vld [vmem:[%s9580_s1 + $0x128] sm:$0xff]  }
  0x52   :  { %v337_v21 = vshrl.u32 %v7132_v12, 16  ;;  %v340_v24 = vshll.u32 %v7132_v12, 16  ;;  %1739 = vmatprep.mubr.bf16.mxu0 %v7132_v12  ;;  %5837 = vmatpush3.bf16.msra.mxu0 %v6688_v20  ;;  %v359_v33 = vrot.slane %v357_v8, 7  ;;  %v739_v40 = vrot.slane %v737_v9, 1 }
  0x53   :  { %v7355_v9 = vrot.slane %v381_v45, 7  ;;  %v7365_v20 = vrot.slane %v761_v47, 1 }
  0x54   :  { %v339_v27 = vrot.slane %v337_v21, 7  ;;  %v722_v11 = vrot.slane %v340_v24, 1 }
  0x56   :  { %v342_v39 = vor.u32 %v340_v24, %v339_v27  ;;  %v723_v27 = vor.u32 %v722_v11, %v337_v21 }
  0x57   :  { %v140_v25 = vld [vmem:[%s9581_s0 + $0x50] sm:$0xff]  ;;  %v141_v26 = vld [vmem:[%s9581_s0 + $0x58] sm:$0xff] }
  0x58   :  { %v200_v28 = vld [vmem:[%s9581_s0 + $0x30] sm:$0xff]  ;;  %v201_v29 = vld [vmem:[%s9581_s0 + $0x38] sm:$0xff]  ;;  %v7201_v50 = vsel %vm295_vm0, %v335_v38, %v342_v39 }
  0x59   :  { %172 = vst [vmem:[%s9582_s4 + $0x50] sm:$0xff] %v140_v25  ;;  %173 = vst [vmem:[%s9582_s4 + $0x58] sm:$0xff] %v141_v26  ;;  %v7164_v31 = vpack.c.bf16 %v201_v29, %v200_v28  ;;  %1892 = vmatprep.mubr.bf16.mxu1 %v7201_v50  ;;  %1740 = vmatmul.mubr.bf16.gmra.mrb[12].mxu0 %v7201_v50  ;;  %v275_v25 = vld [vmem:[#allocation2 + $0xc0] sm:$0x80]  ;;  %v727_v28 = vrot.slane %v725_v6, 1 }
  0x5a   :  { %1893 = vmatmul.mubr.bf16.gmra.mrb[8].mxu1 %v7249_v10  ;;  %v6689_v26 = vld [vmem:[%s9580_s1 + $0x180] sm:$0xff]   ;;  %v393_v48 = vshrl.u32 %v275_v25, 16 }
  0x5b   :  { %v349_v41 = vshrl.u32 %v7164_v31, 16  ;;  %v352_v52 = vshll.u32 %v7164_v31, 16  ;;  %1747 = vmatprep.mubr.bf16.mxu0 %v7164_v31  ;;  %5941 = vmatpush3.bf16.msra.mxu1 %v6689_v26 }
  0x5c   :  { %v7367_v22 = vrot.slane %v393_v48, 7 }
  0x5d   :  { %v351_v51 = vrot.slane %v349_v41, 7  ;;  %v734_v39 = vrot.slane %v352_v52, 1 }
  0x5f   :  { %v354_v1 = vor.u32 %v352_v52, %v351_v51  ;;  %v6690_v51 = vld [vmem:[%s9580_s1 + $0x168] sm:$0xff]   ;;  %v7320_v52 = vsel %vm680_vm1, %v723_v27, %v727_v28 }
  0x60   :  { %v142_v35 = vld [vmem:[%s9581_s0 + $0x60] sm:$0xff]  ;;  %v143_v36 = vld [vmem:[%s9581_s0 + $0x68] sm:$0xff]  ;;  %5838 = vmatprep.subr.bf16.mxu0 %v6690_v51 }
  0x61   :  { %v202_v42 = vld [vmem:[%s9581_s0 + $0x40] sm:$0xff]  ;;  %v203_v43 = vld [vmem:[%s9581_s0 + $0x48] sm:$0xff]  ;;  %v7257_v14 = vsel %vm295_vm0, %v347_v0, %v354_v1  ;;  %v405_v0 = vshrl.u32 %v277_v49, 16  ;;  %5839 = vmatpush3.bf16.msra.mxu0 %v6692_v4 }
  0x62   :  { %174 = vst [vmem:[%s9582_s4 + $0x60] sm:$0xff] %v142_v35  ;;  %175 = vst [vmem:[%s9582_s4 + $0x68] sm:$0xff] %v143_v36  ;;  %v7206_v53 = vpack.c.bf16 %v203_v43, %v202_v42  ;;  %1900 = vmatprep.mubr.bf16.mxu1 %v7257_v14  ;;  %v659_v35 = vld [vmem:[#allocation2 + $0xb8] sm:$0x1]  ;;  %v369_v42 = vshrl.u32 %v271_v18, 16  ;;  %v749_v43 = vshll.u32 %v655_v19, 16  ;;  %1748 = vmatmul.mubr.bf16.gmra.mrb[16].mxu0 %v7257_v14 }
  0x63   :  { %v6691_v1 = vld [vmem:[%s9580_s1 + $0x1c8] sm:$0xff]   ;;  %1901 = vmatmul.mubr.bf16.gmra.mrb[12].mxu1 %v7320_v52  ;;  %v7383_v28 = vrot.slane %v405_v0, 7  ;;  %v665_v51 = vld [vmem:[#allocation2 + $0x100] sm:$0x1]  ;;  %v6696_v0 = vld [vmem:[%s9580_s1 + $0x130] sm:$0xff]  }
  0x64   :  { %v361_v2 = vshrl.u32 %v7206_v53, 16  ;;  %v364_v16 = vshll.u32 %v7206_v53, 16  ;;  %1755 = vmatprep.mubr.bf16.mxu0 %v7206_v53  ;;  %v371_v6 = vrot.slane %v369_v42, 7  ;;  %v7353_v8 = vrot.slane %v749_v43, 1  ;;  %5942 = vmatprep.subr.bf16.mxu1 %v6691_v1  ;;  %v6693_v19 = vld [vmem:[%s9580_s1 + $0x188] sm:$0xff]  }
  0x65   :  { %5943 = vmatpush3.bf16.msra.mxu1 %v6693_v19  ;;  %v281_v43 = vld [vmem:[#allocation2 + $0x108] sm:$0x80] }
  0x66   :  { %v363_v15 = vrot.slane %v361_v2, 7  ;;  %v746_v13 = vrot.slane %v364_v16, 1 }
  0x68   :  { %v366_v34 = vor.u32 %v364_v16, %v363_v15 }
  0x69   :  { %v144_v54 = vld [vmem:[%s9581_s0 + $0x70] sm:$0xff]  ;;  %v145_v56 = vld [vmem:[%s9581_s0 + $0x78] sm:$0xff] }
  0x6a   :  { %176 = vst [vmem:[%s9582_s4 + $0x70] sm:$0xff] %v144_v54  ;;  %177 = vst [vmem:[%s9582_s4 + $0x78] sm:$0xff] %v145_v56  ;;  %v7330_v60 = vsel %vm295_vm0, %v359_v33, %v366_v34  ;;  %v279_v33 = vld [vmem:[#allocation2 + $0xf0] sm:$0x80]  ;;  %v663_v34 = vld [vmem:[#allocation2 + $0xe8] sm:$0x1] }
  0x6b   :  { %1908 = vmatprep.mubr.bf16.mxu1 %v7330_v60  ;;  %1756 = vmatmul.mubr.bf16.gmra.mrb[20].mxu0 %v7330_v60 }
  0x71   :  { %v146_v58 = vld [vmem:[%s9581_s0 + $0x80] sm:$0xff]  ;;  %v147_v59 = vld [vmem:[%s9581_s0 + $0x88] sm:$0xff] }
  0x72   :  { %178 = vst [vmem:[%s9582_s4 + $0x80] sm:$0xff] %v146_v58  ;;  %179 = vst [vmem:[%s9582_s4 + $0x88] sm:$0xff] %v147_v59  ;;  %v773_v58 = vshll.u32 %v659_v35, 16  ;;  %v661_v59 = vld [vmem:[#allocation2 + $0xd0] sm:$0x1] }
  0x73   :  { %v785_v18 = vshll.u32 %v661_v59, 16  ;;  %v797_v59 = vshll.u32 %v663_v34, 16 }
  0x74   :  { %v7381_v27 = vrot.slane %v773_v58, 1 }
  0x75   :  { %v7485_v34 = vrot.slane %v797_v59, 1 }
  0x79   :  { %v204_v3 = vld [vmem:[%s9581_s0 + $0x50] sm:$0xff]  ;;  %v205_v5 = vld [vmem:[%s9581_s0 + $0x58] sm:$0xff]  ;;  %v206_v24 = vld [vmem:[%s9581_s0 + $0x60] sm:$0xff] }
  0x7a   :  { %v7262_v17 = vpack.c.bf16 %v205_v5, %v204_v3  ;;  %v207_v29 = vld [vmem:[%s9581_s0 + $0x68] sm:$0xff]  ;;  %v148_v30 = vld [vmem:[%s9581_s0 + $0x90] sm:$0xff]  ;;  %v149_v32 = vld [vmem:[%s9581_s0 + $0x98] sm:$0xff]  ;;  %v735_v5 = vor.u32 %v734_v39, %v349_v41  ;;  %v7409_v39 = vrot.slane %v785_v18, 1 }
  0x7b   :  { %180 = vst [vmem:[%s9582_s4 + $0x90] sm:$0xff] %v148_v30  ;;  %181 = vst [vmem:[%s9582_s4 + $0x98] sm:$0xff] %v149_v32  ;;  %v7313_v44 = vpack.c.bf16 %v207_v29, %v206_v24  ;;  %v6697_v18 = vld [vmem:[%s9580_s1 + $0x190] sm:$0xff]  }
  0x7c   :  { %v373_v21 = vshrl.u32 %v7262_v17, 16  ;;  %v376_v54 = vshll.u32 %v7262_v17, 16  ;;  %v7395_v30 = vsel %vm680_vm1, %v735_v5, %v739_v40  ;;  %1763 = vmatprep.mubr.bf16.mxu0 %v7262_v17 }
  0x7d   :  { %9607 = vst [vmem:[#allocation5_spill] sm:$0xff] %v7313_v44  ;;  %v385_v3 = vshrl.u32 %v7313_v44, 16  ;;  %v388_v41 = vshll.u32 %v7313_v44, 16  ;;  %1909 = vmatmul.mubr.bf16.gmra.mrb[16].mxu1 %v7395_v30 }
  0x7e   :  { %v375_v61 = vrot.slane %v373_v21, 7  ;;  %v7379_v26 = vrot.slane %v376_v54, 1 }
  0x7f   :  { %v387_v25 = vrot.slane %v385_v3, 7  ;;  %v7397_v32 = vrot.slane %v388_v41, 1 }
  0x80   :  { %v378_v11 = vor.u32 %v376_v54, %v375_v61  ;;  %v417_v54 = vshrl.u32 %v279_v33, 16  ;;  %v6695_v61 = vld [vmem:[%s9580_s1 + $0x1d0] sm:$0xff]  }
  0x81   :  { %5944 = vmatprep.subr.bf16.mxu1 %v6695_v61  ;;  %v6699_v61 = vld [vmem:[%s9580_s1 + $0x198] sm:$0xff]  }
  0x82   :  { %v150_v36 = vld [vmem:[%s9581_s0 + $0xa0] sm:$0xff]  ;;  %v151_v38 = vld [vmem:[%s9581_s0 + $0xa8] sm:$0xff]  ;;  %5945 = vmatpush3.bf16.msra.mxu1 %v6697_v18 }
  0x83   :  { %182 = vst [vmem:[%s9582_s4 + $0xa0] sm:$0xff] %v150_v36  ;;  %183 = vst [vmem:[%s9582_s4 + $0xa8] sm:$0xff] %v151_v38  ;;  %v7406_v36 = vsel %vm295_vm0, %v371_v6, %v378_v11 }
  0x84   :  { %1916 = vmatprep.mubr.bf16.mxu1 %v7406_v36  ;;  %1764 = vmatmul.mubr.bf16.gmra.mrb[24].mxu0 %v7406_v36 }
  0x85   :  { %1771 = vmatprep.mubr.bf16.mxu0 %v7313_v44 }
  0x8a   :  { %v208_v56 = vld [vmem:[%s9581_s0 + $0x70] sm:$0xff]  ;;  %v209_v57 = vld [vmem:[%s9581_s0 + $0x78] sm:$0xff]  ;;  %v210_v62 = vld [vmem:[%s9581_s0 + $0x80] sm:$0xff] }
  0x8b   :  { %v211_v63 = vld [vmem:[%s9581_s0 + $0x88] sm:$0xff]  ;;  %v7359_v15 = vpack.c.bf16 %v209_v57, %v208_v56  ;;  %v152_v16 = vld [vmem:[%s9581_s0 + $0xb0] sm:$0xff]  ;;  %v153_v24 = vld [vmem:[%s9581_s0 + $0xb8] sm:$0xff]  ;;  %v747_v57 = vor.u32 %v746_v13, %v361_v2  ;;  %v809_v13 = vshll.u32 %v665_v51, 16  ;;  %v759_v51 = vor.u32 %v7379_v26, %v373_v21 }
  0x8c   :  { %v7369_v23 = vpack.c.bf16 %v211_v63, %v210_v62  ;;  %184 = vst [vmem:[%s9582_s4 + $0xb0] sm:$0xff] %v152_v16  ;;  %185 = vst [vmem:[%s9582_s4 + $0xb8] sm:$0xff] %v153_v24  ;;  %v6694_v56 = vld [vmem:[%s9580_s1 + $0x170] sm:$0xff]   ;;  %v390_v62 = vor.u32 %v388_v41, %v387_v25  ;;  %v429_v63 = vshrl.u32 %v281_v43, 16  ;;  %v283_v2 = vld [vmem:[#allocation2 + $0x120] sm:$0x80] }
  0x8d   :  { %9608 = vst [vmem:[#allocation6_spill] sm:$0xff] %v7359_v15  ;;  %v9592_v38 = vshrl.u32 %v7359_v15, 16  ;;  %v400_v45 = vshll.u32 %v7359_v15, 16  ;;  %5840 = vmatprep.subr.bf16.mxu0 %v6694_v56  ;;  %v7466_v41 = vsel %vm680_vm1, %v747_v57, %v7353_v8  ;;  %v7468_v16 = vrot.slane %v417_v54, 7  ;;  %v285_v57 = vld [vmem:[#allocation2 + $0x138] sm:$0x80] }
  0x8e   :  { %v9588_v47 = vshrl.u32 %v7369_v23, 16  ;;  %v412_v4 = vshll.u32 %v7369_v23, 16  ;;  %5841 = vmatpush3.bf16.msra.mxu0 %v6696_v0  ;;  %v7483_v8 = vsel %vm295_vm0, %v7355_v9, %v390_v62  ;;  %v441_v43 = vshrl.u32 %v283_v2, 16  ;;  %v6698_v9 = vld [vmem:[%s9580_s1 + $0x1d8] sm:$0xff]   ;;  %1917 = vmatmul.mubr.bf16.gmra.mrb[20].mxu1 %v7466_v41 }
  0x8f   :  { %v399_v1 = vrot.slane %v9592_v38, 7  ;;  %v7454_v6 = vrot.slane %v400_v45, 1  ;;  %9609 = vst [vmem:[#allocation7_spill] sm:$0xff] %v7483_v8  ;;  %v7512_v56 = vrot.slane %v809_v13, 1  ;;  %1924 = vmatprep.mubr.bf16.mxu1 %v7483_v8  ;;  %5946 = vmatprep.subr.bf16.mxu1 %v6698_v9 }
  0x90   :  { %v7450_v5 = vrot.slane %v9588_v47, 7  ;;  %v7473_v25 = vrot.slane %v412_v4, 1  ;;  %v7540_v13 = vrot.slane %v441_v43, 7  ;;  %5947 = vmatpush3.bf16.msra.mxu1 %v6699_v61  ;;  %v671_v43 = vld [vmem:[#allocation2 + $0x148] sm:$0x1]  ;;  %v6702_v61 = vld [vmem:[%s9580_s1 + $0x1e0] sm:$0xff]   ;;  %1772 = vmatmul.mubr.bf16.gmra.mrb[28].mxu0 %v7483_v8 }
  0x91   :  { %v402_v0 = vor.u32 %v400_v45, %v399_v1  ;;  %v287_v45 = vld [vmem:[#allocation2 + $0x150] sm:$0x80]  ;;  %v6700_v1 = vld [vmem:[%s9580_s1 + $0x178] sm:$0xff]   ;;  %1779 = vmatprep.mubr.bf16.mxu0 %v7359_v15  ;;  %5948 = vmatprep.subr.bf16.mxu1 %v6702_v61  ;;  %v6705_v61 = vld [vmem:[%s9580_s1 + $0x1a8] sm:$0xff]  }
  0x92   :  { %5842 = vmatprep.subr.bf16.mxu0 %v6700_v1 }
  0x93   :  { %v154_v29 = vld [vmem:[%s9581_s0 + $0xc0] sm:$0xff]  ;;  %v155_v35 = vld [vmem:[%s9581_s0 + $0xc8] sm:$0xff] }
  0x94   :  { %186 = vst [vmem:[%s9582_s4 + $0xc0] sm:$0xff] %v154_v29  ;;  %v667_v29 = vld [vmem:[#allocation2 + $0x118] sm:$0x1] }
  0x9b   :  { %v212_v40 = vld [vmem:[%s9581_s0 + $0x90] sm:$0xff]  ;;  %v213_v42 = vld [vmem:[%s9581_s0 + $0x98] sm:$0xff] }
  0x9c   :  { %187 = vst [vmem:[%s9582_s4 + $0xc8] sm:$0xff] %v155_v35  ;;  %v7437_v58 = vpack.c.bf16 %v213_v42, %v212_v40  ;;  %v7487_v35 = vrot.slane %v429_v63, 7  ;;  %v821_v63 = vshll.u32 %v667_v29, 16 }
  0x9e   :  { %v9586_v24 = vshrl.u32 %v7437_v58, 16  ;;  %v7586_v1 = vrot.slane %v821_v63, 1  ;;  %v414_v63 = vor.u32 %v412_v4, %v7450_v5 }
  0xa0   :  { %v7526_v21 = vrot.slane %v9586_v24, 7  ;;  %v465_v24 = vshrl.u32 %v287_v45, 16  ;;  %v7653_v8 = vsel %vm295_vm0, %v7383_v28, %v414_v63  ;;  %v9613_v63 = vshll.u32 %v7437_v58, 16  ;;  %v7682_v28 = vld [vmem:[%s9580_s1 + $0x200] sm:$0xff]  }
  0xa1   :  { %9611 = vst [vmem:[#allocation9_spill] sm:$0xff] %v7653_v8 }
  0xa2   :  { %v7642_v5 = vrot.slane %v465_v24, 7  ;;  %v6707_v24 = vld [vmem:[%s9580_s1 + $0x1b0] sm:$0xff]  }
  0xa3   :  { %v214_v48 = vld [vmem:[%s9581_s0 + $0xa0] sm:$0xff]  ;;  %v215_v49 = vld [vmem:[%s9581_s0 + $0xa8] sm:$0xff]  ;;  %v156_v19 = vld [vmem:[%s9581_s0 + $0xd0] sm:$0xff] }
  0xa4   :  { %v7456_v11 = vpack.c.bf16 %v215_v49, %v214_v48  ;;  %v157_v33 = vld [vmem:[%s9581_s0 + $0xd8] sm:$0xff]  ;;  %v9589_v48 = vshll.u32 %v7437_v58, 16 }
  0xa5   :  { %188 = vst [vmem:[%s9582_s4 + $0xd0] sm:$0xff] %v156_v19  ;;  %v669_v19 = vld [vmem:[#allocation2 + $0x130] sm:$0x1] }
  0xa6   :  { %v9585_v54 = vshrl.u32 %v7456_v11, 16  ;;  %v9587_v26 = vshll.u32 %v7456_v11, 16  ;;  %v7531_v62 = vrot.slane %v9589_v48, 1 }
  0xa8   :  { %v7550_v9 = vrot.slane %v9585_v54, 7  ;;  %v6703_v54 = vld [vmem:[%s9580_s1 + $0x1a0] sm:$0xff]  }
  0xa9   :  { %5949 = vmatpush3.bf16.msra.mxu1 %v6703_v54 }
  0xac   :  { %v216_v40 = vld [vmem:[%s9581_s0 + $0xb0] sm:$0xff]  ;;  %v217_v42 = vld [vmem:[%s9581_s0 + $0xb8] sm:$0xff] }
  0xad   :  { %189 = vst [vmem:[%s9582_s4 + $0xd8] sm:$0xff] %v157_v33  ;;  %v7538_v2 = vpack.c.bf16 %v217_v42, %v216_v40  ;;  %v453_v33 = vshrl.u32 %v285_v57, 16  ;;  %v7557_v40 = vsel %vm680_vm1, %v759_v51, %v7365_v20  ;;  %v833_v42 = vshll.u32 %v669_v19, 16 }
  0xae   :  { %v7564_v57 = vsel %vm295_vm0, %v7367_v22, %v402_v0  ;;  %v7573_v20 = vrot.slane %v9587_v26, 1  ;;  %1925 = vmatmul.mubr.bf16.gmra.mrb[24].mxu1 %v7557_v40  ;;  %v771_v0 = vor.u32 %v7397_v32, %v385_v3  ;;  %v845_v26 = vshll.u32 %v671_v43, 16  ;;  %v6704_v3 = vld [vmem:[%s9580_s1 + $0x1e8] sm:$0xff]  }
  0xaf   :  { %9610 = vst [vmem:[#allocation8_spill] sm:$0xff] %v7564_v57  ;;  %v9591_v19 = vshll.u32 %v7538_v2, 16  ;;  %1932 = vmatprep.mubr.bf16.mxu1 %v7564_v57  ;;  %v7608_v48 = vrot.slane %v453_v33, 7  ;;  %v7610_v45 = vrot.slane %v833_v42, 1  ;;  %v673_v33 = vld [vmem:[#allocation2 + $0x160] sm:$0x1]  ;;  %5950 = vmatprep.subr.bf16.mxu1 %v6704_v3 }
  0xb0   :  { %1780 = vmatmul.mubr.bf16.gmra.mrb[32].mxu0 %v7564_v57  ;;  %5951 = vmatpush3.bf16.msra.mxu1 %v6705_v61 }
  0xb1   :  { %v7628_v42 = vrot.slane %v9591_v19, 1  ;;  %v7644_v19 = vrot.slane %v845_v26, 1  ;;  %v9612_v26 = vshrl.u32 %v7359_v15, 16  ;;  %1787 = vmatprep.mubr.bf16.mxu0 %v7369_v23 }
  0xb4   :  { %v158_v49 = vld [vmem:[%s9581_s0 + $0xe0] sm:$0xff]  ;;  %v159_v59 = vld [vmem:[%s9581_s0 + $0xe8] sm:$0xff] }
  0xb5   :  { %190 = vst [vmem:[%s9582_s4 + $0xe0] sm:$0xff] %v158_v49  ;;  %191 = vst [vmem:[%s9582_s4 + $0xe8] sm:$0xff] %v159_v59  ;;  %v6701_v49 = vld [vmem:[%s9580_s1 + $0x138] sm:$0xff]   ;;  %v9590_v59 = vshrl.u32 %v7538_v2, 16 }
  0xb6   :  { %5843 = vmatpush3.bf16.msra.mxu0 %v6701_v49 }
  0xb7   :  { %v7606_v47 = vrot.slane %v9590_v59, 7  ;;  %6548 = vmatprep.subr.bf16.mxu0 %v7682_v28 }
  0xb8   :  { %1788 = vmatmul.mubr.bf16.gmra.mrb[36].mxu0 %v7653_v8 }
  0xb9   :  { %1795 = vmatprep.mubr.bf16.mxu0 %v7437_v58 }
  0xbc   :  { %v218_v18 = vld [vmem:[%s9581_s0 + $0xc0] sm:$0xff]  ;;  %v219_v29 = vld [vmem:[%s9581_s0 + $0xc8] sm:$0xff]  ;;  %v220_v22 = vld [vmem:[%s9581_s0 + $0xd0] sm:$0xff] }
  0xbd   :  { %v7575_v51 = vpack.c.bf16 %v219_v29, %v218_v18  ;;  %v221_v18 = vld [vmem:[%s9581_s0 + $0xd8] sm:$0xff]  ;;  %v289_v29 = vld [vmem:[#allocation2 + $0x168] sm:$0x80]  ;;  %v160_v32 = vld [vmem:[%s9581_s0 + $0xf0] sm:$0xff] }
  0xbe   :  { %v222_v43 = vld [vmem:[%s9581_s0 + $0xe0] sm:$0xff]  ;;  %v223_v49 = vld [vmem:[%s9581_s0 + $0xe8] sm:$0xff]  ;;  %v161_v4 = vld [vmem:[%s9581_s0 + $0xf8] sm:$0xff]  ;;  %v7640_v59 = vpack.c.bf16 %v221_v18, %v220_v22  ;;  %v477_v38 = vshrl.u32 %v289_v29, 16  ;;  %v857_v22 = vshll.u32 %v673_v33, 16 }
  0xbf   :  { %192 = vst [vmem:[%s9582_s4 + $0xf0] sm:$0xff] %v160_v32  ;;  %193 = vst [vmem:[%s9582_s4 + $0xf8] sm:$0xff] %v161_v4  ;;  %v7638_v32 = vsel %vm680_vm1, %v771_v0, %v7381_v27  ;;  %v7646_v54 = vpack.c.bf16 %v223_v49, %v222_v43  ;;  %v6706_v4 = vld [vmem:[%s9580_s1 + $0x1f0] sm:$0xff]   ;;  %v291_v27 = vld [vmem:[#allocation2 + $0x180] sm:$0x80]  ;;  %v783_v0 = vor.u32 %v7454_v6, %v9612_v26  ;;  %v9614_v6 = vshrl.u32 %v7575_v51, 16 }
  0xc0   :  { %1933 = vmatmul.mubr.bf16.gmra.mrb[28].mxu1 %v7638_v32  ;;  %v6708_v18 = vld [vmem:[%s9580_s1 + $0x1f8] sm:$0xff]   ;;  %v521_v3 = vshrl.u32 %v291_v27, 16  ;;  %5952 = vmatprep.subr.bf16.mxu1 %v6706_v4  ;;  %v426_v43 = vor.u32 %v9613_v63, %v7526_v21  ;;  %v9615_v33 = vshll.u32 %v7575_v51, 16  ;;  %v7677_v26 = vrot.slane %v477_v38, 7 }
  0xc1   :  { %1940 = vmatprep.mubr.bf16.mxu1 %v7653_v8  ;;  %v9599_v29 = vshrl.u32 %v7646_v54, 16  ;;  %v459_v49 = vrot.slane %v9614_v6, 7  ;;  %v472_v27 = vshll.u32 %v7640_v59, 16  ;;  %5953 = vmatpush3.bf16.msra.mxu1 %v6707_v24  ;;  %v6709_v21 = vld [vmem:[%s9580_s1 + $0x1b8] sm:$0xff]   ;;  %v7690_v4 = vsel %vm680_vm1, %v783_v0, %v7409_v39 }
  0xc2   :  { %v842_v61 = vrot.slane %v9615_v33, 1  ;;  %v9616_v63 = vshrl.u32 %v7640_v59, 16  ;;  %v7694_v6 = vrot.slane %v857_v22, 1  ;;  %5954 = vmatprep.subr.bf16.mxu1 %v6708_v18  ;;  %v484_v24 = vshll.u32 %v7646_v54, 16 }
  0xc3   :  { %v483_v33 = vrot.slane %v9599_v29, 7  ;;  %v854_v57 = vrot.slane %v472_v27, 1  ;;  %v523_v15 = vrot.slane %v521_v3, 7  ;;  %v7702_v44 = vsel %vm295_vm0, %v7468_v16, %v426_v43 }
  0xc4   :  { %v471_v38 = vrot.slane %v9616_v63, 7  ;;  %v866_v0 = vrot.slane %v484_v24, 1  ;;  %v9617_v16 = vshrl.u32 %v7369_v23, 16  ;;  %v9618_v3 = vshll.u32 %v7456_v11, 16  ;;  %v675_v63 = vld [vmem:[#allocation2 + $0x178] sm:$0x1]  ;;  %1796 = vmatmul.mubr.bf16.gmra.mrb[40].mxu0 %v7702_v44 }
  0xc5   :  { %5955 = vmatpush3.bf16.msra.mxu1 %v6709_v21  ;;  %1803 = vmatprep.mubr.bf16.mxu0 %v7456_v11 }
  0xc6   :  { %v224_v39 = vld [vmem:[%s9581_s0 + $0xf0] sm:$0xff]  ;;  %v225_v22 = vld [vmem:[%s9581_s0 + $0xf8] sm:$0xff]  ;;  %v795_v18 = vor.u32 %v7473_v25, %v9617_v16  ;;  %v438_v43 = vor.u32 %v9618_v3, %v7550_v9  ;;  %v869_v9 = vshll.u32 %v675_v63, 16  ;;  %v9622_v3 = vshll.u32 %v7575_v51, 16 }
  0xc7   :  { %v7720_v29 = vpack.c.bf16 %v225_v22, %v224_v39  ;;  %v9619_v39 = vshrl.u32 %v7437_v58, 16  ;;  %v9620_v22 = vshll.u32 %v7538_v2, 16  ;;  %v474_v63 = vor.u32 %v472_v27, %v471_v38 }
  0xc8   :  { %1941 = vmatmul.mubr.bf16.gmra.mrb[32].mxu1 %v7690_v4  ;;  %v7724_v21 = vsel %vm680_vm1, %v795_v18, %v7485_v34  ;;  %v7728_v8 = vsel %vm295_vm0, %v7487_v35, %v438_v43 }
  0xc9   :  { %1948 = vmatprep.mubr.bf16.mxu1 %v7702_v44  ;;  %v525_v25 = vshrl.u32 %v7720_v29, 16  ;;  %v807_v34 = vor.u32 %v7531_v62, %v9619_v39  ;;  %v450_v35 = vor.u32 %v9620_v22, %v7606_v47  ;;  %v9621_v62 = vshrl.u32 %v7456_v11, 16 }
  0xca   :  { %v9625_v22 = vshrl.u32 %v7640_v59, 16 }
  0xcb   :  { %v7743_v16 = vsel %vm680_vm1, %v807_v34, %v7512_v56  ;;  %v7747_v18 = vsel %vm295_vm0, %v7540_v13, %v450_v35  ;;  %v819_v47 = vor.u32 %v7573_v20, %v9621_v62  ;;  %v462_v56 = vor.u32 %v9622_v3, %v459_v49 }
  0xcc   :  { %1804 = vmatmul.mubr.bf16.gmra.mrb[44].mxu0 %v7728_v8  ;;  %v9623_v20 = vshrl.u32 %v7538_v2, 16  ;;  %v527_v39 = vrot.slane %v525_v25, 7  ;;  %v528_v34 = vshll.u32 %v7720_v29, 16 }
  0xcd   :  { %1811 = vmatprep.mubr.bf16.mxu0 %v7538_v2  ;;  %v7760_v43 = vsel %vm680_vm1, %v819_v47, %v7586_v1  ;;  %v7764_v13 = vsel %vm295_vm0, %v7608_v48, %v462_v56  ;;  %v7779_v48 = vsel %vm295_vm0, %v7642_v5, %v474_v63 }
  0xce   :  { %v831_v49 = vor.u32 %v7628_v42, %v9623_v20  ;;  %v9624_v42 = vshrl.u32 %v7575_v51, 16  ;;  %v910_v62 = vrot.slane %v528_v34, 1 }
  0xd0   :  { %1949 = vmatmul.mubr.bf16.gmra.mrb[36].mxu1 %v7724_v21  ;;  %v7775_v1 = vsel %vm680_vm1, %v831_v49, %v7610_v45  ;;  %v843_v27 = vor.u32 %v842_v61, %v9624_v42  ;;  %v486_v45 = vor.u32 %v484_v24, %v483_v33  ;;  %v855_v61 = vor.u32 %v854_v57, %v9625_v22 }
  0xd1   :  { %1956 = vmatprep.mubr.bf16.mxu1 %v7728_v8  ;;  %v530_v33 = vor.u32 %v528_v34, %v527_v39  ;;  %v871_v57 = vrot.slane %v869_v9, 1  ;;  %v7815_v47 = vor.u32 %v910_v62, %v525_v25 }
  0xd2   :  { %v7790_v38 = vsel %vm680_vm1, %v843_v27, %v7644_v19  ;;  %v7794_v5 = vsel %vm295_vm0, %v7677_v26, %v486_v45  ;;  %v7804_v19 = vsel %vm680_vm1, %v855_v61, %v7694_v6  ;;  %v9626_v26 = vshrl.u32 %v7646_v54, 16  ;;  %v677_v45 = vld [vmem:[#allocation2 + $0x190] sm:$0x1] }
  0xd3   :  { %v7807_v24 = vsel %vm295_vm0, %v523_v15, %v530_v33  ;;  %v6711_v15 = vld [vmem:[%s9580_s1 + $0x208] sm:$0xff]  }
  0xd4   :  { %1812 = vmatmul.mubr.bf16.gmra.mrb[48].mxu0 %v7747_v18  ;;  %v867_v35 = vor.u32 %v866_v0, %v9626_v26  ;;  %v6713_v0 = vld [vmem:[%s9580_s1 + $0x218] sm:$0xff]  }
  0xd5   :  { %1819 = vmatprep.mubr.bf16.mxu0 %v7575_v51 }
  0xd6   :  { %v7818_v6 = vsel %vm680_vm1, %v867_v35, %v871_v57 }
  0xd8   :  { %1957 = vmatmul.mubr.bf16.gmra.mrb[40].mxu1 %v7743_v16 }
  0xd9   :  { %1964 = vmatprep.mubr.bf16.mxu1 %v7747_v18 }
  0xdc   :  { %1820 = vmatmul.mubr.bf16.gmra.mrb[52].mxu0 %v7764_v13 }
  0xdd   :  { %1827 = vmatprep.mubr.bf16.mxu0 %v7640_v59 }
  0xe0   :  { %1965 = vmatmul.mubr.bf16.gmra.mrb[44].mxu1 %v7760_v43 }
  0xe1   :  { %1972 = vmatprep.mubr.bf16.mxu1 %v7764_v13 }
  0xe4   :  { %1828 = vmatmul.mubr.bf16.gmra.mrb[56].mxu0 %v7779_v48 }
  0xe5   :  { %1835 = vmatprep.mubr.bf16.mxu0 %v7646_v54 }
  0xe8   :  { %1973 = vmatmul.mubr.bf16.gmra.mrb[48].mxu1 %v7775_v1 }
  0xe9   :  { %1980 = vmatprep.mubr.bf16.mxu1 %v7779_v48 }
  0xec   :  { %1836 = vmatmul.mubr.bf16.gmra.mrb[60].mxu0 %v7794_v5 }
  0xed   :  { %2037 = vmatprep.mubr.bf16.mxu0 %v7195_v46  ;;  %v6712_v46 = vld [vmem:[%s9580_s1 + $0x210] sm:$0xff]  }
  0xf0   :  { %1981 = vmatmul.mubr.bf16.gmra.mrb[52].mxu1 %v7790_v38 }
  0xf1   :  { %1988 = vmatprep.mubr.bf16.mxu1 %v7794_v5 }
  0xf4   :  { %2038 = vmatmul.mubr.bf16.vlgmr.msra.gmra.mrb[64].mxu0 %v7086_v55  ;;  %v6714_v55 = vld [vmem:[%s9580_s1 + $0x220] sm:$0xff]  }
  0xf5   :  { %6549 = vmatpush3.bf16.msra.mxu0 %v7682_v28  ;;  %2045 = vmatprep.mubr.bf16.mxu0 %v7249_v10  ;;  %v6715_v28 = vld [vmem:[%s9580_s1 + $0x228] sm:$0xff]  }
  0xf6   :  { %6550 = vmatprep.subr.bf16.mxu0 %v6711_v15 }
  0xf8   :  { %1989 = vmatmul.mubr.bf16.gmra.mrb[56].mxu1 %v7804_v19 }
  0xf9   :  { %1996 = vmatprep.mubr.bf16.mxu1 %v7807_v24  ;;  %6551 = vmatpush3.bf16.msra.mxu0 %v6711_v15  ;;  %v913_v15 = vshll.u32 %v677_v45, 16 }
  0xfa   :  { %6552 = vmatprep.subr.bf16.mxu0 %v6712_v46 }
  0xfc   :  { %2046 = vmatmul.mubr.bf16.gmra.mrb[68].mxu0 %v7118_v7 }
  0xfd   :  { %2053 = vmatprep.mubr.bf16.mxu0 %v7320_v52  ;;  %6553 = vmatpush3.bf16.msra.mxu0 %v6712_v46 }
  0xfe   :  { %6554 = vmatprep.subr.bf16.mxu0 %v6713_v0 }
 0x100   :  { %1997 = vmatmul.mubr.bf16.gmra.mrb[60].mxu1 %v7818_v6 }
 0x101   :  { %2198 = vmatprep.mubr.bf16.mxu1 %v7118_v7  ;;  %6555 = vmatpush3.bf16.msra.mxu0 %v6713_v0  ;;  %v6716_v7 = vld [vmem:[%s9580_s1 + $0x230] sm:$0xff]  }
 0x102   :  { %6556 = vmatprep.subr.bf16.mxu0 %v6714_v55 }
 0x104   :  { %2054 = vmatmul.mubr.bf16.gmra.mrb[72].mxu0 %v7132_v12 }
 0x105   :  { %2061 = vmatprep.mubr.bf16.mxu0 %v7395_v30  ;;  %6557 = vmatpush3.bf16.msra.mxu0 %v6714_v55 }
 0x106   :  { %6558 = vmatprep.subr.bf16.mxu0 %v6715_v28 }
 0x108   :  { %2199 = vmatmul.mubr.bf16.vlgmr.msra.gmra.mrb[64].mxu1 %v7173_v37  ;;  %v6717_v37 = vld [vmem:[%s9580_s1 + $0x238] sm:$0xff]  }
 0x109   :  { %2206 = vmatprep.mubr.bf16.mxu1 %v7132_v12  ;;  %6559 = vmatpush3.bf16.msra.mxu0 %v6715_v28  ;;  %v9627_v12 = vld [vmem:[#allocation5_spill] sm:$0xff]  ;;  %v915_v28 = vrot.slane %v913_v15, 1 }
 0x10a   :  { %6560 = vmatprep.subr.bf16.mxu0 %v6716_v7 }
 0x10c   :  { %2062 = vmatmul.mubr.bf16.gmra.mrb[76].mxu0 %v7164_v31 }
 0x10d   :  { %2069 = vmatprep.mubr.bf16.mxu0 %v7466_v41  ;;  %6561 = vmatpush3.bf16.msra.mxu0 %v6716_v7 }
 0x10e   :  { %6562 = vmatprep.subr.bf16.mxu0 %v6717_v37 }
 0x110   :  { %2207 = vmatmul.mubr.bf16.gmra.mrb[68].mxu1 %v7201_v50  ;;  %v9629_v50 = vld [vmem:[#allocation6_spill] sm:$0xff] }
 0x111   :  { %2214 = vmatprep.mubr.bf16.mxu1 %v7164_v31  ;;  %6563 = vmatpush3.bf16.msra.mxu0 %v6717_v37  ;;  %v9628_v31 = vld [vmem:[#allocation7_spill] sm:$0xff] }
 0x114   :  { %2070 = vmatmul.mubr.bf16.gmra.mrb[80].mxu0 %v7206_v53 }
 0x115   :  { %2077 = vmatprep.mubr.bf16.mxu0 %v7557_v40 }
 0x118   :  { %2215 = vmatmul.mubr.bf16.gmra.mrb[72].mxu1 %v7257_v14  ;;  %v9631_v14 = vld [vmem:[#allocation9_spill] sm:$0xff] }
 0x119   :  { %2222 = vmatprep.mubr.bf16.mxu1 %v7206_v53  ;;  %v9630_v53 = vld [vmem:[#allocation8_spill] sm:$0xff] }
 0x11c   :  { %2078 = vmatmul.mubr.bf16.gmra.mrb[84].mxu0 %v7262_v17 }
 0x11d   :  { %2085 = vmatprep.mubr.bf16.mxu0 %v7638_v32 }
 0x120   :  { %2223 = vmatmul.mubr.bf16.gmra.mrb[76].mxu1 %v7330_v60 }
 0x121   :  { %2230 = vmatprep.mubr.bf16.mxu1 %v7262_v17  ;;  %v5620_v17 = vpop.f32.mrb[0].mxu0 }
 0x122   :  { %v5621_v60 = vpop.f32.mrb[1].mxu0 }
 0x124   :  { %2086 = vmatmul.mubr.bf16.gmra.mrb[88].mxu0 %v9627_v12 }
 0x125   :  { %2093 = vmatprep.mubr.bf16.mxu0 %v7690_v4 }
 0x128   :  { %2231 = vmatmul.mubr.bf16.gmra.mrb[80].mxu1 %v7406_v36  ;;  %v5623_v36 = vpop.f32.mrb[2].mxu0 }
 0x129   :  { %2238 = vmatprep.mubr.bf16.mxu1 %v9627_v12  ;;  %v5624_v25 = vpop.f32.mrb[3].mxu0 }
 0x12c   :  { %2094 = vmatmul.mubr.bf16.gmra.mrb[92].mxu0 %v9629_v50 }
 0x12d   :  { %2101 = vmatprep.mubr.bf16.mxu0 %v7724_v21 }
 0x130   :  { %2239 = vmatmul.mubr.bf16.gmra.mrb[84].mxu1 %v9628_v31 }
 0x131   :  { %2246 = vmatprep.mubr.bf16.mxu1 %v9629_v50 }
 0x134   :  { %2102 = vmatmul.mubr.bf16.gmra.mrb[96].mxu0 %v7369_v23 }
 0x135   :  { %2109 = vmatprep.mubr.bf16.mxu0 %v7743_v16 }
 0x138   :  { %2247 = vmatmul.mubr.bf16.gmra.mrb[88].mxu1 %v9630_v53 }
 0x139   :  { %2254 = vmatprep.mubr.bf16.mxu1 %v7369_v23  ;;  %v5622_v23 = vadd.f32 %v5621_v60, %v5620_v17 }
 0x13c   :  { %2110 = vmatmul.mubr.bf16.gmra.mrb[100].mxu0 %v7437_v58 }
 0x13d   :  { %2117 = vmatprep.mubr.bf16.mxu0 %v7760_v43 }
 0x140   :  { %2255 = vmatmul.mubr.bf16.gmra.mrb[92].mxu1 %v9631_v14 }
 0x141   :  { %2262 = vmatprep.mubr.bf16.mxu1 %v7437_v58  ;;  %v5625_v58 = vadd.f32 %v5624_v25, %v5623_v36 }
 0x144   :  { %2118 = vmatmul.mubr.bf16.gmra.mrb[104].mxu0 %v7456_v11 }
 0x145   :  { %2125 = vmatprep.mubr.bf16.mxu0 %v7775_v1 }
 0x148   :  { %2263 = vmatmul.mubr.bf16.gmra.mrb[96].mxu1 %v7702_v44  ;;  %v5626_v44 = vpop.f32.mrb[4].mxu0 }
 0x149   :  { %2270 = vmatprep.mubr.bf16.mxu1 %v7456_v11  ;;  %v5732_v11 = vpop.f32.mrb[0].mxu1 }
 0x14a   :  { %v5733_v9 = vpop.f32.mrb[1].mxu1 }
 0x14b   :  { %v5734_v20 = vadd.f32 %v5733_v9, %v5732_v11  ;;  %v5735_v49 = vpop.f32.mrb[2].mxu1  ;;  %v293_v9 = vld [vmem:[#allocation2 + $0x198] sm:$0x80] }
 0x14c   :  { %2126 = vmatmul.mubr.bf16.gmra.mrb[108].mxu0 %v7538_v2  ;;  %v5736_v39 = vpop.f32.mrb[3].mxu1 }
 0x14d   :  { %2133 = vmatprep.mubr.bf16.mxu0 %v7790_v38  ;;  %v5737_v42 = vadd.f32 %v5736_v39, %v5735_v49  ;;  %v5738_v22 = vpop.f32.mrb[4].mxu1 }
 0x14e   :  { %v5739_v33 = vpop.f32.mrb[5].mxu1 }
 0x14f   :  { %v5740_v57 = vadd.f32 %v5739_v33, %v5738_v22  ;;  %v5741_v62 = vpop.f32.mrb[6].mxu1 }
 0x150   :  { %2271 = vmatmul.mubr.bf16.gmra.mrb[100].mxu1 %v7728_v8  ;;  %v5627_v8 = vpop.f32.mrb[5].mxu0  ;;  %v5742_v46 = vpop.f32.mrb[7].mxu1 }
 0x151   :  { %2278 = vmatprep.mubr.bf16.mxu1 %v7538_v2  ;;  %v5628_v3 = vadd.f32 %v5627_v8, %v5626_v44  ;;  %v5629_v56 = vpop.f32.mrb[6].mxu0  ;;  %v7891_v2 = vadd.f32 %v5734_v20, %v5622_v23  ;;  %v5744_v12 = vpop.f32.mrb[8].mxu1  ;;  %v7908_v23 = vsel %vm680_vm1, %v7815_v47, %v915_v28  ;;  %v7916_v44 = vld [vmem:[#allocation2 + $0x8] sm:$0xff] }
 0x152   :  { %v5630_v63 = vpop.f32.mrb[7].mxu0  ;;  %v5745_v50 = vpop.f32.mrb[9].mxu1  ;;  %v554_v11 = vshrl.u32 %v7916_v44, 16 }
 0x153   :  { %v5631_v34 = vadd.f32 %v5630_v63, %v5629_v56  ;;  %v5632_v27 = vpop.f32.mrb[8].mxu0  ;;  %v7899_v55 = vadd.f32 %v5740_v57, %v5628_v3  ;;  %v5746_v17 = vadd.f32 %v5745_v50, %v5744_v12  ;;  %v5747_v60 = vpop.f32.mrb[10].mxu1 }
 0x154   :  { %2134 = vmatmul.mubr.bf16.gmra.mrb[112].mxu0 %v7575_v51  ;;  %v5633_v61 = vpop.f32.mrb[9].mxu0 }
 0x155   :  { %2141 = vmatprep.mubr.bf16.mxu0 %v7804_v19  ;;  %v5634_v26 = vadd.f32 %v5633_v61, %v5632_v27  ;;  %v5635_v35 = vpop.f32.mrb[10].mxu0  ;;  %v557_v27 = vshll.u32 %v7916_v44, 16 }
 0x158   :  { %2279 = vmatmul.mubr.bf16.gmra.mrb[104].mxu1 %v7747_v18  ;;  %v7896_v18 = vadd.f32 %v5737_v42, %v5625_v58  ;;  %v7911_v58 = vadd.f32 %v5746_v17, %v5634_v26  ;;  %v556_v42 = vrot.slane %v554_v11, 7 }
 0x159   :  { %2286 = vmatprep.mubr.bf16.mxu1 %v7575_v51  ;;  %v5636_v51 = vpop.f32.mrb[11].mxu0 }
 0x15a   :  { %v5637_v0 = vadd.f32 %v5636_v51, %v5635_v35  ;;  %v5638_v37 = vpop.f32.mrb[12].mxu0  ;;  %v559_v35 = vor.u32 %v557_v27, %v556_v42 }
 0x15b   :  { %v5639_v31 = vpop.f32.mrb[13].mxu0 }
 0x15c   :  { %2142 = vmatmul.mubr.bf16.gmra.mrb[116].mxu0 %v7640_v59  ;;  %v5640_v53 = vadd.f32 %v5639_v31, %v5638_v37  ;;  %v5641_v14 = vpop.f32.mrb[14].mxu0 }
 0x15d   :  { %2149 = vmatprep.mubr.bf16.mxu0 %v7818_v6 }
 0x160   :  { %2287 = vmatmul.mubr.bf16.gmra.mrb[108].mxu1 %v7764_v13  ;;  %v5743_v13 = vadd.f32 %v5742_v46, %v5741_v62 }
 0x161   :  { %2294 = vmatprep.mubr.bf16.mxu1 %v7640_v59  ;;  %v5642_v59 = vpop.f32.mrb[15].mxu0 }
 0x162   :  { %v7904_v7 = vadd.f32 %v5743_v13, %v5631_v34  ;;  %v5643_v36 = vadd.f32 %v5642_v59, %v5641_v14  ;;  %v5644_v47 = vpop.f32.mrb[16].mxu0  ;;  %v550_v34 = vshrl.u32 %v293_v9, 16 }
 0x163   :  { %v5645_v56 = vpop.f32.mrb[17].mxu0 }
 0x164   :  { %2150 = vmatmul.mubr.bf16.gmra.mrb[120].mxu0 %v7646_v54  ;;  %v5647_v49 = vpop.f32.mrb[18].mxu0  ;;  %v552_v26 = vrot.slane %v550_v34, 7 }
 0x165   :  { %2157 = vmatprep.mubr.bf16.mxu0 %v7908_v23 }
 0x168   :  { %2295 = vmatmul.mubr.bf16.gmra.mrb[112].mxu1 %v7779_v48  ;;  %v5748_v48 = vpop.f32.mrb[11].mxu1 }
 0x169   :  { %2302 = vmatprep.mubr.bf16.mxu1 %v7646_v54  ;;  %v5749_v25 = vadd.f32 %v5748_v48, %v5747_v60  ;;  %v5750_v3 = vpop.f32.mrb[12].mxu1  ;;  %v5646_v54 = vadd.f32 %v5645_v56, %v5644_v47 }
 0x16a   :  { %v5751_v20 = vpop.f32.mrb[13].mxu1 }
 0x16b   :  { %v7919_v8 = vadd.f32 %v5749_v25, %v5637_v0  ;;  %v5752_v63 = vadd.f32 %v5751_v20, %v5750_v3  ;;  %v5753_v39 = vpop.f32.mrb[14].mxu1 }
 0x16c   :  { %v5754_v45 = vpop.f32.mrb[15].mxu1  ;;  %2158 = vmatmul.mubr.bf16.gmra.mrb[124].mxu0 %v7720_v29 }
 0x16d   :  { %v5755_v61 = vadd.f32 %v5754_v45, %v5753_v39  ;;  %v7925_v33 = vadd.f32 %v5752_v63, %v5640_v53  ;;  %6564 = vmatprep.mubr.bf16.mxu0 %v7249_v10  ;;  %v5756_v51 = vpop.f32.mrb[16].mxu1 }
 0x16e   :  { %v5757_v46 = vpop.f32.mrb[17].mxu1 }
 0x16f   :  { %v7932_v57 = vadd.f32 %v5755_v61, %v5643_v36  ;;  %v5758_v13 = vadd.f32 %v5757_v46, %v5756_v51  ;;  %v5759_v28 = vpop.f32.mrb[18].mxu1 }
 0x170   :  { %2303 = vmatmul.mubr.bf16.gmra.mrb[116].mxu1 %v7794_v5  ;;  %v5648_v5 = vpop.f32.mrb[19].mxu0  ;;  %v5760_v10 = vpop.f32.mrb[19].mxu1 }
 0x171   :  { %2310 = vmatprep.mubr.bf16.mxu1 %v7720_v29  ;;  %v5649_v22 = vadd.f32 %v5648_v5, %v5647_v49  ;;  %v5650_v62 = vpop.f32.mrb[20].mxu0  ;;  %v5761_v31 = vadd.f32 %v5760_v10, %v5759_v28  ;;  %v7936_v50 = vadd.f32 %v5758_v13, %v5646_v54  ;;  %v5762_v17 = vpop.f32.mrb[20].mxu1 }
 0x172   :  { %v5651_v15 = vpop.f32.mrb[21].mxu0  ;;  %v5763_v59 = vpop.f32.mrb[21].mxu1 }
 0x173   :  { %v5652_v0 = vadd.f32 %v5651_v15, %v5650_v62  ;;  %v5653_v29 = vpop.f32.mrb[22].mxu0  ;;  %v7939_v53 = vadd.f32 %v5761_v31, %v5649_v22  ;;  %v5764_v25 = vadd.f32 %v5763_v59, %v5762_v17  ;;  %v5765_v47 = vpop.f32.mrb[22].mxu1 }
 0x174   :  { %v5654_v37 = vpop.f32.mrb[23].mxu0  ;;  %6565 = vmatmul.mubr.bf16.vlgmr.msra.gmra.mrb[128].mxu0 %v7320_v52  ;;  %v5766_v3 = vpop.f32.mrb[23].mxu1 }
 0x175   :  { %v5655_v12 = vadd.f32 %v5654_v37, %v5653_v29  ;;  %6568 = vmatprep.mubr.bf16.mxu0 %v7395_v30  ;;  %v5656_v14 = vpop.f32.mrb[24].mxu0  ;;  %v5767_v56 = vadd.f32 %v5766_v3, %v5765_v47  ;;  %v7943_v20 = vadd.f32 %v5764_v25, %v5652_v0 }
 0x176   :  { %v5657_v60 = vpop.f32.mrb[25].mxu0 }
 0x177   :  { %v5658_v48 = vadd.f32 %v5657_v60, %v5656_v14  ;;  %v5659_v36 = vpop.f32.mrb[26].mxu0  ;;  %v7946_v30 = vadd.f32 %v5767_v56, %v5655_v12 }
 0x178   :  { %2311 = vmatmul.mubr.bf16.gmra.mrb[120].mxu1 %v7807_v24  ;;  %v560_v24 = vsel %vm295_vm0, %v552_v26, %v559_v35  ;;  %v5660_v9 = vpop.f32.mrb[27].mxu0 }
 0x179   :  { %2318 = vmatprep.mubr.bf16.mxu1 %v7916_v44  ;;  %v5661_v52 = vadd.f32 %v5660_v9, %v5659_v36  ;;  %v5662_v54 = vpop.f32.mrb[28].mxu0 }
 0x17a   :  { %v5663_v63 = vpop.f32.mrb[29].mxu0 }
 0x17b   :  { %v5664_v5 = vadd.f32 %v5663_v63, %v5662_v54  ;;  %v5665_v34 = vpop.f32.mrb[30].mxu0 }
 0x17c   :  { %6569 = vmatmul.mubr.bf16.gmra.mrb[132].mxu0 %v7466_v41  ;;  %v5666_v22 = vpop.f32.mrb[31].mxu0 }
 0x17d   :  { %6572 = vmatprep.mubr.bf16.mxu0 %v7557_v40  ;;  %v5667_v26 = vadd.f32 %v5666_v22, %v5665_v34 }
 0x180   :  { %2319 = vmatmul.mubr.bf16.gmra.mrb[124].mxu1 %v560_v24 }
 0x181   :  { %4239 = vmatprep.mubr.bf16.mxu1 %v7916_v44  ;;  %v5768_v49 = vpop.f32.mrb[24].mxu1 }
 0x182   :  { %v5769_v39 = vpop.f32.mrb[25].mxu1 }
 0x183   :  { %v5770_v42 = vadd.f32 %v5769_v39, %v5768_v49  ;;  %v5771_v45 = vpop.f32.mrb[26].mxu1  ;;  %v5668_v62 = vpop.f32.mrb[32].mxu0 }
 0x184   :  { %v5772_v61 = vpop.f32.mrb[27].mxu1  ;;  %6573 = vmatmul.mubr.bf16.gmra.mrb[136].mxu0 %v7638_v32  ;;  %v5669_v15 = vpop.f32.mrb[33].mxu0 }
 0x185   :  { %v5773_v35 = vadd.f32 %v5772_v61, %v5771_v45  ;;  %v7949_v41 = vadd.f32 %v5770_v42, %v5658_v48  ;;  %6576 = vmatprep.mubr.bf16.mxu0 %v7690_v4  ;;  %v5670_v0 = vadd.f32 %v5669_v15, %v5668_v62  ;;  %v5671_v29 = vpop.f32.mrb[34].mxu0 }
 0x186   :  { %v5672_v24 = vpop.f32.mrb[35].mxu0 }
 0x187   :  { %v7952_v40 = vadd.f32 %v5773_v35, %v5661_v52  ;;  %v5673_v10 = vadd.f32 %v5672_v24, %v5671_v29 }
 0x18b   :  { %v5674_v31 = vpop.f32.mrb[36].mxu0 }
 0x18c   :  { %6577 = vmatmul.mubr.bf16.gmra.mrb[140].mxu0 %v7724_v21  ;;  %v5675_v17 = vpop.f32.mrb[37].mxu0 }
 0x18d   :  { %6580 = vmatprep.mubr.bf16.mxu0 %v7743_v16  ;;  %v5676_v59 = vadd.f32 %v5675_v17, %v5674_v31  ;;  %v5677_v48 = vpop.f32.mrb[38].mxu0 }
 0x18e   :  { %v5678_v47 = vpop.f32.mrb[39].mxu0 }
 0x18f   :  { %v5679_v3 = vadd.f32 %v5678_v47, %v5677_v48 }
 0x193   :  { %v5774_v51 = vpop.f32.mrb[28].mxu1 }
 0x194   :  { %v5775_v46 = vpop.f32.mrb[29].mxu1  ;;  %6581 = vmatmul.mubr.bf16.gmra.mrb[144].mxu0 %v7760_v43 }
 0x195   :  { %v5776_v13 = vadd.f32 %v5775_v46, %v5774_v51  ;;  %v5777_v28 = vpop.f32.mrb[30].mxu1  ;;  %6584 = vmatprep.mubr.bf16.mxu0 %v7775_v1  ;;  %v679_v1 = vld [vmem:[#allocation2 + $0x1a8] sm:$0x1] }
 0x196   :  { %v5778_v37 = vpop.f32.mrb[31].mxu1 }
 0x197   :  { %v5779_v12 = vadd.f32 %v5778_v37, %v5777_v28  ;;  %v7955_v32 = vadd.f32 %v5776_v13, %v5664_v5  ;;  %v5680_v56 = vpop.f32.mrb[40].mxu0  ;;  %v939_v13 = vrot.slane %v557_v27, 1  ;;  %v942_v28 = vshll.u32 %v679_v1, 16 }
 0x198   :  { %v5681_v49 = vpop.f32.mrb[41].mxu0 }
 0x199   :  { %v7958_v4 = vadd.f32 %v5779_v12, %v5667_v26  ;;  %v5682_v39 = vadd.f32 %v5681_v49, %v5680_v56  ;;  %v5683_v5 = vpop.f32.mrb[42].mxu0  ;;  %v944_v17 = vrot.slane %v942_v28, 1 }
 0x19a   :  { %v5684_v45 = vpop.f32.mrb[43].mxu0 }
 0x19b   :  { %v5780_v14 = vpop.f32.mrb[32].mxu1  ;;  %v5685_v61 = vadd.f32 %v5684_v45, %v5683_v5 }
 0x19c   :  { %v5781_v60 = vpop.f32.mrb[33].mxu1  ;;  %6585 = vmatmul.mubr.bf16.gmra.mrb[148].mxu0 %v7790_v38 }
 0x19d   :  { %v5782_v36 = vadd.f32 %v5781_v60, %v5780_v14  ;;  %v5783_v25 = vpop.f32.mrb[34].mxu1  ;;  %6588 = vmatprep.mubr.bf16.mxu0 %v7804_v19  ;;  %v940_v14 = vor.u32 %v939_v13, %v554_v11 }
 0x19e   :  { %v5784_v9 = vpop.f32.mrb[35].mxu1 }
 0x19f   :  { %v7960_v52 = vadd.f32 %v5782_v36, %v5670_v0  ;;  %v5785_v21 = vadd.f32 %v5784_v9, %v5783_v25  ;;  %v5686_v62 = vpop.f32.mrb[44].mxu0  ;;  %v945_v9 = vsel %vm680_vm1, %v940_v14, %v944_v17 }
 0x1a0   :  { %v5687_v15 = vpop.f32.mrb[45].mxu0 }
 0x1a1   :  { %v7964_v16 = vadd.f32 %v5785_v21, %v5673_v10  ;;  %v5688_v0 = vadd.f32 %v5687_v15, %v5686_v62  ;;  %v5689_v29 = vpop.f32.mrb[46].mxu0 }
 0x1a2   :  { %v5690_v10 = vpop.f32.mrb[47].mxu0 }
 0x1a3   :  { %v5786_v54 = vpop.f32.mrb[36].mxu1  ;;  %v5691_v38 = vadd.f32 %v5690_v10, %v5689_v29 }
 0x1a4   :  { %v5787_v63 = vpop.f32.mrb[37].mxu1  ;;  %6589 = vmatmul.mubr.bf16.gmra.mrb[152].mxu0 %v7818_v6 }
 0x1a5   :  { %v5788_v34 = vadd.f32 %v5787_v63, %v5786_v54  ;;  %v5789_v42 = vpop.f32.mrb[38].mxu1  ;;  %6592 = vmatprep.mubr.bf16.mxu0 %v7908_v23 }
 0x1a6   :  { %v5790_v22 = vpop.f32.mrb[39].mxu1 }
 0x1a7   :  { %v7966_v26 = vadd.f32 %v5788_v34, %v5676_v59  ;;  %v5791_v35 = vadd.f32 %v5790_v22, %v5789_v42  ;;  %v5692_v27 = vpop.f32.mrb[48].mxu0 }
 0x1a8   :  { %v5693_v48 = vpop.f32.mrb[49].mxu0 }
 0x1a9   :  { %v7970_v43 = vadd.f32 %v5791_v35, %v5679_v3  ;;  %v5694_v25 = vadd.f32 %v5693_v48, %v5692_v27  ;;  %v5695_v47 = vpop.f32.mrb[50].mxu0 }
 0x1aa   :  { %v5696_v56 = vpop.f32.mrb[51].mxu0 }
 0x1ab   :  { %v5792_v51 = vpop.f32.mrb[40].mxu1  ;;  %v5697_v54 = vadd.f32 %v5696_v56, %v5695_v47 }
 0x1ac   :  { %v5793_v46 = vpop.f32.mrb[41].mxu1  ;;  %6593 = vmatmul.mubr.bf16.gmra.mrb[156].mxu0 %v945_v9 }
 0x1ad   :  { %v5794_v24 = vadd.f32 %v5793_v46, %v5792_v51  ;;  %v5795_v37 = vpop.f32.mrb[42].mxu1 }
 0x1ae   :  { %v5796_v12 = vpop.f32.mrb[43].mxu1 }
 0x1af   :  { %v7974_v31 = vadd.f32 %v5794_v24, %v5682_v39  ;;  %v5797_v19 = vadd.f32 %v5796_v12, %v5795_v37  ;;  %v5698_v49 = vpop.f32.mrb[52].mxu0 }
 0x1b0   :  { %v5699_v39 = vpop.f32.mrb[53].mxu0 }
 0x1b1   :  { %v7980_v60 = vadd.f32 %v5797_v19, %v5685_v61  ;;  %v5700_v34 = vadd.f32 %v5699_v39, %v5698_v49  ;;  %v5701_v42 = vpop.f32.mrb[54].mxu0 }
 0x1b2   :  { %v5702_v61 = vpop.f32.mrb[55].mxu0 }
 0x1b3   :  { %v5798_v59 = vpop.f32.mrb[44].mxu1  ;;  %v5703_v1 = vadd.f32 %v5702_v61, %v5701_v42 }
 0x1b4   :  { %v5799_v36 = vpop.f32.mrb[45].mxu1 }
 0x1b5   :  { %v5800_v3 = vadd.f32 %v5799_v36, %v5798_v59  ;;  %v5801_v21 = vpop.f32.mrb[46].mxu1 }
 0x1b6   :  { %v5802_v6 = vpop.f32.mrb[47].mxu1 }
 0x1b7   :  { %v7983_v23 = vadd.f32 %v5800_v3, %v5688_v0  ;;  %v5803_v44 = vadd.f32 %v5802_v6, %v5801_v21  ;;  %v5704_v46 = vpop.f32.mrb[56].mxu0 }
 0x1b8   :  { %v5705_v29 = vpop.f32.mrb[57].mxu0 }
 0x1b9   :  { %v7985_v11 = vadd.f32 %v5803_v44, %v5691_v38  ;;  %v5706_v28 = vadd.f32 %v5705_v29, %v5704_v46  ;;  %v5707_v24 = vpop.f32.mrb[58].mxu0 }
 0x1ba   :  { %v5708_v12 = vpop.f32.mrb[59].mxu0 }
 0x1bb   :  { %v5804_v63 = vpop.f32.mrb[48].mxu1  ;;  %v5709_v19 = vadd.f32 %v5708_v12, %v5707_v24 }
 0x1bc   :  { %v5805_v5 = vpop.f32.mrb[49].mxu1 }
 0x1bd   :  { %v5806_v45 = vadd.f32 %v5805_v5, %v5804_v63  ;;  %v5807_v22 = vpop.f32.mrb[50].mxu1 }
 0x1be   :  { %v5808_v35 = vpop.f32.mrb[51].mxu1 }
 0x1bf   :  { %v7987_v62 = vadd.f32 %v5806_v45, %v5694_v25  ;;  %v5809_v51 = vadd.f32 %v5808_v35, %v5807_v22  ;;  %v5710_v59 = vpop.f32.mrb[60].mxu0 }
 0x1c0   :  { %v5711_v36 = vpop.f32.mrb[61].mxu0 }
 0x1c1   :  { %v7989_v15 = vadd.f32 %v5809_v51, %v5697_v54  ;;  %v5712_v47 = vadd.f32 %v5711_v36, %v5710_v59  ;;  %v5713_v9 = vpop.f32.mrb[62].mxu0 }
 0x1c2   :  { %v5714_v56 = vpop.f32.mrb[63].mxu0 }
 0x1c3   :  { %v5810_v0 = vpop.f32.mrb[52].mxu1  ;;  %v5715_v54 = vadd.f32 %v5714_v56, %v5713_v9 }
 0x1c4   :  { %v5811_v13 = vpop.f32.mrb[53].mxu1 }
 0x1c5   :  { %v5812_v37 = vadd.f32 %v5811_v13, %v5810_v0  ;;  %v5813_v10 = vpop.f32.mrb[54].mxu1 }
 0x1c6   :  { %v5814_v38 = vpop.f32.mrb[55].mxu1 }
 0x1c7   :  { %v7991_v14 = vadd.f32 %v5812_v37, %v5700_v34  ;;  %v5815_v17 = vadd.f32 %v5814_v38, %v5813_v10  ;;  %v5844_v39 = vpop.f32.mrb[64].mxu0 }
 0x1c8   :  { %v5845_v34 = vpop.f32.mrb[65].mxu0 }
 0x1c9   :  { %v7993_v27 = vadd.f32 %v5815_v17, %v5703_v1  ;;  %v5846_v45 = vadd.f32 %v5845_v34, %v5844_v39  ;;  %v5847_v22 = vpop.f32.mrb[66].mxu0 }
 0x1ca   :  { %v5848_v1 = vpop.f32.mrb[67].mxu0 }
 0x1cb   :  { %v5816_v48 = vpop.f32.mrb[56].mxu1  ;;  %v2040_v46 = vadd.f32 %v5846_v45, %v7891_v2  ;;  %v5849_v0 = vadd.f32 %v5848_v1, %v5847_v22 }
 0x1cc   :  { %v5817_v25 = vpop.f32.mrb[57].mxu1 }
 0x1cd   :  { %v5818_v3 = vadd.f32 %v5817_v25, %v5816_v48  ;;  %v5819_v21 = vpop.f32.mrb[58].mxu1 }
 0x1ce   :  { %v5820_v6 = vpop.f32.mrb[59].mxu1 }
 0x1cf   :  { %v7995_v44 = vadd.f32 %v5818_v3, %v5706_v28  ;;  %v5821_v49 = vadd.f32 %v5820_v6, %v5819_v21  ;;  %v2043_v28 = vadd.f32 %v5849_v0, %v7896_v18  ;;  %v5850_v37 = vpop.f32.mrb[68].mxu0 }
 0x1d0   :  { %v5851_v12 = vpop.f32.mrb[69].mxu0 }
 0x1d1   :  { %v7997_v63 = vadd.f32 %v5821_v49, %v5709_v19  ;;  %v5852_v19 = vadd.f32 %v5851_v12, %v5850_v37  ;;  %v5853_v17 = vpop.f32.mrb[70].mxu0 }
 0x1d2   :  { %v5854_v36 = vpop.f32.mrb[71].mxu0 }
 0x1d3   :  { %v5822_v5 = vpop.f32.mrb[60].mxu1  ;;  %v2048_v2 = vadd.f32 %v5852_v19, %v7899_v55  ;;  %v5855_v9 = vadd.f32 %v5854_v36, %v5853_v17 }
 0x1d4   :  { %v5823_v42 = vpop.f32.mrb[61].mxu1 }
 0x1d5   :  { %v5824_v61 = vadd.f32 %v5823_v42, %v5822_v5  ;;  %v5825_v35 = vpop.f32.mrb[62].mxu1  ;;  %v2051_v18 = vadd.f32 %v5855_v9, %v7904_v7 }
 0x1d6   :  { %v5826_v51 = vpop.f32.mrb[63].mxu1 }
 0x1d7   :  { %v8000_v29 = vadd.f32 %v5824_v61, %v5712_v47  ;;  %v5827_v13 = vadd.f32 %v5826_v51, %v5825_v35  ;;  %v5856_v56 = vpop.f32.mrb[72].mxu0 }
 0x1d9   :  { %v8003_v24 = vadd.f32 %v5827_v13, %v5715_v54  ;;  %v5857_v54 = vpop.f32.mrb[73].mxu0 }
 0x1da   :  { %v5858_v39 = vadd.f32 %v5857_v54, %v5856_v56  ;;  %v5859_v5 = vpop.f32.mrb[74].mxu0 }
 0x1db   :  { %v5956_v10 = vpop.f32.mrb[64].mxu1  ;;  %v5860_v45 = vpop.f32.mrb[75].mxu0 }
 0x1dc   :  { %v5957_v38 = vpop.f32.mrb[65].mxu1  ;;  %v2056_v55 = vadd.f32 %v5858_v39, %v7911_v58  ;;  %v5861_v61 = vadd.f32 %v5860_v45, %v5859_v5 }
 0x1dd   :  { %v5958_v59 = vadd.f32 %v5957_v38, %v5956_v10  ;;  %v5959_v48 = vpop.f32.mrb[66].mxu1 }
 0x1de   :  { %v5960_v25 = vpop.f32.mrb[67].mxu1  ;;  %v2059_v7 = vadd.f32 %v5861_v61, %v7919_v8 }
 0x1df   :  { %v5961_v47 = vadd.f32 %v5960_v25, %v5959_v48  ;;  %v8006_v3 = vadd.f32 %v5958_v59, %v2040_v46  ;;  %v5862_v46 = vpop.f32.mrb[76].mxu0 }
 0x1e0   :  { %v5863_v13 = vpop.f32.mrb[77].mxu0 }
 0x1e1   :  { %v8009_v21 = vadd.f32 %v5961_v47, %v2043_v28  ;;  %v5864_v37 = vadd.f32 %v5863_v13, %v5862_v46  ;;  %v5865_v10 = vpop.f32.mrb[78].mxu0 }
 0x1e2   :  { %v5866_v19 = vpop.f32.mrb[79].mxu0 }
 0x1e3   :  { %v5962_v6 = vpop.f32.mrb[68].mxu1  ;;  %v2064_v58 = vadd.f32 %v5864_v37, %v7925_v33  ;;  %v5867_v59 = vadd.f32 %v5866_v19, %v5865_v10 }
 0x1e4   :  { %v5963_v49 = vpop.f32.mrb[69].mxu1 }
 0x1e5   :  { %v5964_v34 = vadd.f32 %v5963_v49, %v5962_v6  ;;  %v5965_v42 = vpop.f32.mrb[70].mxu1  ;;  %v2067_v8 = vadd.f32 %v5867_v59, %v7932_v57 }
 0x1e6   :  { %v5966_v22 = vpop.f32.mrb[71].mxu1 }
 0x1e7   :  { %v5967_v35 = vadd.f32 %v5966_v22, %v5965_v42  ;;  %v8012_v1 = vadd.f32 %v5964_v34, %v2048_v2  ;;  %v5868_v2 = vpop.f32.mrb[80].mxu0 }
 0x1e8   :  { %v5869_v47 = vpop.f32.mrb[81].mxu0 }
 0x1e9   :  { %v8015_v51 = vadd.f32 %v5967_v35, %v2051_v18  ;;  %v5870_v56 = vadd.f32 %v5869_v47, %v5868_v2  ;;  %v5871_v6 = vpop.f32.mrb[82].mxu0 }
 0x1ea   :  { %v5872_v39 = vpop.f32.mrb[83].mxu0 }
 0x1eb   :  { %v5968_v0 = vpop.f32.mrb[72].mxu1  ;;  %v2072_v33 = vadd.f32 %v5870_v56, %v7936_v50  ;;  %v5873_v34 = vadd.f32 %v5872_v39, %v5871_v6 }
 0x1ec   :  { %v5969_v28 = vpop.f32.mrb[73].mxu1 }
 0x1ed   :  { %v5970_v12 = vadd.f32 %v5969_v28, %v5968_v0  ;;  %v5971_v38 = vpop.f32.mrb[74].mxu1  ;;  %v2075_v57 = vadd.f32 %v5873_v34, %v7939_v53 }
 0x1ee   :  { %v5972_v17 = vpop.f32.mrb[75].mxu1 }
 0x1ef   :  { %v5973_v48 = vadd.f32 %v5972_v17, %v5971_v38  ;;  %v8018_v36 = vadd.f32 %v5970_v12, %v2056_v55  ;;  %v5874_v55 = vpop.f32.mrb[84].mxu0 }
 0x1f0   :  { %v5875_v35 = vpop.f32.mrb[85].mxu0 }
 0x1f1   :  { %v8021_v25 = vadd.f32 %v5973_v48, %v2059_v7  ;;  %v5876_v46 = vadd.f32 %v5875_v35, %v5874_v55  ;;  %v5877_v0 = vpop.f32.mrb[86].mxu0 }
 0x1f2   :  { %v5878_v37 = vpop.f32.mrb[87].mxu0 }
 0x1f3   :  { %v5974_v9 = vpop.f32.mrb[76].mxu1  ;;  %v2080_v50 = vadd.f32 %v5876_v46, %v7943_v20  ;;  %v5879_v12 = vadd.f32 %v5878_v37, %v5877_v0 }
 0x1f4   :  { %v5975_v18 = vpop.f32.mrb[77].mxu1 }
 0x1f5   :  { %v5976_v54 = vadd.f32 %v5975_v18, %v5974_v9  ;;  %v5977_v49 = vpop.f32.mrb[78].mxu1  ;;  %v2083_v53 = vadd.f32 %v5879_v12, %v7946_v30 }
 0x1f6   :  { %v5978_v5 = vpop.f32.mrb[79].mxu1 }
 0x1f7   :  { %v5979_v42 = vadd.f32 %v5978_v5, %v5977_v49  ;;  %v8024_v45 = vadd.f32 %v5976_v54, %v2064_v58  ;;  %v5880_v58 = vpop.f32.mrb[88].mxu0 }
 0x1f8   :  { %v5881_v48 = vpop.f32.mrb[89].mxu0 }
 0x1f9   :  { %v8027_v22 = vadd.f32 %v5979_v42, %v2067_v8  ;;  %v5882_v2 = vadd.f32 %v5881_v48, %v5880_v58  ;;  %v5883_v9 = vpop.f32.mrb[90].mxu0 }
 0x1fa   :  { %v5884_v56 = vpop.f32.mrb[91].mxu0 }
 0x1fb   :  { %v5980_v61 = vpop.f32.mrb[80].mxu1  ;;  %v2088_v20 = vadd.f32 %v5882_v2, %v7949_v41  ;;  %v5885_v54 = vadd.f32 %v5884_v56, %v5883_v9 }
 0x1fc   :  { %v5981_v7 = vpop.f32.mrb[81].mxu1 }
 0x1fd   :  { %v5982_v13 = vadd.f32 %v5981_v7, %v5980_v61  ;;  %v5983_v28 = vpop.f32.mrb[82].mxu1  ;;  %v2091_v30 = vadd.f32 %v5885_v54, %v7952_v40 }
 0x1fe   :  { %v5984_v10 = vpop.f32.mrb[83].mxu1 }
 0x1ff   :  { %v5985_v38 = vadd.f32 %v5984_v10, %v5983_v28  ;;  %v8030_v19 = vadd.f32 %v5982_v13, %v2072_v33  ;;  %v5886_v33 = vpop.f32.mrb[92].mxu0 }
 0x200   :  { %v5887_v42 = vpop.f32.mrb[93].mxu0 }
 0x201   :  { %v8033_v17 = vadd.f32 %v5985_v38, %v2075_v57  ;;  %v5888_v55 = vadd.f32 %v5887_v42, %v5886_v33  ;;  %v5889_v61 = vpop.f32.mrb[94].mxu0 }
 0x202   :  { %v5890_v46 = vpop.f32.mrb[95].mxu0 }
 0x203   :  { %v5986_v59 = vpop.f32.mrb[84].mxu1  ;;  %v2096_v41 = vadd.f32 %v5888_v55, %v7955_v32  ;;  %v5891_v13 = vadd.f32 %v5890_v46, %v5889_v61 }
 0x204   :  { %v5987_v8 = vpop.f32.mrb[85].mxu1 }
 0x205   :  { %v5988_v47 = vadd.f32 %v5987_v8, %v5986_v59  ;;  %v5989_v18 = vpop.f32.mrb[86].mxu1  ;;  %v2099_v40 = vadd.f32 %v5891_v13, %v7958_v4 }
 0x206   :  { %v5990_v6 = vpop.f32.mrb[87].mxu1 }
 0x207   :  { %v5991_v49 = vadd.f32 %v5990_v6, %v5989_v18  ;;  %v8036_v39 = vadd.f32 %v5988_v47, %v2080_v50  ;;  %v5892_v50 = vpop.f32.mrb[96].mxu0 }
 0x208   :  { %v5893_v38 = vpop.f32.mrb[97].mxu0 }
 0x209   :  { %v8039_v5 = vadd.f32 %v5991_v49, %v2083_v53  ;;  %v5894_v58 = vadd.f32 %v5893_v38, %v5892_v50  ;;  %v5895_v59 = vpop.f32.mrb[98].mxu0 }
 0x20a   :  { %v5896_v2 = vpop.f32.mrb[99].mxu0 }
 0x20b   :  { %v5992_v34 = vpop.f32.mrb[88].mxu1  ;;  %v2104_v32 = vadd.f32 %v5894_v58, %v7960_v52  ;;  %v5897_v47 = vadd.f32 %v5896_v2, %v5895_v59  ;;  %v6720_v2 = vld [vmem:[%s9580_s1 + $0x288] sm:$0xff]  }
 0x20c   :  { %v5993_v57 = vpop.f32.mrb[89].mxu1 }
 0x20d   :  { %v5994_v35 = vadd.f32 %v5993_v57, %v5992_v34  ;;  %v5995_v7 = vpop.f32.mrb[90].mxu1  ;;  %v2107_v4 = vadd.f32 %v5897_v47, %v7964_v16 }
 0x20e   :  { %v5996_v0 = vpop.f32.mrb[91].mxu1 }
 0x20f   :  { %v5997_v28 = vadd.f32 %v5996_v0, %v5995_v7  ;;  %v8042_v37 = vadd.f32 %v5994_v35, %v2088_v20  ;;  %v5898_v20 = vpop.f32.mrb[100].mxu0 }
 0x210   :  { %v5899_v49 = vpop.f32.mrb[101].mxu0 }
 0x211   :  { %v8045_v10 = vadd.f32 %v5997_v28, %v2091_v30  ;;  %v5900_v33 = vadd.f32 %v5899_v49, %v5898_v20  ;;  %v5901_v34 = vpop.f32.mrb[102].mxu0  ;;  %v6722_v20 = vld [vmem:[%s9580_s1 + $0x290] sm:$0xff]  }
 0x212   :  { %v5902_v55 = vpop.f32.mrb[103].mxu0 }
 0x213   :  { %v5998_v12 = vpop.f32.mrb[92].mxu1  ;;  %v2112_v52 = vadd.f32 %v5900_v33, %v7966_v26  ;;  %v5903_v35 = vadd.f32 %v5902_v55, %v5901_v34  ;;  %v6723_v55 = vld [vmem:[%s9580_s1 + $0x250] sm:$0xff]  }
 0x214   :  { %v5999_v53 = vpop.f32.mrb[93].mxu1 }
 0x215   :  { %v6000_v48 = vadd.f32 %v5999_v53, %v5998_v12  ;;  %v6001_v8 = vpop.f32.mrb[94].mxu1  ;;  %v2115_v16 = vadd.f32 %v5903_v35, %v7970_v43  ;;  %v6719_v43 = vld [vmem:[%s9580_s1 + $0x240] sm:$0xff]  }
 0x216   :  { %v6002_v9 = vpop.f32.mrb[95].mxu1 }
 0x217   :  { %v6003_v18 = vadd.f32 %v6002_v9, %v6001_v8  ;;  %v8048_v56 = vadd.f32 %v6000_v48, %v2096_v41  ;;  %v5904_v41 = vpop.f32.mrb[104].mxu0  ;;  %v6718_v8 = vld [vmem:[%s9580_s1 + $0x280] sm:$0xff]  }
 0x218   :  { %v5905_v28 = vpop.f32.mrb[105].mxu0  ;;  %6076 = vmatprep.subr.bf16.mxu1 %v6718_v8  ;;  %v6727_v8 = vld [vmem:[%s9580_s1 + $0x260] sm:$0xff]  }
 0x219   :  { %v8051_v6 = vadd.f32 %v6003_v18, %v2099_v40  ;;  %v5906_v50 = vadd.f32 %v5905_v28, %v5904_v41  ;;  %v5907_v12 = vpop.f32.mrb[106].mxu0  ;;  %6077 = vmatpush3.bf16.msra.mxu1 %v6719_v43  ;;  %v6721_v18 = vld [vmem:[%s9580_s1 + $0x248] sm:$0xff]  }
 0x21a   :  { %v5908_v58 = vpop.f32.mrb[107].mxu0  ;;  %6078 = vmatprep.subr.bf16.mxu1 %v6720_v2 }
 0x21b   :  { %v6004_v54 = vpop.f32.mrb[96].mxu1  ;;  %v2120_v26 = vadd.f32 %v5906_v50, %v7974_v31  ;;  %v5909_v48 = vadd.f32 %v5908_v58, %v5907_v12 }
 0x21c   :  { %v6005_v30 = vpop.f32.mrb[97].mxu1 }
 0x21d   :  { %v6006_v42 = vadd.f32 %v6005_v30, %v6004_v54  ;;  %v6007_v57 = vpop.f32.mrb[98].mxu1  ;;  %v2123_v47 = vadd.f32 %v5909_v48, %v7980_v60  ;;  %6079 = vmatpush3.bf16.msra.mxu1 %v6721_v18 }
 0x21e   :  { %v6008_v61 = vpop.f32.mrb[99].mxu1  ;;  %6080 = vmatprep.subr.bf16.mxu1 %v6722_v20 }
 0x21f   :  { %v6009_v7 = vadd.f32 %v6008_v61, %v6007_v57  ;;  %v8054_v46 = vadd.f32 %v6006_v42, %v2104_v32 }
 0x221   :  { %v8057_v0 = vadd.f32 %v6009_v7, %v2107_v4  ;;  %v5910_v4 = vpop.f32.mrb[108].mxu0  ;;  %v6724_v7 = vld [vmem:[%s9580_s1 + $0x298] sm:$0xff]   ;;  %6081 = vmatpush3.bf16.msra.mxu1 %v6723_v55 }
 0x222   :  { %v5911_v49 = vpop.f32.mrb[109].mxu0  ;;  %6082 = vmatprep.subr.bf16.mxu1 %v6724_v7 }
 0x223   :  { %v6010_v13 = vpop.f32.mrb[100].mxu1  ;;  %v5912_v33 = vadd.f32 %v5911_v49, %v5910_v4  ;;  %v5913_v34 = vpop.f32.mrb[110].mxu0  ;;  %v6729_v49 = vld [vmem:[%s9580_s1 + $0x268] sm:$0xff]  }
 0x224   :  { %v6011_v40 = vpop.f32.mrb[101].mxu1  ;;  %v5914_v57 = vpop.f32.mrb[111].mxu0 }
 0x225   :  { %v6012_v38 = vadd.f32 %v6011_v40, %v6010_v13  ;;  %v6013_v53 = vpop.f32.mrb[102].mxu1  ;;  %v5915_v35 = vadd.f32 %v5914_v57, %v5913_v34  ;;  %v6725_v40 = vld [vmem:[%s9580_s1 + $0x258] sm:$0xff]  }
 0x226   :  { %v6014_v59 = vpop.f32.mrb[103].mxu1  ;;  %6083 = vmatpush3.bf16.msra.mxu1 %v6725_v40 }
 0x227   :  { %v6015_v9 = vadd.f32 %v6014_v59, %v6013_v53  ;;  %v8069_v32 = vadd.f32 %v6012_v38, %v2112_v52  ;;  %v2128_v52 = vadd.f32 %v5912_v33, %v7983_v23  ;;  %v2131_v13 = vadd.f32 %v5915_v35, %v7985_v11  ;;  %v5916_v50 = vpop.f32.mrb[112].mxu0  ;;  %v6726_v23 = vld [vmem:[%s9580_s1 + $0x2a0] sm:$0xff]  }
 0x228   :  { %v5917_v38 = vpop.f32.mrb[113].mxu0  ;;  %6084 = vmatprep.subr.bf16.mxu1 %v6726_v23 }
 0x229   :  { %v8072_v31 = vadd.f32 %v6015_v9, %v2115_v16  ;;  %v5918_v58 = vadd.f32 %v5917_v38, %v5916_v50  ;;  %v5919_v59 = vpop.f32.mrb[114].mxu0 }
 0x22a   :  { %v5920_v48 = vpop.f32.mrb[115].mxu0  ;;  %6085 = vmatpush3.bf16.msra.mxu1 %v6727_v8 }
 0x22b   :  { %v6016_v54 = vpop.f32.mrb[104].mxu1  ;;  %v2136_v2 = vadd.f32 %v5918_v58, %v7987_v62  ;;  %v5921_v9 = vadd.f32 %v5920_v48, %v5919_v59 }
 0x22c   :  { %v6017_v30 = vpop.f32.mrb[105].mxu1 }
 0x22d   :  { %v6018_v60 = vadd.f32 %v6017_v30, %v6016_v54  ;;  %v6019_v42 = vpop.f32.mrb[106].mxu1  ;;  %v2139_v20 = vadd.f32 %v5921_v9, %v7989_v15 }
 0x22e   :  { %v6020_v61 = vpop.f32.mrb[107].mxu1 }
 0x22f   :  { %v6021_v16 = vadd.f32 %v6020_v61, %v6019_v42  ;;  %v8087_v41 = vadd.f32 %v6018_v60, %v2120_v26  ;;  %v5922_v30 = vpop.f32.mrb[116].mxu0 }
 0x230   :  { %v5923_v33 = vpop.f32.mrb[117].mxu0 }
 0x231   :  { %v8090_v28 = vadd.f32 %v6021_v16, %v2123_v47  ;;  %v6728_v47 = vld [vmem:[%s9580_s1 + $0x2a8] sm:$0xff]   ;;  %v5924_v60 = vadd.f32 %v5923_v33, %v5922_v30  ;;  %v5925_v42 = vpop.f32.mrb[118].mxu0 }
 0x232   :  { %6086 = vmatprep.subr.bf16.mxu1 %v6728_v47  ;;  %v5926_v61 = vpop.f32.mrb[119].mxu0 }
 0x233   :  { %v6022_v12 = vpop.f32.mrb[108].mxu1  ;;  %6087 = vmatpush3.bf16.msra.mxu1 %v6729_v49  ;;  %v2144_v15 = vadd.f32 %v5924_v60, %v7991_v14  ;;  %v5927_v35 = vadd.f32 %v5926_v61, %v5925_v42 }
 0x234   :  { %v6023_v53 = vpop.f32.mrb[109].mxu1 }
 0x235   :  { %v6024_v26 = vadd.f32 %v6023_v53, %v6022_v12  ;;  %v6025_v11 = vpop.f32.mrb[110].mxu1 }
 0x236   :  { %v6026_v43 = vpop.f32.mrb[111].mxu1 }
 0x237   :  { %v6027_v18 = vadd.f32 %v6026_v43, %v6025_v11  ;;  %v8105_v4 = vadd.f32 %v6024_v26, %v2128_v52  ;;  %v5928_v50 = vpop.f32.mrb[120].mxu0 }
 0x238   :  { %v5929_v12 = vpop.f32.mrb[121].mxu0 }
 0x239   :  { %v8108_v54 = vadd.f32 %v6027_v18, %v2131_v13  ;;  %v2147_v13 = vadd.f32 %v5927_v35, %v7993_v27  ;;  %v5930_v53 = vadd.f32 %v5929_v12, %v5928_v50  ;;  %v5931_v58 = vpop.f32.mrb[122].mxu0 }
 0x23a   :  { %v5932_v11 = vpop.f32.mrb[123].mxu0 }
 0x23b   :  { %v6028_v62 = vpop.f32.mrb[112].mxu1  ;;  %v2152_v14 = vadd.f32 %v5930_v53, %v7995_v44  ;;  %v5933_v8 = vadd.f32 %v5932_v11, %v5931_v58 }
 0x23c   :  { %v6029_v34 = vpop.f32.mrb[113].mxu1 }
 0x23d   :  { %v6030_v57 = vadd.f32 %v6029_v34, %v6028_v62  ;;  %v6031_v55 = vpop.f32.mrb[114].mxu1  ;;  %v2155_v27 = vadd.f32 %v5933_v8, %v7997_v63 }
 0x23e   :  { %v6032_v52 = vpop.f32.mrb[115].mxu1 }
 0x23f   :  { %v6033_v7 = vadd.f32 %v6032_v52, %v6031_v55  ;;  %v8114_v16 = vadd.f32 %v6030_v57, %v2136_v2  ;;  %v5934_v47 = vpop.f32.mrb[124].mxu0 }
 0x241   :  { %v8117_v40 = vadd.f32 %v6033_v7, %v2139_v20  ;;  %v5935_v20 = vpop.f32.mrb[125].mxu0 }
 0x242   :  { %v5936_v30 = vadd.f32 %v5935_v20, %v5934_v47  ;;  %v5937_v62 = vpop.f32.mrb[126].mxu0 }
 0x243   :  { %v6034_v23 = vpop.f32.mrb[116].mxu1  ;;  %v5938_v60 = vpop.f32.mrb[127].mxu0 }
 0x244   :  { %v6035_v38 = vpop.f32.mrb[117].mxu1  ;;  %v2160_v44 = vadd.f32 %v5936_v30, %v8000_v29  ;;  %v5939_v57 = vadd.f32 %v5938_v60, %v5937_v62 }
 0x245   :  { %v6036_v59 = vadd.f32 %v6035_v38, %v6034_v23  ;;  %v6037_v26 = vpop.f32.mrb[118].mxu1 }
 0x246   :  { %v6038_v48 = vpop.f32.mrb[119].mxu1  ;;  %v2163_v63 = vadd.f32 %v5939_v57, %v8003_v24 }
 0x247   :  { %v6039_v43 = vadd.f32 %v6038_v48, %v6037_v26  ;;  %v8120_v2 = vadd.f32 %v6036_v59, %v2144_v15  ;;  %v6566_v15 = vpop.f32.mrb[128].mxu0 }
 0x248   :  { %v8132_v7 = vadd.f32 %v6566_v15, %v8012_v1 }
 0x249   :  { %v8123_v9 = vadd.f32 %v6039_v43, %v2147_v13  ;;  %v2361_v13 = vpop.f32.mrb[129].mxu0 }
 0x24a   :  { %v8135_v23 = vadd.f32 %v2361_v13, %v8006_v3  ;;  %v6567_v12 = vpop.f32.mrb[130].mxu0 }
 0x24b   :  { %v6040_v18 = vpop.f32.mrb[120].mxu1  ;;  %v8138_v53 = vadd.f32 %v6567_v12, %v8015_v51  ;;  %v2364_v58 = vpop.f32.mrb[131].mxu0  ;;  %v2530_v51 = vmul.f32 %v8132_v7, %v8132_v7 }
 0x24c   :  { %v6041_v49 = vpop.f32.mrb[121].mxu1  ;;  %v8141_v59 = vadd.f32 %v2364_v58, %v8009_v21  ;;  %v2528_v1 = vmul.f32 %v8135_v23, %v8135_v23 }
 0x24d   :  { %v6042_v33 = vadd.f32 %v6041_v49, %v6040_v18  ;;  %v6043_v34 = vpop.f32.mrb[122].mxu1  ;;  %v2531_v18 = vmul.f32 %v8138_v53, %v8138_v53 }
 0x24e   :  { %v6044_v42 = vpop.f32.mrb[123].mxu1  ;;  %v2488_v3 = vadd.f32 %v8141_v59, %v8135_v23  ;;  %v2529_v48 = vmul.f32 %v8141_v59, %v8141_v59 }
 0x24f   :  { %v6045_v55 = vadd.f32 %v6044_v42, %v6043_v34  ;;  %v8126_v61 = vadd.f32 %v6042_v33, %v2152_v14  ;;  %v6570_v43 = vpop.f32.mrb[132].mxu0 }
 0x250   :  { %v2489_v21 = vadd.f32 %v2488_v3, %v8132_v7  ;;  %v2560_v8 = vadd.f32 %v2529_v48, %v2528_v1  ;;  %v2377_v47 = vpop.f32.mrb[133].mxu0 }
 0x251   :  { %v8129_v52 = vadd.f32 %v6045_v55, %v2155_v27  ;;  %v8157_v27 = vadd.f32 %v6570_v43, %v8024_v45  ;;  %v8162_v49 = vadd.f32 %v2377_v47, %v8018_v36  ;;  %v6571_v62 = vpop.f32.mrb[134].mxu0 }
 0x252   :  { %v2561_v20 = vadd.f32 %v2560_v8, %v2530_v51  ;;  %v2490_v30 = vadd.f32 %v2489_v21, %v8138_v53  ;;  %v8166_v33 = vadd.f32 %v6571_v62, %v8027_v22  ;;  %v2380_v34 = vpop.f32.mrb[135].mxu0 }
 0x253   :  { %v6046_v35 = vpop.f32.mrb[124].mxu1  ;;  %v2532_v45 = vmul.f32 %v8162_v49, %v8162_v49  ;;  %v2534_v22 = vmul.f32 %v8157_v27, %v8157_v27 }
 0x254   :  { %v6047_v50 = vpop.f32.mrb[125].mxu1  ;;  %v2491_v60 = vadd.f32 %v2490_v30, %v8162_v49  ;;  %v2562_v42 = vadd.f32 %v2561_v20, %v2531_v18 }
 0x255   :  { %v6048_v29 = vadd.f32 %v6047_v50, %v6046_v35  ;;  %v6049_v38 = vpop.f32.mrb[126].mxu1 }
 0x256   :  { %v6050_v24 = vpop.f32.mrb[127].mxu1  ;;  %v2563_v57 = vadd.f32 %v2562_v42, %v2532_v45 }
 0x257   :  { %v6051_v26 = vadd.f32 %v6050_v24, %v6049_v38  ;;  %v8143_v11 = vadd.f32 %v6048_v29, %v2160_v44  ;;  %v8172_v44 = vadd.f32 %v2380_v34, %v8021_v25  ;;  %v6574_v35 = vpop.f32.mrb[136].mxu0  ;;  %v2535_v25 = vmul.f32 %v8166_v33, %v8166_v33 }
 0x258   :  { %v8181_v13 = vadd.f32 %v6574_v35, %v8036_v39  ;;  %v2393_v50 = vpop.f32.mrb[137].mxu0 }
 0x259   :  { %v8151_v14 = vadd.f32 %v6051_v26, %v2163_v63  ;;  %v2492_v36 = vadd.f32 %v2491_v60, %v8172_v44  ;;  %v2533_v55 = vmul.f32 %v8172_v44, %v8172_v44  ;;  %v8186_v29 = vadd.f32 %v2393_v50, %v8030_v19  ;;  %v6575_v58 = vpop.f32.mrb[138].mxu0 }
 0x25a   :  { %v8190_v24 = vadd.f32 %v6575_v58, %v8039_v5  ;;  %v2396_v26 = vpop.f32.mrb[139].mxu0  ;;  %v2538_v5 = vmul.f32 %v8181_v13, %v8181_v13 }
 0x25b   :  { %v2493_v63 = vadd.f32 %v2492_v36, %v8157_v27  ;;  %v2564_v15 = vadd.f32 %v2563_v57, %v2533_v55  ;;  %v2536_v39 = vmul.f32 %v8186_v29, %v8186_v29  ;;  %v8196_v48 = vadd.f32 %v2396_v26, %v8033_v17 }
 0x25c   :  { %v2539_v17 = vmul.f32 %v8190_v24, %v8190_v24 }
 0x25d   :  { %v2565_v12 = vadd.f32 %v2564_v15, %v2534_v22  ;;  %v2494_v38 = vadd.f32 %v2493_v63, %v8166_v33  ;;  %v2537_v21 = vmul.f32 %v8196_v48, %v8196_v48 }
 0x25f   :  { %v2495_v1 = vadd.f32 %v2494_v38, %v8186_v29  ;;  %v2566_v3 = vadd.f32 %v2565_v12, %v2535_v25  ;;  %v6578_v47 = vpop.f32.mrb[140].mxu0 }
 0x260   :  { %v8205_v18 = vadd.f32 %v6578_v47, %v8048_v56  ;;  %v2409_v20 = vpop.f32.mrb[141].mxu0 }
 0x261   :  { %v2567_v51 = vadd.f32 %v2566_v3, %v2536_v39  ;;  %v2496_v19 = vadd.f32 %v2495_v1, %v8196_v48  ;;  %v8210_v62 = vadd.f32 %v2409_v20, %v8042_v37  ;;  %v6579_v60 = vpop.f32.mrb[142].mxu0 }
 0x262   :  { %v8214_v45 = vadd.f32 %v6579_v60, %v8051_v6  ;;  %v2412_v42 = vpop.f32.mrb[143].mxu0  ;;  %v2542_v6 = vmul.f32 %v8205_v18, %v8205_v18 }
 0x263   :  { %v2497_v8 = vadd.f32 %v2496_v19, %v8181_v13  ;;  %v2568_v43 = vadd.f32 %v2567_v51, %v2537_v21  ;;  %v2540_v56 = vmul.f32 %v8210_v62, %v8210_v62  ;;  %v8220_v55 = vadd.f32 %v2412_v42, %v8045_v10 }
 0x264   :  { %v2543_v10 = vmul.f32 %v8214_v45, %v8214_v45 }
 0x265   :  { %v2569_v30 = vadd.f32 %v2568_v43, %v2538_v5  ;;  %v2498_v34 = vadd.f32 %v2497_v8, %v8190_v24  ;;  %v2541_v63 = vmul.f32 %v8220_v55, %v8220_v55 }
 0x267   :  { %v2499_v57 = vadd.f32 %v2498_v34, %v8210_v62  ;;  %v2570_v36 = vadd.f32 %v2569_v30, %v2539_v17  ;;  %v6582_v50 = vpop.f32.mrb[144].mxu0 }
 0x268   :  { %v8229_v25 = vadd.f32 %v6582_v50, %v8069_v32  ;;  %v2425_v12 = vpop.f32.mrb[145].mxu0 }
 0x269   :  { %v2571_v22 = vadd.f32 %v2570_v36, %v2540_v56  ;;  %v2500_v37 = vadd.f32 %v2499_v57, %v8220_v55  ;;  %v8234_v58 = vadd.f32 %v2425_v12, %v8054_v46  ;;  %v6583_v1 = vpop.f32.mrb[146].mxu0 }
 0x26a   :  { %v8238_v39 = vadd.f32 %v6583_v1, %v8072_v31  ;;  %v2428_v3 = vpop.f32.mrb[147].mxu0  ;;  %v2546_v31 = vmul.f32 %v8229_v25, %v8229_v25 }
 0x26b   :  { %v2501_v15 = vadd.f32 %v2500_v37, %v8205_v18  ;;  %v2572_v35 = vadd.f32 %v2571_v22, %v2541_v63  ;;  %v2544_v32 = vmul.f32 %v8234_v58, %v8234_v58  ;;  %v8244_v21 = vadd.f32 %v2428_v3, %v8057_v0 }
 0x26c   :  { %v2547_v0 = vmul.f32 %v8238_v39, %v8238_v39 }
 0x26d   :  { %v2573_v38 = vadd.f32 %v2572_v35, %v2542_v6  ;;  %v2502_v26 = vadd.f32 %v2501_v15, %v8214_v45  ;;  %v2545_v8 = vmul.f32 %v8244_v21, %v8244_v21 }
 0x26f   :  { %v2503_v51 = vadd.f32 %v2502_v26, %v8234_v58  ;;  %v2574_v19 = vadd.f32 %v2573_v38, %v2543_v10  ;;  %v6586_v20 = vpop.f32.mrb[148].mxu0 }
 0x270   :  { %v8253_v17 = vadd.f32 %v6586_v20, %v8105_v4  ;;  %v2441_v30 = vpop.f32.mrb[149].mxu0 }
 0x271   :  { %v2575_v5 = vadd.f32 %v2574_v19, %v2544_v32  ;;  %v2504_v46 = vadd.f32 %v2503_v51, %v8244_v21  ;;  %v8258_v60 = vadd.f32 %v2441_v30, %v8087_v41  ;;  %v6587_v57 = vpop.f32.mrb[150].mxu0 }
 0x272   :  { %v8262_v56 = vadd.f32 %v6587_v57, %v8108_v54  ;;  %v2444_v36 = vpop.f32.mrb[151].mxu0  ;;  %v2550_v54 = vmul.f32 %v8253_v17, %v8253_v17 }
 0x273   :  { %v2505_v43 = vadd.f32 %v2504_v46, %v8229_v25  ;;  %v2576_v47 = vadd.f32 %v2575_v5, %v2545_v8  ;;  %v2548_v4 = vmul.f32 %v8258_v60, %v8258_v60  ;;  %v8268_v63 = vadd.f32 %v2444_v36, %v8090_v28 }
 0x274   :  { %v2551_v28 = vmul.f32 %v8262_v56, %v8262_v56 }
 0x275   :  { %v2577_v34 = vadd.f32 %v2576_v47, %v2546_v31  ;;  %v2506_v42 = vadd.f32 %v2505_v43, %v8238_v39  ;;  %v2549_v15 = vmul.f32 %v8268_v63, %v8268_v63 }
 0x277   :  { %v2507_v22 = vadd.f32 %v2506_v42, %v8258_v60  ;;  %v2578_v37 = vadd.f32 %v2577_v34, %v2547_v0  ;;  %v6590_v12 = vpop.f32.mrb[152].mxu0 }
 0x278   :  { %v8277_v10 = vadd.f32 %v6590_v12, %v8120_v2  ;;  %v2457_v38 = vpop.f32.mrb[153].mxu0 }
 0x279   :  { %v2579_v6 = vadd.f32 %v2578_v37, %v2548_v4  ;;  %v2508_v41 = vadd.f32 %v2507_v22, %v8268_v63  ;;  %v8282_v1 = vadd.f32 %v2457_v38, %v8114_v16  ;;  %v6591_v51 = vpop.f32.mrb[154].mxu0 }
 0x27a   :  { %v8286_v32 = vadd.f32 %v6591_v51, %v8123_v9  ;;  %v2460_v19 = vpop.f32.mrb[155].mxu0  ;;  %v2554_v9 = vmul.f32 %v8277_v10, %v8277_v10 }
 0x27b   :  { %v2509_v35 = vadd.f32 %v2508_v41, %v8253_v17  ;;  %v2580_v50 = vadd.f32 %v2579_v6, %v2549_v15  ;;  %v2552_v2 = vmul.f32 %v8282_v1, %v8282_v1  ;;  %v8292_v8 = vadd.f32 %v2460_v19, %v8117_v40 }
 0x27c   :  { %v2555_v40 = vmul.f32 %v8286_v32, %v8286_v32 }
 0x27d   :  { %v2581_v26 = vadd.f32 %v2580_v50, %v2550_v54  ;;  %v2510_v3 = vadd.f32 %v2509_v35, %v8262_v56  ;;  %v2553_v43 = vmul.f32 %v8292_v8, %v8292_v8 }
 0x27f   :  { %v2511_v5 = vadd.f32 %v2510_v3, %v8282_v1  ;;  %v2582_v46 = vadd.f32 %v2581_v26, %v2551_v28  ;;  %v6594_v30 = vpop.f32.mrb[156].mxu0 }
 0x280   :  { %v8301_v0 = vadd.f32 %v6594_v30, %v8143_v11  ;;  %v2473_v34 = vpop.f32.mrb[157].mxu0  ;;  %v6732_v30 = vld [vmem:[%s9580_s1 + $0x300] sm:$0xff]  }
 0x281   :  { %v2583_v31 = vadd.f32 %v2582_v46, %v2552_v2  ;;  %v2512_v16 = vadd.f32 %v2511_v5, %v8292_v8  ;;  %v8306_v57 = vadd.f32 %v2473_v34, %v8126_v61  ;;  %v6595_v22 = vpop.f32.mrb[158].mxu0  ;;  %v6733_v34 = vld [vmem:[%s9580_s1 + $0x2c0] sm:$0xff]   ;;  %6188 = vmatprep.subr.bf16.mxu0 %v6732_v30  ;;  %v6751_v30 = vld [vmem:[%s9580_s1 + $0x2f8] sm:$0xff]  }
 0x282   :  { %v8310_v4 = vadd.f32 %v6595_v22, %v8151_v14  ;;  %v2476_v37 = vpop.f32.mrb[159].mxu0  ;;  %v2558_v14 = vmul.f32 %v8301_v0, %v8301_v0  ;;  %6189 = vmatpush3.bf16.msra.mxu0 %v6733_v34  ;;  %v6739_v22 = vld [vmem:[%s9580_s1 + $0x2d0] sm:$0xff]  }
 0x283   :  { %v2513_v47 = vadd.f32 %v2512_v16, %v8277_v10  ;;  %v2584_v20 = vadd.f32 %v2583_v31, %v2553_v43  ;;  %v2556_v11 = vmul.f32 %v8306_v57, %v8306_v57  ;;  %v8316_v15 = vadd.f32 %v2476_v37, %v8129_v52  ;;  %v6730_v37 = vld [vmem:[%s9580_s1 + $0x2b0] sm:$0xff]  }
 0x284   :  { %v2559_v38 = vmul.f32 %v8310_v4, %v8310_v4  ;;  %6088 = vmatprep.subr.bf16.mxu1 %v6730_v37  ;;  %v6755_v37 = vld [vmem:[%s9580_s1 + $0x350] sm:$0xff]  }
 0x285   :  { %v2585_v42 = vadd.f32 %v2584_v20, %v2554_v9  ;;  %v2514_v36 = vadd.f32 %v2513_v47, %v8286_v32  ;;  %v2557_v35 = vmul.f32 %v8316_v15, %v8316_v15 }
 0x287   :  { %v2515_v6 = vadd.f32 %v2514_v36, %v8306_v57  ;;  %v2586_v41 = vadd.f32 %v2585_v42, %v2555_v40  ;;  %v6734_v40 = vld [vmem:[%s9580_s1 + $0x308] sm:$0xff]   ;;  %v6738_v36 = vld [vmem:[%s9580_s1 + $0x310] sm:$0xff]  }
 0x288   :  { %v6735_v42 = vld [vmem:[%s9580_s1 + $0x2c8] sm:$0xff]   ;;  %6190 = vmatprep.subr.bf16.mxu0 %v6734_v40 }
 0x289   :  { %v2587_v54 = vadd.f32 %v2586_v41, %v2556_v11  ;;  %v2516_v61 = vadd.f32 %v2515_v6, %v8316_v15  ;;  %6191 = vmatpush3.bf16.msra.mxu0 %v6735_v42  ;;  %v6740_v6 = vld [vmem:[%s9580_s1 + $0x318] sm:$0xff]   ;;  %v6731_v11 = vld [vmem:[%s9580_s1 + $0x270] sm:$0xff]   ;;  %v6752_v42 = vld [vmem:[%s9580_s1 + $0x388] sm:$0xff]  }
 0x28a   :  { %6192 = vmatprep.subr.bf16.mxu0 %v6738_v36  ;;  %v6741_v41 = vld [vmem:[%s9580_s1 + $0x2d8] sm:$0xff]   ;;  %6089 = vmatpush3.bf16.msra.mxu1 %v6731_v11  ;;  %v6753_v36 = vld [vmem:[%s9580_s1 + $0x348] sm:$0xff]  }
 0x28b   :  { %v2517_v50 = vadd.f32 %v2516_v61, %v8301_v0  ;;  %v2588_v12 = vadd.f32 %v2587_v54, %v2557_v35  ;;  %v6795_v54 = vld [vmem:[#allocation2 + $0x8] sm:$0xff]  ;;  %v6736_v35 = vld [vmem:[%s9580_s1 + $0x2b8] sm:$0xff]  }
 0x28c   :  { %v2825_v61 = vshrl.u32 %v6795_v54, 16  ;;  %6090 = vmatprep.subr.bf16.mxu1 %v6736_v35  ;;  %v6757_v11 = vld [vmem:[%s9580_s1 + $0x358] sm:$0xff]  }
 0x28d   :  { %v2589_v28 = vadd.f32 %v2588_v12, %v2558_v14  ;;  %v2518_v26 = vadd.f32 %v2517_v50, %v8310_v4  ;;  %6193 = vmatpush3.bf16.msra.mxu0 %v6739_v22  ;;  %v6742_v14 = vld [vmem:[%s9580_s1 + $0x320] sm:$0xff]   ;;  %v2784_v50 = vld [vmem:[#allocation3] sm:$0x80]  ;;  %v6737_v12 = vld [vmem:[%s9580_s1 + $0x278] sm:$0xff]  }
 0x28e   :  { %6194 = vmatprep.subr.bf16.mxu0 %v6740_v6  ;;  %6091 = vmatpush3.bf16.msra.mxu1 %v6737_v12  ;;  %v6754_v22 = vld [vmem:[%s9580_s1 + $0x390] sm:$0xff]   ;;  %v6756_v6 = vld [vmem:[%s9580_s1 + $0x398] sm:$0xff]  }
 0x28f   :  { %v2519_v52 = vrot.slane %v2518_v26, 4  ;;  %v2590_v3 = vadd.f32 %v2589_v28, %v2559_v38  ;;  %v6743_v38 = vld [vmem:[%s9580_s1 + $0x2e0] sm:$0xff]   ;;  %v2821_v28 = vshrl.u32 %v2784_v50, 16 }
 0x291   :  { %v2520_v51 = vadd.f32 %v2519_v52, %v2518_v26  ;;  %v2591_v19 = vrot.slane %v2590_v3, 4  ;;  %6195 = vmatpush3.bf16.msra.mxu0 %v6741_v41  ;;  %v2827_v26 = vrot.slane %v2825_v61, 7  ;;  %v2828_v52 = vshll.u32 %v6795_v54, 16  ;;  %v6758_v41 = vld [vmem:[%s9580_s1 + $0x3a0] sm:$0xff]  }
 0x292   :  { %6196 = vmatprep.subr.bf16.mxu0 %v6742_v14  ;;  %v6759_v54 = vld [vmem:[%s9580_s1 + $0x400] sm:$0xff]  }
 0x293   :  { %v2521_v5 = vrot.slane %v2520_v51, 2  ;;  %v2592_v2 = vadd.f32 %v2591_v19, %v2590_v3  ;;  %v2823_v3 = vrot.slane %v2821_v28, 7  ;;  %v6744_v19 = vld [vmem:[%s9580_s1 + $0x328] sm:$0xff]   ;;  %v3209_v34 = vrot.slane %v2828_v52, 1 }
 0x295   :  { %v2522_v46 = vadd.f32 %v2521_v5, %v2520_v51  ;;  %v2593_v31 = vrot.slane %v2592_v2, 2  ;;  %6197 = vmatpush3.bf16.msra.mxu0 %v6743_v38  ;;  %v2830_v51 = vor.u32 %v2828_v52, %v2827_v26  ;;  %v8402_v40 = vor.u32 %v3209_v34, %v2825_v61  ;;  %v6760_v61 = vld [vmem:[%s9580_s1 + $0x360] sm:$0xff]   ;;  %v6762_v52 = vld [vmem:[%s9580_s1 + $0x3a8] sm:$0xff]  }
 0x296   :  { %6198 = vmatprep.subr.bf16.mxu0 %v6744_v19  ;;  %v2608_v34 = vld [vmem:[%s9584_s3] sm:$0x1] }
 0x297   :  { %v2523_v16 = vrot.slane %v2522_v46, 1  ;;  %v2594_v43 = vadd.f32 %v2593_v31, %v2592_v2  ;;  %v2831_v5 = vsel %vm295_vm0, %v2823_v3, %v2830_v51  ;;  %v6745_v2 = vld [vmem:[%s9580_s1 + $0x2e8] sm:$0xff]   ;;  %v6749_v31 = vld [vmem:[%s9580_s1 + $0x2f0] sm:$0xff]  }
 0x298   :  { %4240 = vmatmul.mubr.bf16.vlgmr.msra.gmra.mrb[128].mxu1 %v2831_v5  ;;  %v6764_v3 = vld [vmem:[%s9580_s1 + $0x368] sm:$0xff]  }
 0x299   :  { %v8327_v9 = vadd.f32 %v2523_v16, %v2522_v46  ;;  %v2595_v47 = vrot.slane %v2594_v43, 1  ;;  %6199 = vmatpush3.bf16.msra.mxu0 %v6745_v2  ;;  %v6747_v46 = vld [vmem:[%s9580_s1 + $0x330] sm:$0xff]   ;;  %v6746_v16 = vld [vmem:[%s9580_s1 + $0x380] sm:$0xff]  }
 0x29a   :  { %6200 = vmatprep.subr.bf16.mxu0 %v6747_v46  ;;  %6300 = vmatprep.subr.bf16.mxu1 %v6746_v16 }
 0x29b   :  { %2525 = vrot.lane.b32.xlu0 %v8327_v9, %s6830_s9  ;;  %v8331_v20 = vadd.f32 %v2595_v47, %v2594_v43  ;;  %v6748_v43 = vld [vmem:[%s9580_s1 + $0x340] sm:$0xff]   ;;  %v6750_v47 = vld [vmem:[%s9580_s1 + $0x338] sm:$0xff]  }
 0x29c   :  { %6301 = vmatpush3.bf16.msra.mxu1 %v6748_v43  ;;  %v8447_v43 = vld [vmem:[#allocation3 + $0x18] sm:$0x80] }
 0x29d   :  { %6201 = vmatpush3.bf16.msra.mxu0 %v6749_v31  ;;  %6302 = vmatprep.subr.bf16.mxu1 %v6752_v42  ;;  %v6766_v31 = vld [vmem:[%s9580_s1 + $0x3b0] sm:$0xff]  }
 0x29e   :  { %6202 = vmatprep.subr.bf16.mxu0 %v6750_v47  ;;  %v8449_v47 = vld [vmem:[#allocation3 + $0x10] sm:$0x1] }
 0x29f   :  { %2597 = vrot.lane.b32.xlu0 %v8331_v20, %s6830_s9 }
 0x2a0   :  { %6303 = vmatpush3.bf16.msra.mxu1 %v6753_v36 }
 0x2a1   :  { %6203 = vmatpush3.bf16.msra.mxu0 %v6751_v30  ;;  %6304 = vmatprep.subr.bf16.mxu1 %v6754_v22  ;;  %v6768_v30 = vld [vmem:[%s9580_s1 + $0x370] sm:$0xff]   ;;  %v2833_v22 = vshrl.u32 %v8447_v43, 16  ;;  %v6761_v43 = vld [vmem:[%s9580_s1 + $0x3c0] sm:$0xff]  }
 0x2a2   :  { %6412 = vmatprep.subr.bf16.mxu0 %v6759_v54 }
 0x2a4   :  { %6305 = vmatpush3.bf16.msra.mxu1 %v6755_v37  ;;  %v3212_v37 = vshll.u32 %v8449_v47, 16  ;;  %v3171_v47 = vld [vmem:[#allocation3 + $0x28] sm:$0x1] }
 0x2a5   :  { %6306 = vmatprep.subr.bf16.mxu1 %v6756_v6 }
 0x2a8   :  { %6307 = vmatpush3.bf16.msra.mxu1 %v6757_v11 }
 0x2a9   :  { %6308 = vmatprep.subr.bf16.mxu1 %v6758_v41 }
 0x2ac   :  { %6309 = vmatpush3.bf16.msra.mxu1 %v6760_v61 }
 0x2ad   :  { %6310 = vmatprep.subr.bf16.mxu1 %v6762_v52 }
 0x2b0   :  { %6311 = vmatpush3.bf16.msra.mxu1 %v6764_v3 }
 0x2b1   :  { %6312 = vmatprep.subr.bf16.mxu1 %v6766_v31 }
 0x2b4   :  { %6313 = vmatpush3.bf16.msra.mxu1 %v6768_v30 }
 0x30d   :  { %v2526_v35 = vpop.permute.xlu0 %2525 }
 0x30e   :  { %v2527_v14 = vadd.f32 %v2526_v35, %v8327_v9  ;;  %v2612_v9 = vlaneseq }
 0x310   :  { %v2600_v50 = vmul.f32 0.001953125, %v2527_v14  ;;  %v2613_v5 = vshrl.u32 %v2612_v9, 7  ;;  %v6770_v9 = vld [vmem:[%s9580_s1 + $0x3b8] sm:$0xff]  }
 0x311   :  { %v2598_v12 = vpop.permute.xlu0 %2597  ;;  %6314 = vmatprep.subr.bf16.mxu1 %v6770_v9  ;;  %v2788_v9 = vld [vmem:[#allocation3 + $0x30] sm:$0x80] }
 0x312   :  { %v2599_v38 = vadd.f32 %v2598_v12, %v8331_v20  ;;  %v2602_v28 = vmul.f32 %v2600_v50, %v2600_v50  ;;  %v2604_v20 = vld [vmem:[%s9583_s2] sm:$0x1]  ;;  %v8442_v2 = vsub.s32 0, %v2613_v5 }
 0x314   :  { %v2601_v26 = vmul.f32 0.001953125, %v2599_v38  ;;  %9632 = vst [vmem:[#allocation5_spill] sm:$0xff] %v8442_v2 }
 0x316   :  { %v2603_v51 = vsub.f32 %v2601_v26, %v2602_v28 }
 0x318   :  { %v2605_v19 = vadd.f32 1e-05, %v2603_v51 }
 0x31a   :  { %6790 = vrsqrt.f32 %v2605_v19 }
 0x324   :  { %v6791_v46 = vpop.eup %6790 }
 0x325   :  { %v2607_v16 = vmul.f32 %v6791_v46, %v2604_v20 }
 0x327   :  { %v2609_v42 = vmul.f32 %v2607_v16, %v2600_v50  ;;  %v2615_v36 = vrot.slane %v2607_v16, %v8442_v2  ;;  %v6772_v16 = vld [vmem:[%s9580_s1 + $0x378] sm:$0xff]  }
 0x328   :  { %6315 = vmatpush3.bf16.msra.mxu1 %v6772_v16 }
 0x329   :  { %v2610_v6 = vsub.f32 %v2608_v34, %v2609_v42  ;;  %v2617_v11 = vmul.f32 %v2615_v36, %v8135_v23  ;;  %v2618_v41 = vmul.f32 %v2615_v36, %v8141_v59  ;;  %v2619_v54 = vmul.f32 %v2615_v36, %v8132_v7 }
 0x32a   :  { %v2620_v61 = vmul.f32 %v2615_v36, %v8138_v53  ;;  %v2621_v35 = vmul.f32 %v2615_v36, %v8162_v49  ;;  %v2622_v14 = vmul.f32 %v2615_v36, %v8172_v44  ;;  %v2623_v50 = vmul.f32 %v2615_v36, %v8157_v27 }
 0x32b   :  { %v2653_v12 = vrot.slane %v2610_v6, %v8442_v2  ;;  %v2624_v38 = vmul.f32 %v2615_v36, %v8166_v33  ;;  %v2625_v28 = vmul.f32 %v2615_v36, %v8186_v29  ;;  %v2626_v23 = vmul.f32 %v2615_v36, %v8196_v48 }
 0x32c   :  { %v2627_v59 = vmul.f32 %v2615_v36, %v8181_v13  ;;  %v2628_v7 = vmul.f32 %v2615_v36, %v8190_v24  ;;  %v2629_v53 = vmul.f32 %v2615_v36, %v8210_v62  ;;  %v2630_v49 = vmul.f32 %v2615_v36, %v8220_v55 }
 0x32d   :  { %v2631_v44 = vmul.f32 %v2615_v36, %v8205_v18  ;;  %v2632_v27 = vmul.f32 %v2615_v36, %v8214_v45  ;;  %v2633_v26 = vmul.f32 %v2615_v36, %v8234_v58  ;;  %v2634_v33 = vmul.f32 %v2615_v36, %v8244_v21 }
 0x32e   :  { %v2635_v29 = vmul.f32 %v2615_v36, %v8229_v25  ;;  %v2636_v48 = vmul.f32 %v2615_v36, %v8238_v39  ;;  %v2637_v13 = vmul.f32 %v2615_v36, %v8258_v60  ;;  %v2638_v24 = vmul.f32 %v2615_v36, %v8268_v63 }
 0x32f   :  { %v2639_v62 = vmul.f32 %v2615_v36, %v8253_v17  ;;  %v2640_v55 = vmul.f32 %v2615_v36, %v8262_v56  ;;  %v2641_v18 = vmul.f32 %v2615_v36, %v8282_v1  ;;  %v2642_v45 = vmul.f32 %v2615_v36, %v8292_v8 }
 0x330   :  { %v2643_v58 = vmul.f32 %v2615_v36, %v8277_v10  ;;  %v2644_v21 = vmul.f32 %v2615_v36, %v8286_v32  ;;  %v2645_v25 = vmul.f32 %v2615_v36, %v8306_v57  ;;  %v2646_v39 = vmul.f32 %v2615_v36, %v8316_v15 }
 0x331   :  { %v2647_v60 = vmul.f32 %v2615_v36, %v8301_v0  ;;  %v2648_v63 = vmul.f32 %v2615_v36, %v8310_v4  ;;  %v8493_v52 = vadd.f32 %v2653_v12, %v2617_v11  ;;  %v8495_v17 = vadd.f32 %v2653_v12, %v2618_v41 }
 0x332   :  { %v8497_v56 = vadd.f32 %v2653_v12, %v2619_v54  ;;  %v8499_v1 = vadd.f32 %v2653_v12, %v2620_v61  ;;  %v8501_v8 = vadd.f32 %v2653_v12, %v2621_v35  ;;  %v8503_v10 = vadd.f32 %v2653_v12, %v2622_v14 }
 0x333   :  { %v8505_v32 = vadd.f32 %v2653_v12, %v2623_v50  ;;  %v8507_v57 = vadd.f32 %v2653_v12, %v2624_v38  ;;  %v8509_v15 = vadd.f32 %v2653_v12, %v2625_v28  ;;  %v8511_v0 = vadd.f32 %v2653_v12, %v2626_v23 }
 0x334   :  { %v8513_v4 = vadd.f32 %v2653_v12, %v2627_v59  ;;  %v8515_v3 = vadd.f32 %v2653_v12, %v2628_v7  ;;  %v8517_v51 = vadd.f32 %v2653_v12, %v2629_v53  ;;  %v8519_v19 = vadd.f32 %v2653_v12, %v2630_v49 }
 0x335   :  { %v2669_v5 = vadd.f32 %v2653_v12, %v2631_v44  ;;  %v2670_v20 = vadd.f32 %v2653_v12, %v2632_v27  ;;  %v2671_v46 = vadd.f32 %v2653_v12, %v2633_v26  ;;  %v2672_v31 = vadd.f32 %v2653_v12, %v2634_v33 }
 0x336   :  { %v2673_v30 = vadd.f32 %v2653_v12, %v2635_v29  ;;  %v2674_v34 = vadd.f32 %v2653_v12, %v2636_v48  ;;  %v2675_v42 = vadd.f32 %v2653_v12, %v2637_v13  ;;  %v2676_v36 = vadd.f32 %v2653_v12, %v2638_v24 }
 0x337   :  { %v2677_v6 = vadd.f32 %v2653_v12, %v2639_v62  ;;  %v2678_v11 = vadd.f32 %v2653_v12, %v2640_v55  ;;  %v2679_v41 = vadd.f32 %v2653_v12, %v2641_v18  ;;  %v2680_v54 = vadd.f32 %v2653_v12, %v2642_v45 }
 0x338   :  { %v2681_v61 = vadd.f32 %v2653_v12, %v2643_v58  ;;  %v2682_v35 = vadd.f32 %v2653_v12, %v2644_v21  ;;  %v2683_v14 = vadd.f32 %v2653_v12, %v2645_v25  ;;  %v2684_v50 = vadd.f32 %v2653_v12, %v2646_v39 }
 0x339   :  { %v2685_v38 = vadd.f32 %v2653_v12, %v2647_v60  ;;  %v2686_v28 = vadd.f32 %v2653_v12, %v2648_v63  ;;  %v2687_v23 = vmax.f32 %v8493_v52, 0.0  ;;  %v2688_v59 = vmax.f32 %v8495_v17, 0.0 }
 0x33a   :  { %v2689_v7 = vmax.f32 %v8497_v56, 0.0  ;;  %v2690_v53 = vmax.f32 %v8499_v1, 0.0  ;;  %v2691_v49 = vmax.f32 %v8501_v8, 0.0  ;;  %v2692_v44 = vmax.f32 %v8503_v10, 0.0 }
 0x33b   :  { %v2693_v27 = vmax.f32 %v8505_v32, 0.0  ;;  %v2694_v26 = vmax.f32 %v8507_v57, 0.0  ;;  %v2695_v33 = vmax.f32 %v8509_v15, 0.0  ;;  %v2696_v12 = vmax.f32 %v8511_v0, 0.0 }
 0x33c   :  { %v2697_v29 = vmax.f32 %v8513_v4, 0.0  ;;  %v2698_v48 = vmax.f32 %v8515_v3, 0.0  ;;  %v2699_v13 = vmax.f32 %v8517_v51, 0.0  ;;  %v2700_v24 = vmax.f32 %v8519_v19, 0.0 }
 0x33d   :  { %v2701_v62 = vmax.f32 %v2669_v5, 0.0  ;;  %v2702_v55 = vmax.f32 %v2670_v20, 0.0  ;;  %v2703_v18 = vmax.f32 %v2671_v46, 0.0  ;;  %v2704_v45 = vmax.f32 %v2672_v31, 0.0 }
 0x33e   :  { %v2705_v58 = vmax.f32 %v2673_v30, 0.0  ;;  %v2706_v21 = vmax.f32 %v2674_v34, 0.0  ;;  %v2707_v25 = vmax.f32 %v2675_v42, 0.0  ;;  %v2708_v39 = vmax.f32 %v2676_v36, 0.0  ;;  %v8573_v36 = vld [vmem:[%s9580_s1 + $0x440] sm:$0xff]  }
 0x33f   :  { %v2709_v60 = vmax.f32 %v2677_v6, 0.0  ;;  %v2710_v63 = vmax.f32 %v2678_v11, 0.0  ;;  %v2711_v52 = vmax.f32 %v2679_v41, 0.0  ;;  %v2712_v17 = vmax.f32 %v2680_v54, 0.0  ;;  %6596 = vmatprep.subr.bf16.mxu1 %v8573_v36 }
 0x340   :  { %v2713_v56 = vmax.f32 %v2681_v61, 0.0  ;;  %v2714_v1 = vmax.f32 %v2682_v35, 0.0  ;;  %v2715_v8 = vmax.f32 %v2683_v14, 0.0  ;;  %v2716_v10 = vmax.f32 %v2684_v50, 0.0 }
 0x341   :  { %v2717_v32 = vmax.f32 %v2685_v38, 0.0  ;;  %v2718_v57 = vmax.f32 %v2686_v28, 0.0  ;;  %v8541_v15 = vpack.c.bf16 %v2688_v59, %v2687_v23  ;;  %v8543_v0 = vpack.c.bf16 %v2690_v53, %v2689_v7 }
 0x342   :  { %v8545_v4 = vpack.c.bf16 %v2692_v44, %v2691_v49  ;;  %v8547_v3 = vpack.c.bf16 %v2694_v26, %v2693_v27  ;;  %v8549_v51 = vpack.c.bf16 %v2696_v12, %v2695_v33  ;;  %v8551_v19 = vpack.c.bf16 %v2698_v48, %v2697_v29  ;;  %v2790_v44 = vld [vmem:[#allocation3 + $0x48] sm:$0x80]  ;;  %v6763_v27 = vld [vmem:[%s9580_s1 + $0x408] sm:$0xff]  }
 0x343   :  { %v8553_v5 = vpack.c.bf16 %v2700_v24, %v2699_v13  ;;  %v8555_v20 = vpack.c.bf16 %v2702_v55, %v2701_v62  ;;  %v8557_v46 = vpack.c.bf16 %v2704_v45, %v2703_v18  ;;  %v8559_v31 = vpack.c.bf16 %v2706_v21, %v2705_v58  ;;  %4247 = vmatprep.mubr.bf16.mxu1 %v8541_v15  ;;  %v6765_v48 = vld [vmem:[%s9580_s1 + $0x3c8] sm:$0xff]   ;;  %v6767_v24 = vld [vmem:[%s9580_s1 + $0x410] sm:$0xff]  }
 0x344   :  { %v8562_v16 = vpack.c.bf16 %v2708_v39, %v2707_v25  ;;  %v8564_v30 = vpack.c.bf16 %v2710_v63, %v2709_v60  ;;  %v8566_v34 = vpack.c.bf16 %v2712_v17, %v2711_v52  ;;  %v8568_v42 = vpack.c.bf16 %v2714_v1, %v2713_v56  ;;  %v3173_v58 = vld [vmem:[#allocation3 + $0x40] sm:$0x1]  ;;  %v2792_v25 = vld [vmem:[#allocation3 + $0x60] sm:$0x80]  ;;  %v6771_v60 = vld [vmem:[%s9580_s1 + $0x418] sm:$0xff]  }
 0x345   :  { %v8575_v6 = vpack.c.bf16 %v2716_v10, %v2715_v8  ;;  %v2734_v11 = vpack.c.bf16 %v2718_v57, %v2717_v32  ;;  %v2837_v41 = vshrl.u32 %v8541_v15, 16  ;;  %v2845_v54 = vshrl.u32 %v2788_v9, 16  ;;  %v6769_v39 = vld [vmem:[%s9580_s1 + $0x3d0] sm:$0xff]   ;;  %v6773_v10 = vld [vmem:[%s9580_s1 + $0x3d8] sm:$0xff]   ;;  %v6774_v57 = vld [vmem:[%s9580_s1 + $0x420] sm:$0xff]  }
 0x346   :  { %2749 = vst [vmem:[#allocation3 + $0x158] sm:$0xff] %v8568_v42  ;;  %v3214_v61 = vrot.slane %v3212_v37, 1  ;;  %v2849_v35 = vshrl.u32 %v8543_v0, 16  ;;  %v2835_v14 = vrot.slane %v2833_v22, 7  ;;  %v2840_v38 = vshll.u32 %v8541_v15, 16 }
 0x347   :  { %9633 = vst [vmem:[#allocation7_spill] sm:$0xff] %v8575_v6  ;;  %2750 = vst [vmem:[#allocation3 + $0x170] sm:$0xff] %v8575_v6  ;;  %v2839_v50 = vrot.slane %v2837_v41, 7  ;;  %v2852_v23 = vshll.u32 %v8543_v0, 16  ;;  %v2847_v7 = vrot.slane %v2845_v54, 7  ;;  %v2861_v37 = vshrl.u32 %v8545_v4, 16 }
 0x348   :  { %2751 = vst [vmem:[#allocation3 + $0x188] sm:$0xff] %v2734_v11  ;;  %v2851_v28 = vrot.slane %v2849_v35, 7  ;;  %v3215_v53 = vsel %vm680_vm1, %v8402_v40, %v3214_v61  ;;  %v3221_v26 = vrot.slane %v2840_v38, 1  ;;  %v3224_v33 = vshll.u32 %v3171_v47, 16  ;;  %v3175_v61 = vld [vmem:[#allocation3 + $0x58] sm:$0x1] }
 0x349   :  { %v2842_v59 = vor.u32 %v2840_v38, %v2839_v50  ;;  %v2857_v12 = vshrl.u32 %v2790_v44, 16  ;;  %v2863_v29 = vrot.slane %v2861_v37, 7  ;;  %v2864_v13 = vshll.u32 %v8545_v4, 16  ;;  %v2794_v50 = vld [vmem:[#allocation3 + $0x78] sm:$0x80]  ;;  %v6775_v38 = vld [vmem:[%s9580_s1 + $0x3e0] sm:$0xff]  }
 0x34a   :  { %v2854_v49 = vor.u32 %v2852_v23, %v2851_v28  ;;  %v3222_v62 = vor.u32 %v3221_v26, %v2837_v41  ;;  %v3226_v55 = vrot.slane %v3224_v33, 1  ;;  %v2873_v21 = vshrl.u32 %v8547_v3, 16  ;;  %v6776_v28 = vld [vmem:[%s9580_s1 + $0x428] sm:$0xff]   ;;  %v3177_v33 = vld [vmem:[#allocation3 + $0x70] sm:$0x1] }
 0x34b   :  { %v2843_v22 = vsel %vm295_vm0, %v2835_v14, %v2842_v59  ;;  %v2859_v18 = vrot.slane %v2857_v12, 7  ;;  %v2866_v45 = vor.u32 %v2864_v13, %v2863_v29  ;;  %v3233_v52 = vrot.slane %v2852_v23, 1 }
 0x34c   :  { %4248 = vmatmul.mubr.bf16.gmra.mrb[132].mxu1 %v2843_v22  ;;  %4400 = vmatprep.mubr.bf16.mxu0 %v2843_v22  ;;  %v8600_v40 = vsel %vm295_vm0, %v2847_v7, %v2854_v49  ;;  %v8621_v63 = vsel %vm680_vm1, %v3222_v62, %v3226_v55  ;;  %v3236_v17 = vshll.u32 %v3173_v58, 16  ;;  %v2869_v1 = vshrl.u32 %v2792_v25, 16  ;;  %v6777_v49 = vld [vmem:[%s9580_s1 + $0x3e8] sm:$0xff]   ;;  %v6779_v22 = vld [vmem:[%s9580_s1 + $0x430] sm:$0xff]  }
 0x34d   :  { %4255 = vmatprep.mubr.bf16.mxu1 %v8543_v0  ;;  %4401 = vmatmul.mubr.bf16.vlgmr.msra.gmra.mrb[160].mxu0 %v3215_v53  ;;  %v8626_v56 = vsel %vm295_vm0, %v2859_v18, %v2866_v45  ;;  %v2875_v8 = vrot.slane %v2873_v21, 7  ;;  %v2876_v32 = vshll.u32 %v8547_v3, 16  ;;  %v3234_v9 = vor.u32 %v3233_v52, %v2849_v35  ;;  %v6780_v62 = vld [vmem:[%s9580_s1 + $0x3f0] sm:$0xff]  }
 0x34e   :  { %4408 = vmatprep.mubr.bf16.mxu0 %v8600_v40  ;;  %6413 = vmatpush3.bf16.msra.mxu0 %v6761_v43  ;;  %v3238_v11 = vrot.slane %v3236_v17, 1  ;;  %v2871_v41 = vrot.slane %v2869_v1, 7  ;;  %v2885_v14 = vshrl.u32 %v8549_v51, 16  ;;  %v3245_v23 = vrot.slane %v2864_v13, 1  ;;  %v2796_v13 = vld [vmem:[#allocation3 + $0x90] sm:$0x80] }
 0x34f   :  { %6414 = vmatprep.subr.bf16.mxu0 %v6763_v27  ;;  %v2878_v54 = vor.u32 %v2876_v32, %v2875_v8  ;;  %v3248_v59 = vshll.u32 %v3175_v61, 16  ;;  %v2881_v47 = vshrl.u32 %v2794_v50, 16  ;;  %v2888_v44 = vshll.u32 %v8549_v51, 16  ;;  %v8661_v43 = vld [vmem:[#allocation3 + $0x188] sm:$0xff] }
 0x350   :  { %v8647_v35 = vsel %vm680_vm1, %v3234_v9, %v3238_v11  ;;  %v2887_v53 = vrot.slane %v2885_v14, 7  ;;  %v3246_v27 = vor.u32 %v3245_v23, %v2861_v37  ;;  %v3260_v55 = vshll.u32 %v3177_v33, 16  ;;  %v6781_v37 = vld [vmem:[%s9580_s1 + $0x438] sm:$0xff]  }
 0x351   :  { %v8652_v7 = vsel %vm295_vm0, %v2871_v41, %v2878_v54  ;;  %v3250_v26 = vrot.slane %v3248_v59, 1  ;;  %v2883_v12 = vrot.slane %v2881_v47, 7  ;;  %v3257_v45 = vrot.slane %v2876_v32, 1  ;;  %v6782_v17 = vld [vmem:[%s9580_s1 + $0x3f8] sm:$0xff]  }
 0x352   :  { %6415 = vmatpush3.bf16.msra.mxu0 %v6765_v48  ;;  %v2890_v29 = vor.u32 %v2888_v44, %v2887_v53  ;;  %v2897_v48 = vshrl.u32 %v8551_v19, 16  ;;  %v9602_v58 = vshrl.u32 %v8661_v43, 16  ;;  %v2900_v8 = vshll.u32 %v8551_v19, 16  ;;  %v3179_v11 = vld [vmem:[#allocation3 + $0x88] sm:$0x1] }
 0x353   :  { %6416 = vmatprep.subr.bf16.mxu0 %v6767_v24  ;;  %v9601_v24 = vshll.u32 %v8661_v43, 16  ;;  %v8678_v18 = vsel %vm680_vm1, %v3246_v27, %v3250_v26  ;;  %v3262_v32 = vrot.slane %v3260_v55, 1  ;;  %v2909_v41 = vshrl.u32 %v8553_v5, 16  ;;  %v2798_v54 = vld [vmem:[#allocation3 + $0xa8] sm:$0x80] }
 0x354   :  { %4256 = vmatmul.mubr.bf16.gmra.mrb[136].mxu1 %v8600_v40  ;;  %v2899_v52 = vrot.slane %v2897_v48, 7  ;;  %v3269_v50 = vrot.slane %v2888_v44, 1  ;;  %v2912_v59 = vshll.u32 %v8553_v5, 16  ;;  %v2921_v27 = vshrl.u32 %v8555_v20, 16  ;;  %v2800_v26 = vld [vmem:[#allocation3 + $0xc0] sm:$0x80] }
 0x355   :  { %4263 = vmatprep.mubr.bf16.mxu1 %v8545_v4  ;;  %4409 = vmatmul.mubr.bf16.gmra.mrb[164].mxu0 %v8621_v63  ;;  %v3433_v25 = vrot.slane %v9601_v24, 1  ;;  %v2911_v23 = vrot.slane %v2909_v41, 7  ;;  %v2924_v55 = vshll.u32 %v8555_v20, 16 }
 0x356   :  { %4416 = vmatprep.mubr.bf16.mxu0 %v8626_v56  ;;  %6417 = vmatpush3.bf16.msra.mxu0 %v6769_v39  ;;  %v8686_v39 = vsel %vm295_vm0, %v2883_v12, %v2890_v29  ;;  %v2902_v9 = vor.u32 %v2900_v8, %v2899_v52  ;;  %v3270_v47 = vor.u32 %v3269_v50, %v2885_v14  ;;  %v3281_v12 = vrot.slane %v2900_v8, 1  ;;  %v3183_v52 = vld [vmem:[#allocation3 + $0xb8] sm:$0x1]  ;;  %v2802_v8 = vld [vmem:[#allocation3 + $0xd8] sm:$0x80] }
 0x357   :  { %6418 = vmatprep.subr.bf16.mxu0 %v6771_v60  ;;  %v2893_v60 = vshrl.u32 %v2796_v13, 16  ;;  %v8694_v1 = vor.u32 %v3433_v25, %v9602_v58  ;;  %v2914_v44 = vor.u32 %v2912_v59, %v2911_v23  ;;  %v2917_v13 = vshrl.u32 %v2800_v26, 16  ;;  %v2814_v58 = vld [vmem:[#allocation3 + $0x168] sm:$0x80] }
 0x359   :  { %9634 = vst [vmem:[#allocation6_spill] sm:$0xff] %v8694_v1  ;;  %v2919_v25 = vrot.slane %v2917_v13, 7 }
 0x35a   :  { %6419 = vmatpush3.bf16.msra.mxu0 %v6773_v10  ;;  %v3258_v10 = vor.u32 %v3257_v45, %v2873_v21 }
 0x35b   :  { %6420 = vmatprep.subr.bf16.mxu0 %v6774_v57  ;;  %v2895_v57 = vrot.slane %v2893_v60, 7 }
 0x35c   :  { %4264 = vmatmul.mubr.bf16.gmra.mrb[140].mxu1 %v8626_v56  ;;  %v8702_v61 = vsel %vm680_vm1, %v3258_v10, %v3262_v32  ;;  %v3293_v32 = vrot.slane %v2912_v59, 1  ;;  %v2945_v59 = vshrl.u32 %v8559_v31, 16 }
 0x35d   :  { %4271 = vmatprep.mubr.bf16.mxu1 %v8547_v3  ;;  %4417 = vmatmul.mubr.bf16.gmra.mrb[168].mxu0 %v8647_v35  ;;  %v8707_v21 = vsel %vm295_vm0, %v2895_v57, %v2902_v9  ;;  %v3296_v57 = vshll.u32 %v3183_v52, 16  ;;  %v2929_v9 = vshrl.u32 %v2802_v8, 16 }
 0x35e   :  { %4424 = vmatprep.mubr.bf16.mxu0 %v8652_v7  ;;  %6421 = vmatpush3.bf16.msra.mxu0 %v6775_v38  ;;  %v3272_v38 = vshll.u32 %v3179_v11, 16  ;;  %v3294_v50 = vor.u32 %v3293_v32, %v2909_v41 }
 0x35f   :  { %6422 = vmatprep.subr.bf16.mxu0 %v6776_v28  ;;  %v2905_v28 = vshrl.u32 %v2798_v54, 16  ;;  %v2936_v54 = vshll.u32 %v8557_v46, 16 }
 0x360   :  { %v3274_v53 = vrot.slane %v3272_v38, 1  ;;  %v3298_v38 = vrot.slane %v3296_v57, 1 }
 0x361   :  { %v3317_v8 = vrot.slane %v2936_v54, 1 }
 0x362   :  { %6423 = vmatpush3.bf16.msra.mxu0 %v6777_v49  ;;  %v2907_v49 = vrot.slane %v2905_v28, 7  ;;  %v8716_v33 = vsel %vm680_vm1, %v3270_v47, %v3274_v53  ;;  %v2931_v28 = vrot.slane %v2929_v9, 7  ;;  %v3185_v47 = vld [vmem:[#allocation3 + $0xd0] sm:$0x1]  ;;  %v2804_v53 = vld [vmem:[#allocation3 + $0xf0] sm:$0x80] }
 0x363   :  { %6424 = vmatprep.subr.bf16.mxu0 %v6779_v22  ;;  %v3181_v22 = vld [vmem:[#allocation3 + $0xa0] sm:$0x1]  ;;  %v2941_v26 = vshrl.u32 %v2804_v53, 16  ;;  %v2808_v53 = vld [vmem:[#allocation3 + $0x120] sm:$0x80] }
 0x364   :  { %4272 = vmatmul.mubr.bf16.gmra.mrb[144].mxu1 %v8652_v7  ;;  %v3284_v29 = vshll.u32 %v3181_v22, 16  ;;  %v8721_v14 = vsel %vm295_vm0, %v2907_v49, %v2914_v44  ;;  %v8740_v49 = vsel %vm680_vm1, %v3294_v50, %v3298_v38  ;;  %v3305_v44 = vrot.slane %v2924_v55, 1 }
 0x365   :  { %4279 = vmatprep.mubr.bf16.mxu1 %v8549_v51  ;;  %4425 = vmatmul.mubr.bf16.gmra.mrb[172].mxu0 %v8678_v18  ;;  %v3308_v22 = vshll.u32 %v3185_v47, 16  ;;  %v3189_v47 = vld [vmem:[#allocation3 + $0x100] sm:$0x1] }
 0x366   :  { %4432 = vmatprep.mubr.bf16.mxu0 %v8686_v39  ;;  %6425 = vmatpush3.bf16.msra.mxu0 %v6780_v62  ;;  %v2923_v62 = vrot.slane %v2921_v27, 7  ;;  %v3286_v45 = vrot.slane %v3284_v29, 1  ;;  %v2948_v29 = vshll.u32 %v8559_v31, 16  ;;  %v3306_v13 = vor.u32 %v3305_v44, %v2921_v27 }
 0x367   :  { %6426 = vmatprep.subr.bf16.mxu0 %v6781_v37  ;;  %v3282_v37 = vor.u32 %v3281_v12, %v2897_v48  ;;  %v2947_v12 = vrot.slane %v2945_v59, 7 }
 0x368   :  { %v2926_v60 = vor.u32 %v2924_v55, %v2923_v62  ;;  %v3310_v62 = vrot.slane %v3308_v22, 1  ;;  %v2957_v55 = vshrl.u32 %v8562_v16, 16  ;;  %v3329_v22 = vrot.slane %v2948_v29, 1 }
 0x369   :  { %v8728_v10 = vsel %vm680_vm1, %v3282_v37, %v3286_v45  ;;  %v2943_v37 = vrot.slane %v2941_v26, 7  ;;  %v2950_v45 = vor.u32 %v2948_v29, %v2947_v12  ;;  %v3332_v26 = vshll.u32 %v3189_v47, 16 }
 0x36a   :  { %6427 = vmatpush3.bf16.msra.mxu0 %v6782_v17  ;;  %v2933_v17 = vshrl.u32 %v8557_v46, 16  ;;  %v8733_v48 = vsel %vm295_vm0, %v2919_v25, %v2926_v60  ;;  %v3187_v25 = vld [vmem:[#allocation3 + $0xe8] sm:$0x1]  ;;  %v2806_v60 = vld [vmem:[#allocation3 + $0x108] sm:$0x80]  ;;  %v8752_v52 = vsel %vm680_vm1, %v3306_v13, %v3310_v62  ;;  %v2959_v9 = vrot.slane %v2957_v55, 7 }
 0x36b   :  { %v3320_v32 = vshll.u32 %v3187_v25, 16  ;;  %v8757_v27 = vsel %vm295_vm0, %v2943_v37, %v2950_v45  ;;  %v2953_v57 = vshrl.u32 %v2806_v60, 16  ;;  %v2965_v12 = vshrl.u32 %v2808_v53, 16  ;;  %v6092_v62 = vpop.f32.mrb[128].mxu1 }
 0x36c   :  { %4280 = vmatmul.mubr.bf16.gmra.mrb[148].mxu1 %v8686_v39  ;;  %v2935_v11 = vrot.slane %v2933_v17, 7  ;;  %v3318_v50 = vor.u32 %v3317_v8, %v2933_v17  ;;  %v2972_v37 = vshll.u32 %v8564_v30, 16  ;;  %v6093_v45 = vpop.f32.mrb[129].mxu1  ;;  %v3330_v25 = vor.u32 %v3329_v22, %v2945_v59 }
 0x36d   :  { %4287 = vmatprep.mubr.bf16.mxu1 %v8551_v19  ;;  %4433 = vmatmul.mubr.bf16.gmra.mrb[176].mxu0 %v8702_v61  ;;  %v3322_v38 = vrot.slane %v3320_v32, 1  ;;  %v3334_v60 = vrot.slane %v3332_v26, 1  ;;  %v8773_v8 = vadd.f32 %v6093_v45, %v6092_v62  ;;  %v6095_v29 = vpop.f32.mrb[130].mxu1  ;;  %v2967_v32 = vrot.slane %v2965_v12, 7 }
 0x36e   :  { %4440 = vmatprep.mubr.bf16.mxu0 %v8707_v21  ;;  %v2938_v23 = vor.u32 %v2936_v54, %v2935_v11  ;;  %v2960_v11 = vshll.u32 %v8562_v16, 16  ;;  %v2969_v54 = vshrl.u32 %v8564_v30, 16 }
 0x36f   :  { %v8764_v44 = vsel %vm680_vm1, %v3318_v50, %v3322_v38  ;;  %v2981_v50 = vshrl.u32 %v8566_v34, 16  ;;  %v6096_v38 = vpop.f32.mrb[131].mxu1  ;;  %v8780_v47 = vsel %vm680_vm1, %v3330_v25, %v3334_v60  ;;  %v3193_v60 = vld [vmem:[#allocation3 + $0x130] sm:$0x1] }
 0x370   :  { %v8745_v41 = vsel %vm295_vm0, %v2931_v28, %v2938_v23  ;;  %v2955_v28 = vrot.slane %v2953_v57, 7  ;;  %v2962_v23 = vor.u32 %v2960_v11, %v2959_v9  ;;  %v2971_v13 = vrot.slane %v2969_v54, 7  ;;  %v3191_v9 = vld [vmem:[#allocation3 + $0x118] sm:$0x1] }
 0x371   :  { %v3341_v53 = vrot.slane %v2960_v11, 1  ;;  %v3344_v59 = vshll.u32 %v3191_v9, 16  ;;  %v2983_v12 = vrot.slane %v2981_v50, 7  ;;  %v2993_v11 = vshrl.u32 %v8568_v42, 16  ;;  %v2812_v9 = vld [vmem:[#allocation3 + $0x150] sm:$0x80] }
 0x372   :  { %v8769_v17 = vsel %vm295_vm0, %v2955_v28, %v2962_v23  ;;  %v2974_v57 = vor.u32 %v2972_v37, %v2971_v13  ;;  %v2810_v28 = vld [vmem:[#allocation3 + $0x138] sm:$0x80]  ;;  %v8776_v23 = vadd.f32 %v6096_v38, %v6095_v29  ;;  %v2984_v13 = vshll.u32 %v8566_v34, 16 }
 0x373   :  { %v2977_v26 = vshrl.u32 %v2810_v28, 16  ;;  %v3342_v62 = vor.u32 %v3341_v53, %v2957_v55  ;;  %v3346_v45 = vrot.slane %v3344_v59, 1  ;;  %v2989_v28 = vshrl.u32 %v2812_v9, 16  ;;  %v2815_v59 = vld [vmem:[#allocation3 + $0x170] sm:$0xff] }
 0x374   :  { %4288 = vmatmul.mubr.bf16.gmra.mrb[152].mxu1 %v8707_v21  ;;  %v8785_v22 = vsel %vm295_vm0, %v2967_v32, %v2974_v57  ;;  %v2986_v25 = vor.u32 %v2984_v13, %v2983_v12  ;;  %v3353_v32 = vrot.slane %v2972_v37, 1  ;;  %v3356_v57 = vshll.u32 %v3193_v60, 16  ;;  %v3195_v37 = vld [vmem:[#allocation3 + $0x148] sm:$0x1] }
 0x375   :  { %4295 = vmatprep.mubr.bf16.mxu1 %v8553_v5  ;;  %4441 = vmatmul.mubr.bf16.gmra.mrb[180].mxu0 %v8716_v33  ;;  %v2979_v29 = vrot.slane %v2977_v26, 7  ;;  %v8792_v38 = vsel %vm680_vm1, %v3342_v62, %v3346_v45  ;;  %v2995_v53 = vrot.slane %v2993_v11, 7  ;;  %v2996_v26 = vshll.u32 %v8568_v42, 16 }
 0x376   :  { %4448 = vmatprep.mubr.bf16.mxu0 %v8721_v14  ;;  %v3354_v12 = vor.u32 %v3353_v32, %v2969_v54  ;;  %v3358_v24 = vrot.slane %v3356_v57, 1  ;;  %v2991_v62 = vrot.slane %v2989_v28, 7  ;;  %v3005_v60 = vshrl.u32 %v2815_v59, 16  ;;  %v3196_v32 = vld [vmem:[#allocation3 + $0x158] sm:$0xff] }
 0x377   :  { %v8797_v55 = vsel %vm295_vm0, %v2979_v29, %v2986_v25  ;;  %v2998_v45 = vor.u32 %v2996_v26, %v2995_v53  ;;  %v3365_v29 = vrot.slane %v2984_v13, 1  ;;  %v3368_v25 = vshll.u32 %v3195_v37, 16  ;;  %v3197_v13 = vld [vmem:[#allocation3 + $0x160] sm:$0x1]  ;;  %v2816_v37 = vld [vmem:[#allocation3 + $0x180] sm:$0x80] }
 0x378   :  { %v8803_v2 = vsel %vm680_vm1, %v3354_v12, %v3358_v24  ;;  %v3001_v54 = vshrl.u32 %v2814_v58, 16  ;;  %v3007_v9 = vrot.slane %v3005_v60, 7  ;;  %v3008_v57 = vshll.u32 %v2815_v59, 16 }
 0x379   :  { %v8808_v11 = vsel %vm295_vm0, %v2991_v62, %v2998_v45  ;;  %v3366_v28 = vor.u32 %v3365_v29, %v2981_v50  ;;  %v3370_v53 = vrot.slane %v3368_v25, 1  ;;  %v3375_v26 = vshll.u32 %v3196_v32, 16 }
 0x37a   :  { %v3003_v24 = vrot.slane %v3001_v54, 7  ;;  %v3010_v12 = vor.u32 %v3008_v57, %v3007_v9  ;;  %v3380_v45 = vshll.u32 %v3197_v13, 16  ;;  %v3045_v50 = vshrl.u32 %v2816_v37, 16  ;;  %v3199_v13 = vld [vmem:[#allocation3 + $0x178] sm:$0x1] }
 0x37b   :  { %v8813_v1 = vsel %vm680_vm1, %v3366_v28, %v3370_v53  ;;  %v3377_v62 = vrot.slane %v3375_v26, 1  ;;  %v9635_v59 = vshrl.u32 %v8661_v43, 16  ;;  %v3373_v25 = vshrl.u32 %v3196_v32, 16 }
 0x37c   :  { %4296 = vmatmul.mubr.bf16.gmra.mrb[156].mxu1 %v8721_v14  ;;  %v8818_v58 = vsel %vm295_vm0, %v3003_v24, %v3010_v12  ;;  %v3382_v9 = vrot.slane %v3380_v45, 1  ;;  %v3047_v28 = vrot.slane %v3045_v50, 7  ;;  %v9636_v53 = vshll.u32 %v8661_v43, 16  ;;  %v6783_v45 = vld [vmem:[%s9580_s1 + $0x448] sm:$0xff]  }
 0x37d   :  { %4303 = vmatprep.mubr.bf16.mxu1 %v8555_v20  ;;  %4449 = vmatmul.mubr.bf16.gmra.mrb[184].mxu0 %v8728_v10  ;;  %v3051_v29 = vrot.slane %v9635_v59, 7  ;;  %v3378_v54 = vor.u32 %v3377_v62, %v3373_v25  ;;  %v3389_v24 = vrot.slane %v3008_v57, 1  ;;  %v3392_v12 = vshll.u32 %v3199_v13, 16 }
 0x37e   :  { %4456 = vmatprep.mubr.bf16.mxu0 %v8733_v48 }
 0x37f   :  { %v3054_v26 = vor.u32 %v9636_v53, %v3051_v29  ;;  %v3390_v37 = vor.u32 %v3389_v24, %v3005_v60  ;;  %v3394_v62 = vrot.slane %v3392_v12, 1  ;;  %v6787_v60 = vld [vmem:[%s9580_s1 + $0x468] sm:$0xff]  }
 0x381   :  { %v8832_v32 = vsel %vm295_vm0, %v3047_v28, %v3054_v26  ;;  %v8840_v57 = vsel %vm680_vm1, %v3390_v37, %v3394_v62  ;;  %v9637_v28 = vld [vmem:[#allocation7_spill] sm:$0xff] }
 0x384   :  { %4304 = vmatmul.mubr.bf16.gmra.mrb[160].mxu1 %v8733_v48 }
 0x385   :  { %4311 = vmatprep.mubr.bf16.mxu1 %v8557_v46  ;;  %4457 = vmatmul.mubr.bf16.gmra.mrb[188].mxu0 %v8740_v49 }
 0x386   :  { %4464 = vmatprep.mubr.bf16.mxu0 %v8745_v41 }
 0x38c   :  { %4312 = vmatmul.mubr.bf16.gmra.mrb[164].mxu1 %v8745_v41 }
 0x38d   :  { %4319 = vmatprep.mubr.bf16.mxu1 %v8559_v31  ;;  %4465 = vmatmul.mubr.bf16.gmra.mrb[192].mxu0 %v8752_v52 }
 0x38e   :  { %4472 = vmatprep.mubr.bf16.mxu0 %v8757_v27 }
 0x394   :  { %4320 = vmatmul.mubr.bf16.gmra.mrb[168].mxu1 %v8757_v27 }
 0x395   :  { %4327 = vmatprep.mubr.bf16.mxu1 %v8562_v16  ;;  %4473 = vmatmul.mubr.bf16.gmra.mrb[196].mxu0 %v8764_v44 }
 0x396   :  { %4480 = vmatprep.mubr.bf16.mxu0 %v8769_v17 }
 0x39c   :  { %4328 = vmatmul.mubr.bf16.gmra.mrb[172].mxu1 %v8769_v17 }
 0x39d   :  { %4335 = vmatprep.mubr.bf16.mxu1 %v8564_v30  ;;  %4481 = vmatmul.mubr.bf16.gmra.mrb[200].mxu0 %v8780_v47 }
 0x39e   :  { %4488 = vmatprep.mubr.bf16.mxu0 %v8785_v22 }
 0x3a4   :  { %4336 = vmatmul.mubr.bf16.gmra.mrb[176].mxu1 %v8785_v22 }
 0x3a5   :  { %4343 = vmatprep.mubr.bf16.mxu1 %v8566_v34  ;;  %4489 = vmatmul.mubr.bf16.gmra.mrb[204].mxu0 %v8792_v38 }
 0x3a6   :  { %4496 = vmatprep.mubr.bf16.mxu0 %v8797_v55 }
 0x3ac   :  { %4344 = vmatmul.mubr.bf16.gmra.mrb[180].mxu1 %v8797_v55 }
 0x3ad   :  { %4351 = vmatprep.mubr.bf16.mxu1 %v8568_v42  ;;  %4497 = vmatmul.mubr.bf16.gmra.mrb[208].mxu0 %v8803_v2 }
 0x3ae   :  { %4504 = vmatprep.mubr.bf16.mxu0 %v8808_v11 }
 0x3b4   :  { %4352 = vmatmul.mubr.bf16.gmra.mrb[184].mxu1 %v8808_v11 }
 0x3b5   :  { %4359 = vmatprep.mubr.bf16.mxu1 %v8575_v6  ;;  %4505 = vmatmul.mubr.bf16.gmra.mrb[212].mxu0 %v8813_v1  ;;  %v8827_v6 = vsel %vm680_vm1, %v3378_v54, %v3382_v9 }
 0x3b6   :  { %4512 = vmatprep.mubr.bf16.mxu0 %v8818_v58 }
 0x3bc   :  { %4360 = vmatmul.mubr.bf16.gmra.mrb[188].mxu1 %v8818_v58 }
 0x3bd   :  { %4513 = vmatmul.mubr.bf16.gmra.mrb[216].mxu0 %v8827_v6  ;;  %4561 = vmatprep.mubr.bf16.mxu1 %v8621_v63  ;;  %v6784_v63 = vld [vmem:[%s9580_s1 + $0x450] sm:$0xff]  }
 0x3be   :  { %4520 = vmatprep.mubr.bf16.mxu0 %v8832_v32 }
 0x3c4   :  { %4562 = vmatmul.mubr.bf16.vlgmr.msra.gmra.mrb[192].mxu1 %v8541_v15  ;;  %v6785_v15 = vld [vmem:[%s9580_s1 + $0x458] sm:$0xff]  }
 0x3c5   :  { %4521 = vmatmul.mubr.bf16.gmra.mrb[220].mxu0 %v8840_v57  ;;  %4569 = vmatprep.mubr.bf16.mxu1 %v8647_v35 }
 0x3c6   :  { %6597 = vmatpush3.bf16.msra.mxu1 %v8573_v36  ;;  %4722 = vmatprep.mubr.bf16.mxu0 %v8543_v0  ;;  %v6786_v36 = vld [vmem:[%s9580_s1 + $0x460] sm:$0xff]  }
 0x3c7   :  { %6598 = vmatprep.subr.bf16.mxu1 %v6783_v45 }
 0x3ca   :  { %6599 = vmatpush3.bf16.msra.mxu1 %v6783_v45 }
 0x3cb   :  { %6600 = vmatprep.subr.bf16.mxu1 %v6784_v63 }
 0x3cc   :  { %4570 = vmatmul.mubr.bf16.gmra.mrb[196].mxu1 %v8543_v0  ;;  %v6788_v0 = vld [vmem:[%s9580_s1 + $0x470] sm:$0xff]  }
 0x3cd   :  { %4577 = vmatprep.mubr.bf16.mxu1 %v8678_v18  ;;  %4723 = vmatmul.mubr.bf16.vlgmr.msra.gmra.mrb[224].mxu0 %v8600_v40  ;;  %v6789_v40 = vld [vmem:[%s9580_s1 + $0x478] sm:$0xff]  }
 0x3ce   :  { %4730 = vmatprep.mubr.bf16.mxu0 %v8545_v4  ;;  %6601 = vmatpush3.bf16.msra.mxu1 %v6784_v63 }
 0x3cf   :  { %6602 = vmatprep.subr.bf16.mxu1 %v6785_v15 }
 0x3d2   :  { %6603 = vmatpush3.bf16.msra.mxu1 %v6785_v15 }
 0x3d3   :  { %6604 = vmatprep.subr.bf16.mxu1 %v6786_v36 }
 0x3d4   :  { %4578 = vmatmul.mubr.bf16.gmra.mrb[200].mxu1 %v8545_v4 }
 0x3d5   :  { %4585 = vmatprep.mubr.bf16.mxu1 %v8702_v61  ;;  %4731 = vmatmul.mubr.bf16.gmra.mrb[228].mxu0 %v8626_v56 }
 0x3d6   :  { %4738 = vmatprep.mubr.bf16.mxu0 %v8547_v3  ;;  %6605 = vmatpush3.bf16.msra.mxu1 %v6786_v36 }
 0x3d7   :  { %6606 = vmatprep.subr.bf16.mxu1 %v6787_v60 }
 0x3da   :  { %6607 = vmatpush3.bf16.msra.mxu1 %v6787_v60 }
 0x3db   :  { %6608 = vmatprep.subr.bf16.mxu1 %v6788_v0 }
 0x3dc   :  { %4586 = vmatmul.mubr.bf16.gmra.mrb[204].mxu1 %v8547_v3 }
 0x3dd   :  { %4593 = vmatprep.mubr.bf16.mxu1 %v8716_v33  ;;  %4739 = vmatmul.mubr.bf16.gmra.mrb[232].mxu0 %v8652_v7 }
 0x3de   :  { %4746 = vmatprep.mubr.bf16.mxu0 %v8549_v51  ;;  %6609 = vmatpush3.bf16.msra.mxu1 %v6788_v0 }
 0x3df   :  { %6610 = vmatprep.subr.bf16.mxu1 %v6789_v40 }
 0x3e2   :  { %6611 = vmatpush3.bf16.msra.mxu1 %v6789_v40 }
 0x3e4   :  { %4594 = vmatmul.mubr.bf16.gmra.mrb[208].mxu1 %v8549_v51 }
 0x3e5   :  { %4601 = vmatprep.mubr.bf16.mxu1 %v8728_v10  ;;  %4747 = vmatmul.mubr.bf16.gmra.mrb[236].mxu0 %v8686_v39 }
 0x3e6   :  { %4754 = vmatprep.mubr.bf16.mxu0 %v8551_v19 }
 0x3ec   :  { %4602 = vmatmul.mubr.bf16.gmra.mrb[212].mxu1 %v8551_v19 }
 0x3ed   :  { %4609 = vmatprep.mubr.bf16.mxu1 %v8740_v49  ;;  %4755 = vmatmul.mubr.bf16.gmra.mrb[240].mxu0 %v8707_v21 }
 0x3ee   :  { %4762 = vmatprep.mubr.bf16.mxu0 %v8553_v5 }
 0x3f4   :  { %4610 = vmatmul.mubr.bf16.gmra.mrb[216].mxu1 %v8553_v5 }
 0x3f5   :  { %4617 = vmatprep.mubr.bf16.mxu1 %v8752_v52  ;;  %4763 = vmatmul.mubr.bf16.gmra.mrb[244].mxu0 %v8721_v14 }
 0x3f6   :  { %4770 = vmatprep.mubr.bf16.mxu0 %v8555_v20 }
 0x3fc   :  { %4618 = vmatmul.mubr.bf16.gmra.mrb[220].mxu1 %v8555_v20 }
 0x3fd   :  { %4625 = vmatprep.mubr.bf16.mxu1 %v8764_v44  ;;  %4771 = vmatmul.mubr.bf16.gmra.mrb[248].mxu0 %v8733_v48 }
 0x3fe   :  { %4778 = vmatprep.mubr.bf16.mxu0 %v8557_v46 }
 0x404   :  { %4626 = vmatmul.mubr.bf16.gmra.mrb[224].mxu1 %v8557_v46 }
 0x405   :  { %4633 = vmatprep.mubr.bf16.mxu1 %v8780_v47  ;;  %4779 = vmatmul.mubr.bf16.gmra.mrb[252].mxu0 %v8745_v41 }
 0x406   :  { %4786 = vmatprep.mubr.bf16.mxu0 %v8559_v31 }
 0x40c   :  { %4634 = vmatmul.mubr.bf16.gmra.mrb[228].mxu1 %v8559_v31 }
 0x40d   :  { %4641 = vmatprep.mubr.bf16.mxu1 %v8792_v38  ;;  %4787 = vmatmul.mubr.bf16.gmra.mrb[0].mxu0 %v8757_v27 }
 0x40e   :  { %4794 = vmatprep.mubr.bf16.mxu0 %v8562_v16 }
 0x414   :  { %4642 = vmatmul.mubr.bf16.gmra.mrb[232].mxu1 %v8562_v16 }
 0x415   :  { %4649 = vmatprep.mubr.bf16.mxu1 %v8803_v2  ;;  %4795 = vmatmul.mubr.bf16.gmra.mrb[4].mxu0 %v8769_v17 }
 0x416   :  { %4802 = vmatprep.mubr.bf16.mxu0 %v8564_v30 }
 0x41c   :  { %4650 = vmatmul.mubr.bf16.gmra.mrb[236].mxu1 %v8564_v30 }
 0x41d   :  { %4657 = vmatprep.mubr.bf16.mxu1 %v8813_v1  ;;  %4803 = vmatmul.mubr.bf16.gmra.mrb[8].mxu0 %v8785_v22 }
 0x41e   :  { %4810 = vmatprep.mubr.bf16.mxu0 %v8566_v34 }
 0x41f   :  { %v6098_v4 = vpop.f32.mrb[132].mxu1 }
 0x420   :  { %v6099_v3 = vpop.f32.mrb[133].mxu1  ;;  %v6204_v51 = vpop.f32.mrb[160].mxu0 }
 0x421   :  { %v6100_v19 = vadd.f32 %v6099_v3, %v6098_v4  ;;  %v6101_v5 = vpop.f32.mrb[134].mxu1  ;;  %v6205_v20 = vpop.f32.mrb[161].mxu0  ;;  %v8938_v3 = vld [vmem:[#allocation2 + $0x8] sm:$0xff] }
 0x422   :  { %v6206_v46 = vadd.f32 %v6205_v20, %v6204_v51  ;;  %v6102_v31 = vpop.f32.mrb[135].mxu1  ;;  %v6207_v16 = vpop.f32.mrb[162].mxu0  ;;  %v3078_v51 = vshrl.u32 %v8938_v3, 16 }
 0x423   :  { %v6103_v56 = vadd.f32 %v6102_v31, %v6101_v5  ;;  %v6208_v7 = vpop.f32.mrb[163].mxu0  ;;  %v2818_v5 = vld [vmem:[#allocation3 + $0x198] sm:$0x80] }
 0x424   :  { %v8909_v39 = vadd.f32 %v6206_v46, %v8773_v8  ;;  %v6209_v30 = vadd.f32 %v6208_v7, %v6207_v16  ;;  %4658 = vmatmul.mubr.bf16.gmra.mrb[240].mxu1 %v8566_v34  ;;  %v3201_v8 = vld [vmem:[#allocation3 + $0x190] sm:$0x1] }
 0x425   :  { %4665 = vmatprep.mubr.bf16.mxu1 %v8827_v6  ;;  %4811 = vmatmul.mubr.bf16.gmra.mrb[12].mxu0 %v8797_v55 }
 0x426   :  { %v8915_v21 = vadd.f32 %v6209_v30, %v8776_v23  ;;  %4818 = vmatprep.mubr.bf16.mxu0 %v8568_v42  ;;  %v3436_v23 = vshll.u32 %v3201_v8, 16 }
 0x427   :  { %v6104_v14 = vpop.f32.mrb[136].mxu1 }
 0x428   :  { %v6105_v48 = vpop.f32.mrb[137].mxu1  ;;  %v6210_v41 = vpop.f32.mrb[164].mxu0  ;;  %v3438_v24 = vrot.slane %v3436_v23, 1 }
 0x429   :  { %v6106_v27 = vadd.f32 %v6105_v48, %v6104_v14  ;;  %v6107_v17 = vpop.f32.mrb[138].mxu1  ;;  %v6211_v22 = vpop.f32.mrb[165].mxu0  ;;  %v3074_v48 = vshrl.u32 %v2818_v5, 16 }
 0x42a   :  { %v6212_v50 = vadd.f32 %v6211_v22, %v6210_v41  ;;  %v6108_v59 = vpop.f32.mrb[139].mxu1  ;;  %v6213_v29 = vpop.f32.mrb[166].mxu0  ;;  %v3081_v41 = vshll.u32 %v8938_v3, 16 }
 0x42b   :  { %v6109_v34 = vadd.f32 %v6108_v59, %v6107_v17  ;;  %v6214_v25 = vpop.f32.mrb[167].mxu0  ;;  %v3076_v59 = vrot.slane %v3074_v48, 7 }
 0x42c   :  { %v8918_v54 = vadd.f32 %v6212_v50, %v6100_v19  ;;  %v6215_v55 = vadd.f32 %v6214_v25, %v6213_v29  ;;  %4666 = vmatmul.mubr.bf16.gmra.mrb[244].mxu1 %v8568_v42 }
 0x42d   :  { %4673 = vmatprep.mubr.bf16.mxu1 %v8840_v57  ;;  %4819 = vmatmul.mubr.bf16.gmra.mrb[16].mxu0 %v8808_v11  ;;  %v9638_v11 = vld [vmem:[#allocation6_spill] sm:$0xff] }
 0x42e   :  { %v8923_v9 = vadd.f32 %v6215_v55, %v6103_v56  ;;  %4826 = vmatprep.mubr.bf16.mxu0 %v9637_v28  ;;  %v8931_v40 = vsel %vm680_vm1, %v9638_v11, %v3438_v24 }
 0x42f   :  { %v6110_v53 = vpop.f32.mrb[140].mxu1 }
 0x430   :  { %v6111_v26 = vpop.f32.mrb[141].mxu1  ;;  %v6216_v13 = vpop.f32.mrb[168].mxu0 }
 0x431   :  { %v6112_v12 = vadd.f32 %v6111_v26, %v6110_v53  ;;  %v6113_v37 = vpop.f32.mrb[142].mxu1  ;;  %v6217_v62 = vpop.f32.mrb[169].mxu0 }
 0x432   :  { %v6218_v45 = vadd.f32 %v6217_v62, %v6216_v13  ;;  %v6114_v63 = vpop.f32.mrb[143].mxu1  ;;  %v6219_v15 = vpop.f32.mrb[170].mxu0 }
 0x433   :  { %v6115_v42 = vadd.f32 %v6114_v63, %v6113_v37  ;;  %v6220_v36 = vpop.f32.mrb[171].mxu0 }
 0x434   :  { %v8926_v60 = vadd.f32 %v6218_v45, %v6106_v27  ;;  %v6221_v0 = vadd.f32 %v6220_v36, %v6219_v15  ;;  %4674 = vmatmul.mubr.bf16.gmra.mrb[248].mxu1 %v9637_v28 }
 0x435   :  { %4681 = vmatprep.mubr.bf16.mxu1 %v8931_v40  ;;  %4827 = vmatmul.mubr.bf16.gmra.mrb[20].mxu0 %v8818_v58  ;;  %v3080_v58 = vrot.slane %v3078_v51, 7 }
 0x436   :  { %v8935_v4 = vadd.f32 %v6221_v0, %v6109_v34  ;;  %4834 = vmatprep.mubr.bf16.mxu0 %v8661_v43 }
 0x437   :  { %v6116_v19 = vpop.f32.mrb[144].mxu1  ;;  %v3083_v29 = vor.u32 %v3081_v41, %v3080_v58 }
 0x438   :  { %v6117_v20 = vpop.f32.mrb[145].mxu1  ;;  %v6222_v46 = vpop.f32.mrb[172].mxu0 }
 0x439   :  { %v6118_v31 = vadd.f32 %v6117_v20, %v6116_v19  ;;  %v6119_v16 = vpop.f32.mrb[146].mxu1  ;;  %v6223_v56 = vpop.f32.mrb[173].mxu0 }
 0x43a   :  { %v6224_v7 = vadd.f32 %v6223_v56, %v6222_v46  ;;  %v6120_v30 = vpop.f32.mrb[147].mxu1  ;;  %v6225_v14 = vpop.f32.mrb[174].mxu0 }
 0x43b   :  { %v6121_v27 = vadd.f32 %v6120_v30, %v6119_v16  ;;  %v6226_v17 = vpop.f32.mrb[175].mxu0 }
 0x43c   :  { %v8944_v22 = vadd.f32 %v6224_v7, %v6112_v12  ;;  %v6227_v8 = vadd.f32 %v6226_v17, %v6225_v14  ;;  %4682 = vmatmul.mubr.bf16.gmra.mrb[252].mxu1 %v8661_v43 }
 0x43d   :  { %4835 = vmatmul.mubr.bf16.gmra.mrb[24].mxu0 %v8832_v32  ;;  %6612 = vmatprep.mubr.bf16.mxu1 %v8647_v35  ;;  %v3084_v32 = vsel %vm295_vm0, %v3076_v59, %v3083_v29 }
 0x43e   :  { %v8949_v50 = vadd.f32 %v6227_v8, %v6115_v42  ;;  %4842 = vmatprep.mubr.bf16.mxu0 %v8938_v3 }
 0x43f   :  { %v6122_v34 = vpop.f32.mrb[148].mxu1 }
 0x440   :  { %v6123_v25 = vpop.f32.mrb[149].mxu1  ;;  %v6228_v55 = vpop.f32.mrb[176].mxu0 }
 0x441   :  { %v6124_v23 = vadd.f32 %v6123_v25, %v6122_v34  ;;  %v6125_v28 = vpop.f32.mrb[150].mxu1  ;;  %v6229_v53 = vpop.f32.mrb[177].mxu0 }
 0x442   :  { %v6230_v26 = vadd.f32 %v6229_v53, %v6228_v55  ;;  %v6126_v43 = vpop.f32.mrb[151].mxu1  ;;  %v6231_v13 = vpop.f32.mrb[178].mxu0 }
 0x443   :  { %v6127_v35 = vadd.f32 %v6126_v43, %v6125_v28  ;;  %v6232_v24 = vpop.f32.mrb[179].mxu0 }
 0x444   :  { %v8955_v12 = vadd.f32 %v6230_v26, %v6118_v31  ;;  %v6233_v37 = vadd.f32 %v6232_v24, %v6231_v13  ;;  %6613 = vmatmul.mubr.bf16.vlgmr.msra.gmra.mrb[0].mxu1 %v8678_v18 }
 0x445   :  { %4843 = vmatmul.mubr.bf16.gmra.mrb[28].mxu0 %v3084_v32  ;;  %6616 = vmatprep.mubr.bf16.mxu1 %v8702_v61 }
 0x446   :  { %v8959_v62 = vadd.f32 %v6233_v37, %v6121_v27 }
 0x447   :  { %v6128_v45 = vpop.f32.mrb[152].mxu1 }
 0x448   :  { %v6129_v63 = vpop.f32.mrb[153].mxu1  ;;  %v6234_v15 = vpop.f32.mrb[180].mxu0 }
 0x449   :  { %v6130_v42 = vadd.f32 %v6129_v63, %v6128_v45  ;;  %v6131_v36 = vpop.f32.mrb[154].mxu1  ;;  %v6235_v0 = vpop.f32.mrb[181].mxu0 }
 0x44a   :  { %v6236_v11 = vadd.f32 %v6235_v0, %v6234_v15  ;;  %v6132_v19 = vpop.f32.mrb[155].mxu1  ;;  %v6237_v5 = vpop.f32.mrb[182].mxu0 }
 0x44b   :  { %v6133_v20 = vadd.f32 %v6132_v19, %v6131_v36  ;;  %v6238_v46 = vpop.f32.mrb[183].mxu0 }
 0x44c   :  { %v8961_v31 = vadd.f32 %v6236_v11, %v6124_v23  ;;  %v6239_v16 = vadd.f32 %v6238_v46, %v6237_v5  ;;  %6617 = vmatmul.mubr.bf16.gmra.mrb[4].mxu1 %v8716_v33 }
 0x44d   :  { %6620 = vmatprep.mubr.bf16.mxu1 %v8728_v10 }
 0x44e   :  { %v8965_v18 = vadd.f32 %v6239_v16, %v6127_v35 }
 0x44f   :  { %v6134_v61 = vpop.f32.mrb[156].mxu1 }
 0x450   :  { %v6135_v56 = vpop.f32.mrb[157].mxu1  ;;  %v6240_v7 = vpop.f32.mrb[184].mxu0 }
 0x451   :  { %v6136_v30 = vadd.f32 %v6135_v56, %v6134_v61  ;;  %v6137_v14 = vpop.f32.mrb[158].mxu1  ;;  %v6241_v48 = vpop.f32.mrb[185].mxu0 }
 0x452   :  { %v6242_v58 = vadd.f32 %v6241_v48, %v6240_v7  ;;  %v6138_v27 = vpop.f32.mrb[159].mxu1  ;;  %v6243_v17 = vpop.f32.mrb[186].mxu0 }
 0x453   :  { %v6139_v8 = vadd.f32 %v6138_v27, %v6137_v14  ;;  %v6244_v59 = vpop.f32.mrb[187].mxu0 }
 0x454   :  { %v8967_v29 = vadd.f32 %v6242_v58, %v6130_v42  ;;  %v6245_v34 = vadd.f32 %v6244_v59, %v6243_v17  ;;  %6621 = vmatmul.mubr.bf16.gmra.mrb[8].mxu1 %v8740_v49 }
 0x455   :  { %6624 = vmatprep.mubr.bf16.mxu1 %v8752_v52 }
 0x456   :  { %v8971_v33 = vadd.f32 %v6245_v34, %v6133_v20 }
 0x457   :  { %v6140_v10 = vpop.f32.mrb[160].mxu1 }
 0x458   :  { %v6141_v25 = vpop.f32.mrb[161].mxu1  ;;  %v6246_v55 = vpop.f32.mrb[188].mxu0 }
 0x459   :  { %v6142_v23 = vadd.f32 %v6141_v25, %v6140_v10  ;;  %v6143_v28 = vpop.f32.mrb[162].mxu1  ;;  %v6247_v53 = vpop.f32.mrb[189].mxu0 }
 0x45a   :  { %v6248_v26 = vadd.f32 %v6247_v53, %v6246_v55  ;;  %v6144_v43 = vpop.f32.mrb[163].mxu1  ;;  %v6249_v13 = vpop.f32.mrb[190].mxu0 }
 0x45b   :  { %v6145_v32 = vadd.f32 %v6144_v43, %v6143_v28  ;;  %v6250_v35 = vpop.f32.mrb[191].mxu0 }
 0x45c   :  { %v8973_v24 = vadd.f32 %v6248_v26, %v6136_v30  ;;  %v6251_v37 = vadd.f32 %v6250_v35, %v6249_v13  ;;  %6625 = vmatmul.mubr.bf16.gmra.mrb[12].mxu1 %v8764_v44  ;;  %v3462_v26 = vrot.slane %v3081_v41, 1 }
 0x45d   :  { %6628 = vmatprep.mubr.bf16.mxu1 %v8780_v47 }
 0x45e   :  { %v8977_v49 = vadd.f32 %v6251_v37, %v6139_v8 }
 0x45f   :  { %v6146_v52 = vpop.f32.mrb[164].mxu1 }
 0x460   :  { %v6147_v45 = vpop.f32.mrb[165].mxu1  ;;  %v6252_v63 = vpop.f32.mrb[192].mxu0 }
 0x461   :  { %v6148_v15 = vadd.f32 %v6147_v45, %v6146_v52  ;;  %v6149_v42 = vpop.f32.mrb[166].mxu1  ;;  %v6253_v36 = vpop.f32.mrb[193].mxu0  ;;  %v3463_v45 = vor.u32 %v3462_v26, %v3078_v51 }
 0x462   :  { %v6254_v0 = vadd.f32 %v6253_v36, %v6252_v63  ;;  %v6150_v11 = vpop.f32.mrb[167].mxu1  ;;  %v6255_v19 = vpop.f32.mrb[194].mxu0 }
 0x463   :  { %v6151_v5 = vadd.f32 %v6150_v11, %v6149_v42  ;;  %v6256_v20 = vpop.f32.mrb[195].mxu0 }
 0x464   :  { %v8979_v46 = vadd.f32 %v6254_v0, %v6142_v23  ;;  %v6257_v16 = vadd.f32 %v6256_v20, %v6255_v19  ;;  %6629 = vmatmul.mubr.bf16.gmra.mrb[16].mxu1 %v8792_v38  ;;  %v3203_v38 = vld [vmem:[#allocation3 + $0x1a8] sm:$0x1] }
 0x465   :  { %6632 = vmatprep.mubr.bf16.mxu1 %v8803_v2  ;;  %v3465_v43 = vshll.u32 %v3203_v38, 16 }
 0x466   :  { %v8983_v44 = vadd.f32 %v6257_v16, %v6145_v32 }
 0x467   :  { %v6152_v47 = vpop.f32.mrb[168].mxu1  ;;  %v3467_v63 = vrot.slane %v3465_v43, 1 }
 0x468   :  { %v6153_v61 = vpop.f32.mrb[169].mxu1  ;;  %v6258_v56 = vpop.f32.mrb[196].mxu0 }
 0x469   :  { %v6154_v7 = vadd.f32 %v6153_v61, %v6152_v47  ;;  %v6155_v30 = vpop.f32.mrb[170].mxu1  ;;  %v6259_v14 = vpop.f32.mrb[197].mxu0 }
 0x46a   :  { %v6260_v48 = vadd.f32 %v6259_v14, %v6258_v56  ;;  %v6156_v58 = vpop.f32.mrb[171].mxu1  ;;  %v6261_v27 = vpop.f32.mrb[198].mxu0 }
 0x46b   :  { %v6157_v17 = vadd.f32 %v6156_v58, %v6155_v30  ;;  %v6262_v8 = vpop.f32.mrb[199].mxu0 }
 0x46c   :  { %v8985_v59 = vadd.f32 %v6260_v48, %v6148_v15  ;;  %v6263_v34 = vadd.f32 %v6262_v8, %v6261_v27  ;;  %6633 = vmatmul.mubr.bf16.gmra.mrb[20].mxu1 %v8813_v1 }
 0x46d   :  { %6636 = vmatprep.mubr.bf16.mxu1 %v8827_v6 }
 0x46e   :  { %v8989_v2 = vadd.f32 %v6263_v34, %v6151_v5  ;;  %v3468_v5 = vsel %vm680_vm1, %v3463_v45, %v3467_v63 }
 0x46f   :  { %v6158_v10 = vpop.f32.mrb[172].mxu1 }
 0x470   :  { %v6159_v25 = vpop.f32.mrb[173].mxu1  ;;  %v6264_v55 = vpop.f32.mrb[200].mxu0 }
 0x471   :  { %v6160_v23 = vadd.f32 %v6159_v25, %v6158_v10  ;;  %v6161_v28 = vpop.f32.mrb[174].mxu1  ;;  %v6265_v53 = vpop.f32.mrb[201].mxu0 }
 0x472   :  { %v6266_v13 = vadd.f32 %v6265_v53, %v6264_v55  ;;  %v6162_v32 = vpop.f32.mrb[175].mxu1  ;;  %v6267_v35 = vpop.f32.mrb[202].mxu0 }
 0x473   :  { %v6163_v37 = vadd.f32 %v6162_v32, %v6161_v28  ;;  %v6268_v1 = vpop.f32.mrb[203].mxu0 }
 0x474   :  { %v8993_v52 = vadd.f32 %v6266_v13, %v6154_v7  ;;  %v6269_v6 = vadd.f32 %v6268_v1, %v6267_v35  ;;  %6637 = vmatmul.mubr.bf16.gmra.mrb[24].mxu1 %v8840_v57 }
 0x475   :  { %6640 = vmatprep.mubr.bf16.mxu1 %v8931_v40 }
 0x476   :  { %v8999_v15 = vadd.f32 %v6269_v6, %v6157_v17 }
 0x477   :  { %v6164_v41 = vpop.f32.mrb[176].mxu1 }
 0x478   :  { %v6165_v42 = vpop.f32.mrb[177].mxu1  ;;  %v6270_v36 = vpop.f32.mrb[204].mxu0 }
 0x479   :  { %v6166_v0 = vadd.f32 %v6165_v42, %v6164_v41  ;;  %v6167_v11 = vpop.f32.mrb[178].mxu1  ;;  %v6271_v19 = vpop.f32.mrb[205].mxu0 }
 0x47a   :  { %v6272_v20 = vadd.f32 %v6271_v19, %v6270_v36  ;;  %v6168_v16 = vpop.f32.mrb[179].mxu1  ;;  %v6273_v47 = vpop.f32.mrb[206].mxu0 }
 0x47b   :  { %v6169_v57 = vadd.f32 %v6168_v16, %v6167_v11  ;;  %v6274_v61 = vpop.f32.mrb[207].mxu0 }
 0x47c   :  { %v9002_v40 = vadd.f32 %v6272_v20, %v6160_v23  ;;  %v6275_v3 = vadd.f32 %v6274_v61, %v6273_v47  ;;  %6641 = vmatmul.mubr.bf16.gmra.mrb[28].mxu1 %v3468_v5 }
 0x47e   :  { %v9004_v51 = vadd.f32 %v6275_v3, %v6163_v37 }
 0x47f   :  { %v6170_v56 = vpop.f32.mrb[180].mxu1 }
 0x480   :  { %v6171_v7 = vpop.f32.mrb[181].mxu1  ;;  %v6276_v30 = vpop.f32.mrb[208].mxu0 }
 0x481   :  { %v6172_v14 = vadd.f32 %v6171_v7, %v6170_v56  ;;  %v6173_v48 = vpop.f32.mrb[182].mxu1  ;;  %v6277_v58 = vpop.f32.mrb[209].mxu0 }
 0x482   :  { %v6278_v27 = vadd.f32 %v6277_v58, %v6276_v30  ;;  %v6174_v17 = vpop.f32.mrb[183].mxu1  ;;  %v6279_v8 = vpop.f32.mrb[210].mxu0 }
 0x483   :  { %v6175_v34 = vadd.f32 %v6174_v17, %v6173_v48  ;;  %v6280_v38 = vpop.f32.mrb[211].mxu0 }
 0x484   :  { %v9006_v10 = vadd.f32 %v6278_v27, %v6166_v0  ;;  %v6281_v25 = vadd.f32 %v6280_v38, %v6279_v8 }
 0x486   :  { %v9008_v55 = vadd.f32 %v6281_v25, %v6169_v57 }
 0x487   :  { %v6176_v23 = vpop.f32.mrb[184].mxu1 }
 0x488   :  { %v6177_v28 = vpop.f32.mrb[185].mxu1  ;;  %v6282_v53 = vpop.f32.mrb[212].mxu0 }
 0x489   :  { %v6178_v26 = vadd.f32 %v6177_v28, %v6176_v23  ;;  %v6179_v43 = vpop.f32.mrb[186].mxu1  ;;  %v6283_v13 = vpop.f32.mrb[213].mxu0 }
 0x48a   :  { %v6284_v32 = vadd.f32 %v6283_v13, %v6282_v53  ;;  %v6180_v35 = vpop.f32.mrb[187].mxu1  ;;  %v6285_v37 = vpop.f32.mrb[214].mxu0 }
 0x48b   :  { %v6181_v1 = vadd.f32 %v6180_v35, %v6179_v43  ;;  %v6286_v6 = vpop.f32.mrb[215].mxu0 }
 0x48c   :  { %v9010_v45 = vadd.f32 %v6284_v32, %v6172_v14  ;;  %v6287_v63 = vadd.f32 %v6286_v6, %v6285_v37 }
 0x48e   :  { %v9012_v41 = vadd.f32 %v6287_v63, %v6175_v34 }
 0x48f   :  { %v6182_v42 = vpop.f32.mrb[188].mxu1 }
 0x490   :  { %v6183_v36 = vpop.f32.mrb[189].mxu1  ;;  %v6288_v0 = vpop.f32.mrb[216].mxu0 }
 0x491   :  { %v6184_v11 = vadd.f32 %v6183_v36, %v6182_v42  ;;  %v6185_v19 = vpop.f32.mrb[190].mxu1  ;;  %v6289_v5 = vpop.f32.mrb[217].mxu0 }
 0x492   :  { %v6290_v20 = vadd.f32 %v6289_v5, %v6288_v0  ;;  %v6186_v16 = vpop.f32.mrb[191].mxu1  ;;  %v6291_v47 = vpop.f32.mrb[218].mxu0 }
 0x493   :  { %v6187_v57 = vadd.f32 %v6186_v16, %v6185_v19  ;;  %v6292_v61 = vpop.f32.mrb[219].mxu0 }
 0x494   :  { %v9014_v3 = vadd.f32 %v6290_v20, %v6178_v26  ;;  %v6293_v56 = vadd.f32 %v6292_v61, %v6291_v47 }
 0x496   :  { %v9016_v7 = vadd.f32 %v6293_v56, %v6181_v1 }
 0x497   :  { %v6316_v30 = vpop.f32.mrb[192].mxu1 }
 0x498   :  { %v6294_v14 = vpop.f32.mrb[220].mxu0  ;;  %v6317_v48 = vpop.f32.mrb[193].mxu1 }
 0x499   :  { %v6318_v58 = vadd.f32 %v6317_v48, %v6316_v30  ;;  %v6295_v27 = vpop.f32.mrb[221].mxu0  ;;  %v6319_v17 = vpop.f32.mrb[194].mxu1 }
 0x49a   :  { %v6296_v8 = vadd.f32 %v6295_v27, %v6294_v14  ;;  %v6297_v34 = vpop.f32.mrb[222].mxu0  ;;  %v6320_v38 = vpop.f32.mrb[195].mxu1 }
 0x49b   :  { %v4564_v25 = vadd.f32 %v6318_v58, %v8909_v39  ;;  %v6321_v23 = vadd.f32 %v6320_v38, %v6319_v17  ;;  %v6298_v28 = vpop.f32.mrb[223].mxu0 }
 0x49c   :  { %v9019_v53 = vadd.f32 %v6296_v8, %v6184_v11  ;;  %v6299_v26 = vadd.f32 %v6298_v28, %v6297_v34 }
 0x49d   :  { %v4567_v43 = vadd.f32 %v6321_v23, %v8915_v21 }
 0x49e   :  { %v9022_v13 = vadd.f32 %v6299_v26, %v6187_v57 }
 0x49f   :  { %v6322_v32 = vpop.f32.mrb[196].mxu1 }
 0x4a0   :  { %v6323_v35 = vpop.f32.mrb[197].mxu1  ;;  %v6428_v37 = vpop.f32.mrb[224].mxu0 }
 0x4a1   :  { %v6324_v1 = vadd.f32 %v6323_v35, %v6322_v32  ;;  %v6325_v6 = vpop.f32.mrb[198].mxu1  ;;  %v6429_v63 = vpop.f32.mrb[225].mxu0 }
 0x4a2   :  { %v6430_v42 = vadd.f32 %v6429_v63, %v6428_v37  ;;  %v6326_v36 = vpop.f32.mrb[199].mxu1  ;;  %v6431_v0 = vpop.f32.mrb[226].mxu0 }
 0x4a3   :  { %v4572_v39 = vadd.f32 %v6324_v1, %v8918_v54  ;;  %v6327_v19 = vadd.f32 %v6326_v36, %v6325_v6  ;;  %v6432_v5 = vpop.f32.mrb[227].mxu0 }
 0x4a4   :  { %v6433_v11 = vadd.f32 %v6432_v5, %v6431_v0  ;;  %v9025_v20 = vadd.f32 %v6430_v42, %v4564_v25 }
 0x4a5   :  { %v4575_v21 = vadd.f32 %v6327_v19, %v8923_v9 }
 0x4a6   :  { %v9028_v16 = vadd.f32 %v6433_v11, %v4567_v43 }
 0x4a7   :  { %v6328_v47 = vpop.f32.mrb[200].mxu1 }
 0x4a8   :  { %v6329_v57 = vpop.f32.mrb[201].mxu1  ;;  %v6434_v61 = vpop.f32.mrb[228].mxu0 }
 0x4a9   :  { %v6330_v56 = vadd.f32 %v6329_v57, %v6328_v47  ;;  %v6331_v30 = vpop.f32.mrb[202].mxu1  ;;  %v6435_v14 = vpop.f32.mrb[229].mxu0 }
 0x4aa   :  { %v6436_v48 = vadd.f32 %v6435_v14, %v6434_v61  ;;  %v6332_v58 = vpop.f32.mrb[203].mxu1  ;;  %v6437_v27 = vpop.f32.mrb[230].mxu0 }
 0x4ab   :  { %v4580_v54 = vadd.f32 %v6330_v56, %v8926_v60  ;;  %v6333_v17 = vadd.f32 %v6332_v58, %v6331_v30  ;;  %v6438_v8 = vpop.f32.mrb[231].mxu0 }
 0x4ac   :  { %v6439_v34 = vadd.f32 %v6438_v8, %v6437_v27  ;;  %v9031_v38 = vadd.f32 %v6436_v48, %v4572_v39 }
 0x4ad   :  { %v4583_v9 = vadd.f32 %v6333_v17, %v8935_v4 }
 0x4ae   :  { %v9034_v25 = vadd.f32 %v6439_v34, %v4575_v21 }
 0x4af   :  { %v6334_v23 = vpop.f32.mrb[204].mxu1 }
 0x4b0   :  { %v6335_v28 = vpop.f32.mrb[205].mxu1  ;;  %v6440_v26 = vpop.f32.mrb[232].mxu0 }
 0x4b1   :  { %v6336_v43 = vadd.f32 %v6335_v28, %v6334_v23  ;;  %v6337_v32 = vpop.f32.mrb[206].mxu1  ;;  %v6441_v35 = vpop.f32.mrb[233].mxu0 }
 0x4b2   :  { %v6442_v37 = vadd.f32 %v6441_v35, %v6440_v26  ;;  %v6338_v1 = vpop.f32.mrb[207].mxu1  ;;  %v6443_v6 = vpop.f32.mrb[234].mxu0 }
 0x4b3   :  { %v4588_v60 = vadd.f32 %v6336_v43, %v8944_v22  ;;  %v6339_v63 = vadd.f32 %v6338_v1, %v6337_v32  ;;  %v6444_v42 = vpop.f32.mrb[235].mxu0 }
 0x4b4   :  { %v6445_v36 = vadd.f32 %v6444_v42, %v6443_v6  ;;  %v9037_v0 = vadd.f32 %v6442_v37, %v4580_v54 }
 0x4b5   :  { %v4591_v4 = vadd.f32 %v6339_v63, %v8949_v50 }
 0x4b6   :  { %v9040_v39 = vadd.f32 %v6445_v36, %v4583_v9 }
 0x4b7   :  { %v6340_v19 = vpop.f32.mrb[208].mxu1 }
 0x4b8   :  { %v6341_v5 = vpop.f32.mrb[209].mxu1  ;;  %v6446_v11 = vpop.f32.mrb[236].mxu0 }
 0x4b9   :  { %v6342_v21 = vadd.f32 %v6341_v5, %v6340_v19  ;;  %v6343_v47 = vpop.f32.mrb[210].mxu1  ;;  %v6447_v57 = vpop.f32.mrb[237].mxu0 }
 0x4ba   :  { %v6448_v61 = vadd.f32 %v6447_v57, %v6446_v11  ;;  %v6344_v56 = vpop.f32.mrb[211].mxu1  ;;  %v6449_v30 = vpop.f32.mrb[238].mxu0 }
 0x4bb   :  { %v4596_v22 = vadd.f32 %v6342_v21, %v8955_v12  ;;  %v6345_v14 = vadd.f32 %v6344_v56, %v6343_v47  ;;  %v6450_v48 = vpop.f32.mrb[239].mxu0 }
 0x4bc   :  { %v6451_v58 = vadd.f32 %v6450_v48, %v6449_v30  ;;  %v9043_v27 = vadd.f32 %v6448_v61, %v4588_v60 }
 0x4bd   :  { %v4599_v50 = vadd.f32 %v6345_v14, %v8959_v62 }
 0x4be   :  { %v9046_v54 = vadd.f32 %v6451_v58, %v4591_v4 }
 0x4bf   :  { %v6346_v17 = vpop.f32.mrb[212].mxu1 }
 0x4c0   :  { %v6347_v8 = vpop.f32.mrb[213].mxu1  ;;  %v6452_v34 = vpop.f32.mrb[240].mxu0 }
 0x4c1   :  { %v6348_v9 = vadd.f32 %v6347_v8, %v6346_v17  ;;  %v6349_v23 = vpop.f32.mrb[214].mxu1  ;;  %v6453_v28 = vpop.f32.mrb[241].mxu0 }
 0x4c2   :  { %v6454_v26 = vadd.f32 %v6453_v28, %v6452_v34  ;;  %v6350_v43 = vpop.f32.mrb[215].mxu1  ;;  %v6455_v32 = vpop.f32.mrb[242].mxu0 }
 0x4c3   :  { %v4604_v12 = vadd.f32 %v6348_v9, %v8961_v31  ;;  %v6351_v35 = vadd.f32 %v6350_v43, %v6349_v23  ;;  %v6456_v37 = vpop.f32.mrb[243].mxu0 }
 0x4c4   :  { %v6457_v1 = vadd.f32 %v6456_v37, %v6455_v32  ;;  %v9049_v6 = vadd.f32 %v6454_v26, %v4596_v22 }
 0x4c5   :  { %v4607_v62 = vadd.f32 %v6351_v35, %v8965_v18 }
 0x4c6   :  { %v9052_v60 = vadd.f32 %v6457_v1, %v4599_v50 }
 0x4c7   :  { %v6352_v63 = vpop.f32.mrb[216].mxu1 }
 0x4c8   :  { %v6353_v42 = vpop.f32.mrb[217].mxu1  ;;  %v6458_v36 = vpop.f32.mrb[244].mxu0 }
 0x4c9   :  { %v6354_v4 = vadd.f32 %v6353_v42, %v6352_v63  ;;  %v6355_v19 = vpop.f32.mrb[218].mxu1  ;;  %v6459_v5 = vpop.f32.mrb[245].mxu0 }
 0x4ca   :  { %v6460_v11 = vadd.f32 %v6459_v5, %v6458_v36  ;;  %v6356_v21 = vpop.f32.mrb[219].mxu1  ;;  %v6461_v47 = vpop.f32.mrb[246].mxu0 }
 0x4cb   :  { %v4612_v31 = vadd.f32 %v6354_v4, %v8967_v29  ;;  %v6357_v57 = vadd.f32 %v6356_v21, %v6355_v19  ;;  %v6462_v61 = vpop.f32.mrb[247].mxu0 }
 0x4cc   :  { %v6463_v56 = vadd.f32 %v6462_v61, %v6461_v47  ;;  %v9055_v30 = vadd.f32 %v6460_v11, %v4604_v12 }
 0x4cd   :  { %v4615_v18 = vadd.f32 %v6357_v57, %v8971_v33 }
 0x4ce   :  { %v9058_v22 = vadd.f32 %v6463_v56, %v4607_v62 }
 0x4cf   :  { %v6358_v14 = vpop.f32.mrb[220].mxu1 }
 0x4d0   :  { %v6359_v48 = vpop.f32.mrb[221].mxu1  ;;  %v6464_v58 = vpop.f32.mrb[248].mxu0 }
 0x4d1   :  { %v6360_v50 = vadd.f32 %v6359_v48, %v6358_v14  ;;  %v6361_v17 = vpop.f32.mrb[222].mxu1  ;;  %v6465_v8 = vpop.f32.mrb[249].mxu0 }
 0x4d2   :  { %v6466_v34 = vadd.f32 %v6465_v8, %v6464_v58  ;;  %v6362_v9 = vpop.f32.mrb[223].mxu1  ;;  %v6467_v23 = vpop.f32.mrb[250].mxu0 }
 0x4d3   :  { %v4620_v29 = vadd.f32 %v6360_v50, %v8973_v24  ;;  %v6363_v28 = vadd.f32 %v6362_v9, %v6361_v17  ;;  %v6468_v26 = vpop.f32.mrb[251].mxu0 }
 0x4d4   :  { %v6469_v43 = vadd.f32 %v6468_v26, %v6467_v23  ;;  %v9061_v32 = vadd.f32 %v6466_v34, %v4612_v31 }
 0x4d5   :  { %v4623_v33 = vadd.f32 %v6363_v28, %v8977_v49 }
 0x4d6   :  { %v9064_v12 = vadd.f32 %v6469_v43, %v4615_v18 }
 0x4d7   :  { %v6364_v35 = vpop.f32.mrb[224].mxu1 }
 0x4d8   :  { %v6365_v37 = vpop.f32.mrb[225].mxu1  ;;  %v6470_v1 = vpop.f32.mrb[252].mxu0 }
 0x4d9   :  { %v6366_v62 = vadd.f32 %v6365_v37, %v6364_v35  ;;  %v6367_v63 = vpop.f32.mrb[226].mxu1  ;;  %v6471_v42 = vpop.f32.mrb[253].mxu0 }
 0x4da   :  { %v6472_v36 = vadd.f32 %v6471_v42, %v6470_v1  ;;  %v6368_v4 = vpop.f32.mrb[227].mxu1  ;;  %v6473_v19 = vpop.f32.mrb[254].mxu0 }
 0x4db   :  { %v4628_v24 = vadd.f32 %v6366_v62, %v8979_v46  ;;  %v6369_v5 = vadd.f32 %v6368_v4, %v6367_v63  ;;  %v6474_v11 = vpop.f32.mrb[255].mxu0 }
 0x4dc   :  { %v6475_v21 = vadd.f32 %v6474_v11, %v6473_v19  ;;  %v9067_v47 = vadd.f32 %v6472_v36, %v4620_v29 }
 0x4dd   :  { %v4631_v49 = vadd.f32 %v6369_v5, %v8983_v44 }
 0x4de   :  { %v9070_v31 = vadd.f32 %v6475_v21, %v4623_v33 }
 0x4df   :  { %v6370_v57 = vpop.f32.mrb[228].mxu1 }
 0x4e0   :  { %v6371_v61 = vpop.f32.mrb[229].mxu1  ;;  %v6476_v56 = vpop.f32.mrb[0].mxu0 }
 0x4e1   :  { %v6372_v18 = vadd.f32 %v6371_v61, %v6370_v57  ;;  %v6373_v14 = vpop.f32.mrb[230].mxu1  ;;  %v6477_v48 = vpop.f32.mrb[1].mxu0 }
 0x4e2   :  { %v6478_v58 = vadd.f32 %v6477_v48, %v6476_v56  ;;  %v6374_v50 = vpop.f32.mrb[231].mxu1  ;;  %v6479_v17 = vpop.f32.mrb[2].mxu0 }
 0x4e3   :  { %v4636_v46 = vadd.f32 %v6372_v18, %v8985_v59  ;;  %v6375_v8 = vadd.f32 %v6374_v50, %v6373_v14  ;;  %v6480_v34 = vpop.f32.mrb[3].mxu0 }
 0x4e4   :  { %v6481_v9 = vadd.f32 %v6480_v34, %v6479_v17  ;;  %v9073_v23 = vadd.f32 %v6478_v58, %v4628_v24 }
 0x4e5   :  { %v4639_v44 = vadd.f32 %v6375_v8, %v8989_v2 }
 0x4e6   :  { %v9076_v29 = vadd.f32 %v6481_v9, %v4631_v49 }
 0x4e7   :  { %v6376_v28 = vpop.f32.mrb[232].mxu1 }
 0x4e8   :  { %v6377_v26 = vpop.f32.mrb[233].mxu1  ;;  %v6482_v43 = vpop.f32.mrb[4].mxu0 }
 0x4e9   :  { %v6378_v33 = vadd.f32 %v6377_v26, %v6376_v28  ;;  %v6379_v35 = vpop.f32.mrb[234].mxu1  ;;  %v6483_v37 = vpop.f32.mrb[5].mxu0 }
 0x4ea   :  { %v6484_v1 = vadd.f32 %v6483_v37, %v6482_v43  ;;  %v6380_v62 = vpop.f32.mrb[235].mxu1  ;;  %v6485_v63 = vpop.f32.mrb[6].mxu0 }
 0x4eb   :  { %v4644_v59 = vadd.f32 %v6378_v33, %v8993_v52  ;;  %v6381_v42 = vadd.f32 %v6380_v62, %v6379_v35  ;;  %v6486_v36 = vpop.f32.mrb[7].mxu0 }
 0x4ec   :  { %v6487_v4 = vadd.f32 %v6486_v36, %v6485_v63  ;;  %v9079_v19 = vadd.f32 %v6484_v1, %v4636_v46 }
 0x4ed   :  { %v4647_v2 = vadd.f32 %v6381_v42, %v8999_v15 }
 0x4ee   :  { %v9082_v24 = vadd.f32 %v6487_v4, %v4639_v44 }
 0x4ef   :  { %v6382_v5 = vpop.f32.mrb[236].mxu1 }
 0x4f0   :  { %v6383_v11 = vpop.f32.mrb[237].mxu1  ;;  %v6488_v21 = vpop.f32.mrb[8].mxu0 }
 0x4f1   :  { %v6384_v49 = vadd.f32 %v6383_v11, %v6382_v5  ;;  %v6385_v57 = vpop.f32.mrb[238].mxu1  ;;  %v6489_v61 = vpop.f32.mrb[9].mxu0 }
 0x4f2   :  { %v6490_v56 = vadd.f32 %v6489_v61, %v6488_v21  ;;  %v6386_v18 = vpop.f32.mrb[239].mxu1  ;;  %v6491_v14 = vpop.f32.mrb[10].mxu0 }
 0x4f3   :  { %v4652_v52 = vadd.f32 %v6384_v49, %v9002_v40  ;;  %v6387_v48 = vadd.f32 %v6386_v18, %v6385_v57  ;;  %v6492_v58 = vpop.f32.mrb[11].mxu0 }
 0x4f4   :  { %v6493_v50 = vadd.f32 %v6492_v58, %v6491_v14  ;;  %v9085_v17 = vadd.f32 %v6490_v56, %v4644_v59 }
 0x4f5   :  { %v4655_v15 = vadd.f32 %v6387_v48, %v9004_v51 }
 0x4f6   :  { %v9088_v46 = vadd.f32 %v6493_v50, %v4647_v2 }
 0x4f7   :  { %v6388_v8 = vpop.f32.mrb[240].mxu1 }
 0x4f8   :  { %v6389_v34 = vpop.f32.mrb[241].mxu1  ;;  %v6494_v9 = vpop.f32.mrb[12].mxu0 }
 0x4f9   :  { %v6390_v44 = vadd.f32 %v6389_v34, %v6388_v8  ;;  %v6391_v28 = vpop.f32.mrb[242].mxu1  ;;  %v6495_v26 = vpop.f32.mrb[13].mxu0 }
 0x4fa   :  { %v6496_v43 = vadd.f32 %v6495_v26, %v6494_v9  ;;  %v6392_v33 = vpop.f32.mrb[243].mxu1  ;;  %v6497_v35 = vpop.f32.mrb[14].mxu0 }
 0x4fb   :  { %v4660_v40 = vadd.f32 %v6390_v44, %v9006_v10  ;;  %v6393_v37 = vadd.f32 %v6392_v33, %v6391_v28  ;;  %v6498_v1 = vpop.f32.mrb[15].mxu0 }
 0x4fc   :  { %v6499_v62 = vadd.f32 %v6498_v1, %v6497_v35  ;;  %v9091_v63 = vadd.f32 %v6496_v43, %v4652_v52 }
 0x4fd   :  { %v4663_v51 = vadd.f32 %v6393_v37, %v9008_v55 }
 0x4fe   :  { %v9094_v59 = vadd.f32 %v6499_v62, %v4655_v15 }
 0x4ff   :  { %v6394_v42 = vpop.f32.mrb[244].mxu1 }
 0x500   :  { %v6395_v36 = vpop.f32.mrb[245].mxu1  ;;  %v6500_v4 = vpop.f32.mrb[16].mxu0 }
 0x501   :  { %v6396_v2 = vadd.f32 %v6395_v36, %v6394_v42  ;;  %v6397_v5 = vpop.f32.mrb[246].mxu1  ;;  %v6501_v11 = vpop.f32.mrb[17].mxu0 }
 0x502   :  { %v6502_v21 = vadd.f32 %v6501_v11, %v6500_v4  ;;  %v6398_v49 = vpop.f32.mrb[247].mxu1  ;;  %v6503_v57 = vpop.f32.mrb[18].mxu0 }
 0x503   :  { %v4668_v10 = vadd.f32 %v6396_v2, %v9010_v45  ;;  %v6399_v61 = vadd.f32 %v6398_v49, %v6397_v5  ;;  %v6504_v56 = vpop.f32.mrb[19].mxu0 }
 0x504   :  { %v6505_v18 = vadd.f32 %v6504_v56, %v6503_v57  ;;  %v9097_v14 = vadd.f32 %v6502_v21, %v4660_v40 }
 0x505   :  { %v4671_v55 = vadd.f32 %v6399_v61, %v9012_v41 }
 0x506   :  { %v9100_v52 = vadd.f32 %v6505_v18, %v4663_v51 }
 0x507   :  { %v6400_v48 = vpop.f32.mrb[248].mxu1 }
 0x508   :  { %v6401_v58 = vpop.f32.mrb[249].mxu1  ;;  %v6506_v50 = vpop.f32.mrb[20].mxu0 }
 0x509   :  { %v6402_v15 = vadd.f32 %v6401_v58, %v6400_v48  ;;  %v6403_v8 = vpop.f32.mrb[250].mxu1  ;;  %v6507_v34 = vpop.f32.mrb[21].mxu0 }
 0x50a   :  { %v6508_v9 = vadd.f32 %v6507_v34, %v6506_v50  ;;  %v6404_v44 = vpop.f32.mrb[251].mxu1  ;;  %v6509_v28 = vpop.f32.mrb[22].mxu0 }
 0x50b   :  { %v4676_v45 = vadd.f32 %v6402_v15, %v9014_v3  ;;  %v6405_v26 = vadd.f32 %v6404_v44, %v6403_v8  ;;  %v6510_v43 = vpop.f32.mrb[23].mxu0 }
 0x50c   :  { %v6511_v33 = vadd.f32 %v6510_v43, %v6509_v28  ;;  %v9103_v35 = vadd.f32 %v6508_v9, %v4668_v10 }
 0x50d   :  { %v4679_v41 = vadd.f32 %v6405_v26, %v9016_v7 }
 0x50e   :  { %v9106_v40 = vadd.f32 %v6511_v33, %v4671_v55 }
 0x50f   :  { %v6406_v37 = vpop.f32.mrb[252].mxu1 }
 0x510   :  { %v6407_v1 = vpop.f32.mrb[253].mxu1  ;;  %v6512_v62 = vpop.f32.mrb[24].mxu0 }
 0x511   :  { %v6408_v51 = vadd.f32 %v6407_v1, %v6406_v37  ;;  %v6409_v42 = vpop.f32.mrb[254].mxu1  ;;  %v6513_v36 = vpop.f32.mrb[25].mxu0 }
 0x512   :  { %v6514_v4 = vadd.f32 %v6513_v36, %v6512_v62  ;;  %v6410_v2 = vpop.f32.mrb[255].mxu1  ;;  %v6515_v5 = vpop.f32.mrb[26].mxu0 }
 0x513   :  { %v4684_v3 = vadd.f32 %v6408_v51, %v9019_v53  ;;  %v6411_v11 = vadd.f32 %v6410_v2, %v6409_v42  ;;  %v6516_v21 = vpop.f32.mrb[27].mxu0 }
 0x514   :  { %v6517_v49 = vadd.f32 %v6516_v21, %v6515_v5  ;;  %v9109_v57 = vadd.f32 %v6514_v4, %v4676_v45 }
 0x515   :  { %v4687_v7 = vadd.f32 %v6411_v11, %v9022_v13 }
 0x516   :  { %v9112_v10 = vadd.f32 %v6517_v49, %v4679_v41 }
 0x517   :  { %v6614_v61 = vpop.f32.mrb[0].mxu1 }
 0x518   :  { %v9115_v56 = vadd.f32 %v6614_v61, %v9031_v38  ;;  %v6518_v18 = vpop.f32.mrb[28].mxu0  ;;  %v4885_v55 = vpop.f32.mrb[1].mxu1 }
 0x519   :  { %v9118_v48 = vadd.f32 %v4885_v55, %v9025_v20  ;;  %v6519_v58 = vpop.f32.mrb[29].mxu0  ;;  %v6615_v53 = vpop.f32.mrb[2].mxu1 }
 0x51a   :  { %v6520_v50 = vadd.f32 %v6519_v58, %v6518_v18  ;;  %v9121_v15 = vadd.f32 %v6615_v53, %v9034_v25  ;;  %v6521_v8 = vpop.f32.mrb[30].mxu0  ;;  %v4888_v34 = vpop.f32.mrb[3].mxu1  ;;  %v5054_v26 = vmul.f32 %v9115_v56, %v9115_v56 }
 0x51b   :  { %v9124_v13 = vadd.f32 %v4888_v34, %v9028_v16  ;;  %v6522_v9 = vpop.f32.mrb[31].mxu0  ;;  %v5052_v28 = vmul.f32 %v9118_v48, %v9118_v48 }
 0x51c   :  { %v6523_v44 = vadd.f32 %v6522_v9, %v6521_v8  ;;  %v9126_v38 = vadd.f32 %v6520_v50, %v4684_v3  ;;  %v5055_v1 = vmul.f32 %v9121_v15, %v9121_v15 }
 0x51d   :  { %v5012_v20 = vadd.f32 %v9124_v13, %v9118_v48  ;;  %v5053_v45 = vmul.f32 %v9124_v13, %v9124_v13 }
 0x51e   :  { %v9134_v25 = vadd.f32 %v6523_v44, %v4687_v7 }
 0x51f   :  { %v5013_v16 = vadd.f32 %v5012_v20, %v9115_v56  ;;  %v5084_v43 = vadd.f32 %v5053_v45, %v5052_v28  ;;  %v6618_v33 = vpop.f32.mrb[4].mxu1 }
 0x520   :  { %v9140_v41 = vadd.f32 %v6618_v33, %v9043_v27  ;;  %v4901_v37 = vpop.f32.mrb[5].mxu1 }
 0x521   :  { %v5085_v62 = vadd.f32 %v5084_v43, %v5054_v26  ;;  %v9145_v51 = vadd.f32 %v4901_v37, %v9037_v0  ;;  %v5014_v42 = vadd.f32 %v5013_v16, %v9121_v15  ;;  %v6619_v36 = vpop.f32.mrb[6].mxu1 }
 0x522   :  { %v9149_v4 = vadd.f32 %v6619_v36, %v9046_v54  ;;  %v4904_v2 = vpop.f32.mrb[7].mxu1  ;;  %v5058_v54 = vmul.f32 %v9140_v41, %v9140_v41 }
 0x523   :  { %v5015_v5 = vadd.f32 %v5014_v42, %v9145_v51  ;;  %v5056_v27 = vmul.f32 %v9145_v51, %v9145_v51  ;;  %v5086_v3 = vadd.f32 %v5085_v62, %v5055_v1  ;;  %v9155_v11 = vadd.f32 %v4904_v2, %v9040_v39 }
 0x524   :  { %v5059_v39 = vmul.f32 %v9149_v4, %v9149_v4 }
 0x525   :  { %v5087_v21 = vadd.f32 %v5086_v3, %v5056_v27  ;;  %v5016_v0 = vadd.f32 %v5015_v5, %v9155_v11  ;;  %v5057_v49 = vmul.f32 %v9155_v11, %v9155_v11 }
 0x527   :  { %v5017_v7 = vadd.f32 %v5016_v0, %v9140_v41  ;;  %v5088_v61 = vadd.f32 %v5087_v21, %v5057_v49  ;;  %v6622_v18 = vpop.f32.mrb[8].mxu1 }
 0x528   :  { %v9164_v55 = vadd.f32 %v6622_v18, %v9055_v30  ;;  %v4917_v58 = vpop.f32.mrb[9].mxu1 }
 0x529   :  { %v5089_v53 = vadd.f32 %v5088_v61, %v5058_v54  ;;  %v9169_v50 = vadd.f32 %v4917_v58, %v9049_v6  ;;  %v5018_v8 = vadd.f32 %v5017_v7, %v9149_v4  ;;  %v6623_v34 = vpop.f32.mrb[10].mxu1 }
 0x52a   :  { %v9173_v9 = vadd.f32 %v6623_v34, %v9058_v22  ;;  %v4920_v44 = vpop.f32.mrb[11].mxu1  ;;  %v5062_v22 = vmul.f32 %v9164_v55, %v9164_v55 }
 0x52b   :  { %v5019_v28 = vadd.f32 %v5018_v8, %v9169_v50  ;;  %v5060_v30 = vmul.f32 %v9169_v50, %v9169_v50  ;;  %v5090_v20 = vadd.f32 %v5089_v53, %v5059_v39  ;;  %v9179_v45 = vadd.f32 %v4920_v44, %v9052_v60 }
 0x52c   :  { %v5063_v60 = vmul.f32 %v9173_v9, %v9173_v9 }
 0x52d   :  { %v5091_v26 = vadd.f32 %v5090_v20, %v5060_v30  ;;  %v5020_v6 = vadd.f32 %v5019_v28, %v9179_v45  ;;  %v5061_v16 = vmul.f32 %v9179_v45, %v9179_v45 }
 0x52f   :  { %v5021_v43 = vadd.f32 %v5020_v6, %v9164_v55  ;;  %v5092_v33 = vadd.f32 %v5091_v26, %v5061_v16  ;;  %v6626_v37 = vpop.f32.mrb[12].mxu1 }
 0x530   :  { %v9188_v1 = vadd.f32 %v6626_v37, %v9067_v47  ;;  %v4933_v62 = vpop.f32.mrb[13].mxu1 }
 0x531   :  { %v5093_v42 = vadd.f32 %v5092_v33, %v5062_v22  ;;  %v9193_v36 = vadd.f32 %v4933_v62, %v9061_v32  ;;  %v5022_v2 = vadd.f32 %v5021_v43, %v9173_v9  ;;  %v6627_v5 = vpop.f32.mrb[14].mxu1 }
 0x532   :  { %v9197_v27 = vadd.f32 %v6627_v5, %v9070_v31  ;;  %v4936_v3 = vpop.f32.mrb[15].mxu1  ;;  %v5066_v31 = vmul.f32 %v9188_v1, %v9188_v1 }
 0x533   :  { %v5023_v21 = vadd.f32 %v5022_v2, %v9193_v36  ;;  %v5064_v47 = vmul.f32 %v9193_v36, %v9193_v36  ;;  %v5094_v0 = vadd.f32 %v5093_v42, %v5063_v60  ;;  %v9203_v49 = vadd.f32 %v4936_v3, %v9064_v12 }
 0x534   :  { %v5067_v12 = vmul.f32 %v9197_v27, %v9197_v27 }
 0x535   :  { %v5095_v54 = vadd.f32 %v5094_v0, %v5064_v47  ;;  %v5024_v32 = vadd.f32 %v5023_v21, %v9203_v49  ;;  %v5065_v7 = vmul.f32 %v9203_v49, %v9203_v49 }
 0x537   :  { %v5025_v61 = vadd.f32 %v5024_v32, %v9188_v1  ;;  %v5096_v18 = vadd.f32 %v5095_v54, %v5065_v7  ;;  %v6630_v58 = vpop.f32.mrb[16].mxu1 }
 0x538   :  { %v9212_v39 = vadd.f32 %v6630_v58, %v9079_v19  ;;  %v4949_v53 = vpop.f32.mrb[17].mxu1 }
 0x539   :  { %v5097_v8 = vadd.f32 %v5096_v18, %v5066_v31  ;;  %v9217_v34 = vadd.f32 %v4949_v53, %v9073_v23  ;;  %v5026_v44 = vadd.f32 %v5025_v61, %v9197_v27  ;;  %v6631_v28 = vpop.f32.mrb[18].mxu1 }
 0x53a   :  { %v9221_v30 = vadd.f32 %v6631_v28, %v9082_v24  ;;  %v4952_v20 = vpop.f32.mrb[19].mxu1  ;;  %v5070_v24 = vmul.f32 %v9212_v39, %v9212_v39 }
 0x53b   :  { %v5027_v26 = vadd.f32 %v5026_v44, %v9217_v34  ;;  %v5068_v19 = vmul.f32 %v9217_v34, %v9217_v34  ;;  %v5098_v6 = vadd.f32 %v5097_v8, %v5067_v12  ;;  %v9227_v16 = vadd.f32 %v4952_v20, %v9076_v29 }
 0x53c   :  { %v5071_v29 = vmul.f32 %v9221_v30, %v9221_v30 }
 0x53d   :  { %v5099_v22 = vadd.f32 %v5098_v6, %v5068_v19  ;;  %v5028_v23 = vadd.f32 %v5027_v26, %v9227_v16  ;;  %v5069_v43 = vmul.f32 %v9227_v16, %v9227_v16 }
 0x53f   :  { %v5029_v33 = vadd.f32 %v5028_v23, %v9212_v39  ;;  %v5100_v37 = vadd.f32 %v5099_v22, %v5069_v43  ;;  %v6634_v62 = vpop.f32.mrb[20].mxu1 }
 0x540   :  { %v9236_v60 = vadd.f32 %v6634_v62, %v9091_v63  ;;  %v4965_v42 = vpop.f32.mrb[21].mxu1 }
 0x541   :  { %v5101_v2 = vadd.f32 %v5100_v37, %v5070_v24  ;;  %v9241_v5 = vadd.f32 %v4965_v42, %v9085_v17  ;;  %v5030_v3 = vadd.f32 %v5029_v33, %v9221_v30  ;;  %v6635_v21 = vpop.f32.mrb[22].mxu1 }
 0x542   :  { %v9245_v47 = vadd.f32 %v6635_v21, %v9094_v59  ;;  %v4968_v0 = vpop.f32.mrb[23].mxu1  ;;  %v5074_v59 = vmul.f32 %v9236_v60, %v9236_v60 }
 0x543   :  { %v5031_v54 = vadd.f32 %v5030_v3, %v9241_v5  ;;  %v5072_v63 = vmul.f32 %v9241_v5, %v9241_v5  ;;  %v5102_v32 = vadd.f32 %v5101_v2, %v5071_v29  ;;  %v9251_v7 = vadd.f32 %v4968_v0, %v9088_v46 }
 0x544   :  { %v5075_v46 = vmul.f32 %v9245_v47, %v9245_v47 }
 0x545   :  { %v5103_v31 = vadd.f32 %v5102_v32, %v5072_v63  ;;  %v5032_v17 = vadd.f32 %v5031_v54, %v9251_v7  ;;  %v5073_v61 = vmul.f32 %v9251_v7, %v9251_v7 }
 0x547   :  { %v5033_v18 = vadd.f32 %v5032_v17, %v9236_v60  ;;  %v5104_v58 = vadd.f32 %v5103_v31, %v5073_v61  ;;  %v6638_v53 = vpop.f32.mrb[24].mxu1 }
 0x548   :  { %v9260_v12 = vadd.f32 %v6638_v53, %v9103_v35  ;;  %v4981_v8 = vpop.f32.mrb[25].mxu1 }
 0x549   :  { %v5105_v44 = vadd.f32 %v5104_v58, %v5074_v59  ;;  %v9265_v28 = vadd.f32 %v4981_v8, %v9097_v14  ;;  %v5034_v20 = vadd.f32 %v5033_v18, %v9245_v47  ;;  %v6639_v26 = vpop.f32.mrb[26].mxu1 }
 0x54a   :  { %v9269_v19 = vadd.f32 %v6639_v26, %v9106_v40  ;;  %v4984_v6 = vpop.f32.mrb[27].mxu1  ;;  %v5078_v40 = vmul.f32 %v9260_v12, %v9260_v12 }
 0x54b   :  { %v5035_v22 = vadd.f32 %v5034_v20, %v9265_v28  ;;  %v5076_v35 = vmul.f32 %v9265_v28, %v9265_v28  ;;  %v5106_v23 = vadd.f32 %v5105_v44, %v5075_v46  ;;  %v9275_v43 = vadd.f32 %v4984_v6, %v9100_v52 }
 0x54c   :  { %v5079_v52 = vmul.f32 %v9269_v19, %v9269_v19 }
 0x54d   :  { %v5107_v24 = vadd.f32 %v5106_v23, %v5076_v35  ;;  %v5036_v14 = vadd.f32 %v5035_v22, %v9275_v43  ;;  %v5077_v33 = vmul.f32 %v9275_v43, %v9275_v43 }
 0x54f   :  { %v5037_v37 = vadd.f32 %v5036_v14, %v9260_v12  ;;  %v5108_v62 = vadd.f32 %v5107_v24, %v5077_v33  ;;  %v6642_v42 = vpop.f32.mrb[28].mxu1 }
 0x550   :  { %v9284_v29 = vadd.f32 %v6642_v42, %v9126_v38  ;;  %v4997_v2 = vpop.f32.mrb[29].mxu1 }
 0x551   :  { %v5109_v3 = vadd.f32 %v5108_v62, %v5078_v40  ;;  %v9289_v21 = vadd.f32 %v4997_v2, %v9109_v57  ;;  %v5038_v0 = vadd.f32 %v5037_v37, %v9269_v19  ;;  %v6643_v54 = vpop.f32.mrb[30].mxu1 }
 0x552   :  { %v9293_v63 = vadd.f32 %v6643_v54, %v9134_v25  ;;  %v5000_v32 = vpop.f32.mrb[31].mxu1  ;;  %v5082_v25 = vmul.f32 %v9284_v29, %v9284_v29 }
 0x553   :  { %v5039_v31 = vadd.f32 %v5038_v0, %v9289_v21  ;;  %v5080_v38 = vmul.f32 %v9289_v21, %v9289_v21  ;;  %v5110_v17 = vadd.f32 %v5109_v3, %v5079_v52  ;;  %v9299_v61 = vadd.f32 %v5000_v32, %v9112_v10 }
 0x554   :  { %v5083_v8 = vmul.f32 %v9293_v63, %v9293_v63 }
 0x555   :  { %v5111_v59 = vadd.f32 %v5110_v17, %v5080_v38  ;;  %v5040_v57 = vadd.f32 %v5039_v31, %v9299_v61  ;;  %v5081_v18 = vmul.f32 %v9299_v61, %v9299_v61  ;;  %v5602_v17 = vld [vmem:[%s9583_s2 + $0x1] sm:$0x1] }
 0x557   :  { %v5041_v58 = vadd.f32 %v5040_v57, %v9284_v29  ;;  %v5112_v53 = vadd.f32 %v5111_v59, %v5081_v18  ;;  %v5603_v18 = vld [vmem:[%s9584_s3 + $0x1] sm:$0x1] }
 0x559   :  { %v5113_v46 = vadd.f32 %v5112_v53, %v5082_v25  ;;  %v5042_v44 = vadd.f32 %v5041_v58, %v9293_v63  ;;  %v9639_v58 = vld [vmem:[#allocation5_spill] sm:$0xff] }
 0x55b   :  { %v5043_v10 = vrot.slane %v5042_v44, 4  ;;  %v5114_v20 = vadd.f32 %v5113_v46, %v5083_v8 }
 0x55d   :  { %v5044_v26 = vadd.f32 %v5043_v10, %v5042_v44  ;;  %v5115_v6 = vrot.slane %v5114_v20, 4 }
 0x55f   :  { %v5045_v22 = vrot.slane %v5044_v26, 2  ;;  %v5116_v35 = vadd.f32 %v5115_v6, %v5114_v20 }
 0x561   :  { %v5046_v23 = vadd.f32 %v5045_v22, %v5044_v26  ;;  %v5117_v24 = vrot.slane %v5116_v35, 2 }
 0x563   :  { %v5047_v14 = vrot.slane %v5046_v23, 1  ;;  %v5118_v33 = vadd.f32 %v5117_v24, %v5116_v35 }
 0x565   :  { %v5048_v40 = vadd.f32 %v5047_v14, %v5046_v23  ;;  %v5119_v37 = vrot.slane %v5118_v33, 1 }
 0x567   :  { %5049 = vrot.lane.b32.xlu1 %v5048_v40, %s6830_s9  ;;  %v5120_v62 = vadd.f32 %v5119_v37, %v5118_v33 }
 0x56b   :  { %5121 = vrot.lane.b32.xlu1 %v5120_v62, %s6830_s9 }
 0x5d9   :  { %v5050_v42 = vpop.permute.xlu1 %5049 }
 0x5da   :  { %v5051_v2 = vadd.f32 %v5050_v42, %v5048_v40 }
 0x5dc   :  { %v5124_v52 = vmul.f32 0.001953125, %v5051_v2 }
 0x5dd   :  { %v5122_v3 = vpop.permute.xlu1 %5121 }
 0x5de   :  { %v5123_v0 = vadd.f32 %v5122_v3, %v5120_v62  ;;  %v5126_v54 = vmul.f32 %v5124_v52, %v5124_v52 }
 0x5e0   :  { %v5125_v32 = vmul.f32 0.001953125, %v5123_v0 }
 0x5e2   :  { %v5127_v31 = vsub.f32 %v5125_v32, %v5126_v54 }
 0x5e4   :  { %v5130_v38 = vadd.f32 1e-05, %v5127_v31 }
 0x5e6   :  { %6792 = vrsqrt.f32 %v5130_v38 }
 0x5f0   :  { %v6793_v59 = vpop.eup %6792 }
 0x5f1   :  { %v5132_v57 = vmul.f32 %v6793_v59, %v5602_v17 }
 0x5f3   :  { %v5135_v25 = vmul.f32 %v5132_v57, %v5124_v52  ;;  %v5141_v53 = vrot.slane %v5132_v57, %v9639_v58 }
 0x5f5   :  { %v5136_v8 = vsub.f32 %v5603_v18, %v5135_v25  ;;  %v5143_v46 = vmul.f32 %v5141_v53, %v9118_v48  ;;  %v5144_v44 = vmul.f32 %v5141_v53, %v9124_v13  ;;  %v5145_v10 = vmul.f32 %v5141_v53, %v9115_v56 }
 0x5f6   :  { %v5146_v20 = vmul.f32 %v5141_v53, %v9121_v15  ;;  %v5147_v26 = vmul.f32 %v5141_v53, %v9145_v51  ;;  %v5148_v6 = vmul.f32 %v5141_v53, %v9155_v11  ;;  %v5149_v22 = vmul.f32 %v5141_v53, %v9140_v41 }
 0x5f7   :  { %v5150_v35 = vmul.f32 %v5141_v53, %v9149_v4  ;;  %v5151_v23 = vmul.f32 %v5141_v53, %v9169_v50  ;;  %v5152_v24 = vmul.f32 %v5141_v53, %v9179_v45  ;;  %v5153_v48 = vmul.f32 %v5141_v53, %v9164_v55 }
 0x5f8   :  { %v5154_v13 = vmul.f32 %v5141_v53, %v9173_v9  ;;  %v5155_v56 = vmul.f32 %v5141_v53, %v9193_v36  ;;  %v5156_v15 = vmul.f32 %v5141_v53, %v9203_v49  ;;  %v5157_v51 = vmul.f32 %v5141_v53, %v9188_v1 }
 0x5f9   :  { %v5158_v11 = vmul.f32 %v5141_v53, %v9197_v27  ;;  %v5159_v41 = vmul.f32 %v5141_v53, %v9217_v34  ;;  %v5160_v4 = vmul.f32 %v5141_v53, %v9227_v16  ;;  %v5161_v50 = vmul.f32 %v5141_v53, %v9212_v39 }
 0x5fa   :  { %v5162_v45 = vmul.f32 %v5141_v53, %v9221_v30  ;;  %v5163_v55 = vmul.f32 %v5141_v53, %v9241_v5  ;;  %v5164_v9 = vmul.f32 %v5141_v53, %v9251_v7  ;;  %v5165_v36 = vmul.f32 %v5141_v53, %v9236_v60 }
 0x5fb   :  { %v5166_v49 = vmul.f32 %v5141_v53, %v9245_v47  ;;  %v5167_v1 = vmul.f32 %v5141_v53, %v9265_v28  ;;  %v5168_v27 = vmul.f32 %v5141_v53, %v9275_v43  ;;  %v5169_v34 = vmul.f32 %v5141_v53, %v9260_v12 }
 0x5fc   :  { %v5170_v16 = vmul.f32 %v5141_v53, %v9269_v19  ;;  %v5179_v39 = vrot.slane %v5136_v8, %v9639_v58  ;;  %v5171_v30 = vmul.f32 %v5141_v53, %v9289_v21  ;;  %v5172_v5 = vmul.f32 %v5141_v53, %v9299_v61 }
 0x5fd   :  { %v5173_v7 = vmul.f32 %v5141_v53, %v9284_v29  ;;  %v5174_v60 = vmul.f32 %v5141_v53, %v9293_v63 }
 0x5fe   :  { %v5181_v14 = vadd.f32 %v5179_v39, %v5143_v46  ;;  %v5182_v47 = vadd.f32 %v5179_v39, %v5144_v44  ;;  %v5183_v33 = vadd.f32 %v5179_v39, %v5145_v10  ;;  %v5184_v28 = vadd.f32 %v5179_v39, %v5146_v20  ;;  %v6797_v44 = vld [vmem:[%s9582_s4] sm:$0xff]  ;;  %v6798_v20 = vld [vmem:[%s9582_s4 + $0x8] sm:$0xff] }
 0x5ff   :  { %v5185_v40 = vadd.f32 %v5179_v39, %v5147_v26  ;;  %v5186_v43 = vadd.f32 %v5179_v39, %v5148_v6  ;;  %v5187_v37 = vadd.f32 %v5179_v39, %v5149_v22  ;;  %v5188_v12 = vadd.f32 %v5179_v39, %v5150_v35  ;;  %v6799_v6 = vld [vmem:[%s9582_s4 + $0x10] sm:$0xff]  ;;  %v6800_v35 = vld [vmem:[%s9582_s4 + $0x18] sm:$0xff] }
 0x600   :  { %v5189_v62 = vadd.f32 %v5179_v39, %v5151_v23  ;;  %v5190_v19 = vadd.f32 %v5179_v39, %v5152_v24  ;;  %v5191_v42 = vadd.f32 %v5179_v39, %v5153_v48  ;;  %v5192_v2 = vadd.f32 %v5179_v39, %v5154_v13  ;;  %v6801_v24 = vld [vmem:[%s9582_s4 + $0x20] sm:$0xff]  ;;  %v6802_v13 = vld [vmem:[%s9582_s4 + $0x28] sm:$0xff] }
 0x601   :  { %v5193_v52 = vadd.f32 %v5179_v39, %v5155_v56  ;;  %v5194_v21 = vadd.f32 %v5179_v39, %v5156_v15  ;;  %v5195_v3 = vadd.f32 %v5179_v39, %v5157_v51  ;;  %v5196_v61 = vadd.f32 %v5179_v39, %v5158_v11  ;;  %v6803_v15 = vld [vmem:[%s9582_s4 + $0x30] sm:$0xff]  ;;  %v6804_v11 = vld [vmem:[%s9582_s4 + $0x38] sm:$0xff] }
 0x602   :  { %v5197_v0 = vadd.f32 %v5179_v39, %v5159_v41  ;;  %v5198_v29 = vadd.f32 %v5179_v39, %v5160_v4  ;;  %v5199_v54 = vadd.f32 %v5179_v39, %v5161_v50  ;;  %v5200_v63 = vadd.f32 %v5179_v39, %v5162_v45  ;;  %v6805_v4 = vld [vmem:[%s9582_s4 + $0x40] sm:$0xff]  ;;  %v6806_v45 = vld [vmem:[%s9582_s4 + $0x48] sm:$0xff] }
 0x603   :  { %v9352_v32 = vadd.f32 %v5179_v39, %v5163_v55  ;;  %v9354_v31 = vadd.f32 %v5179_v39, %v5164_v9  ;;  %v9356_v38 = vadd.f32 %v5179_v39, %v5165_v36  ;;  %v9358_v17 = vadd.f32 %v5179_v39, %v5166_v49  ;;  %v6807_v9 = vld [vmem:[%s9582_s4 + $0x50] sm:$0xff]  ;;  %v6808_v49 = vld [vmem:[%s9582_s4 + $0x58] sm:$0xff] }
 0x604   :  { %v9360_v59 = vadd.f32 %v5179_v39, %v5167_v1  ;;  %v9362_v57 = vadd.f32 %v5179_v39, %v5168_v27  ;;  %v9364_v18 = vadd.f32 %v5179_v39, %v5169_v34  ;;  %v9366_v25 = vadd.f32 %v5179_v39, %v5170_v16  ;;  %v6809_v27 = vld [vmem:[%s9582_s4 + $0x60] sm:$0xff]  ;;  %v6810_v16 = vld [vmem:[%s9582_s4 + $0x68] sm:$0xff] }
 0x605   :  { %v9368_v58 = vadd.f32 %v5179_v39, %v5171_v30  ;;  %v9370_v53 = vadd.f32 %v5179_v39, %v5172_v5  ;;  %v9372_v8 = vadd.f32 %v5179_v39, %v5173_v7  ;;  %v9374_v46 = vadd.f32 %v5179_v39, %v5174_v60  ;;  %v6811_v30 = vld [vmem:[%s9582_s4 + $0x70] sm:$0xff]  ;;  %v6812_v7 = vld [vmem:[%s9582_s4 + $0x78] sm:$0xff] }
 0x606   :  { %v5213_v10 = vadd.f32 %v6797_v44, %v5181_v14  ;;  %v5214_v26 = vadd.f32 %v6798_v20, %v5182_v47  ;;  %v5215_v22 = vadd.f32 %v6799_v6, %v5183_v33  ;;  %v5216_v23 = vadd.f32 %v6800_v35, %v5184_v28  ;;  %v6813_v14 = vld [vmem:[%s9582_s4 + $0x80] sm:$0xff]  ;;  %v6814_v33 = vld [vmem:[%s9582_s4 + $0x88] sm:$0xff]  ;;  %v6827_v44 = vld [vmem:[%s9582_s4 + $0xf0] sm:$0xff] }
 0x607   :  { %v5217_v48 = vadd.f32 %v6801_v24, %v5185_v40  ;;  %v5218_v56 = vadd.f32 %v6802_v13, %v5186_v43  ;;  %v5219_v51 = vadd.f32 %v6803_v15, %v5187_v37  ;;  %v5220_v41 = vadd.f32 %v6804_v11, %v5188_v12  ;;  %v6815_v40 = vld [vmem:[%s9582_s4 + $0x90] sm:$0xff]  ;;  %v6816_v37 = vld [vmem:[%s9582_s4 + $0x98] sm:$0xff] }
 0x608   :  { %v5221_v50 = vadd.f32 %v6805_v4, %v5189_v62  ;;  %v5222_v55 = vadd.f32 %v6806_v45, %v5190_v19  ;;  %v5223_v36 = vadd.f32 %v6807_v9, %v5191_v42  ;;  %v5224_v1 = vadd.f32 %v6808_v49, %v5192_v2  ;;  %5245 = vst [vmem:[%s9582_s4] sm:$0xff] %v5213_v10  ;;  %v6817_v62 = vld [vmem:[%s9582_s4 + $0xa0] sm:$0xff]  ;;  %v6818_v42 = vld [vmem:[%s9582_s4 + $0xa8] sm:$0xff]  ;;  %v6828_v20 = vld [vmem:[%s9582_s4 + $0xf8] sm:$0xff] }
 0x609   :  { %5246 = vst [vmem:[%s9582_s4 + $0x8] sm:$0xff] %v5214_v26  ;;  %5247 = vst [vmem:[%s9582_s4 + $0x10] sm:$0xff] %v5215_v22  ;;  %v5225_v34 = vadd.f32 %v6809_v27, %v5193_v52  ;;  %v5226_v39 = vadd.f32 %v6810_v16, %v5194_v21  ;;  %v5227_v5 = vadd.f32 %v6811_v30, %v5195_v3  ;;  %v6819_v52 = vld [vmem:[%s9582_s4 + $0xb0] sm:$0xff]  ;;  %v6820_v3 = vld [vmem:[%s9582_s4 + $0xb8] sm:$0xff] }
 0x60a   :  { %5248 = vst [vmem:[%s9582_s4 + $0x18] sm:$0xff] %v5216_v23  ;;  %v5228_v60 = vadd.f32 %v6812_v7, %v5196_v61  ;;  %5249 = vst [vmem:[%s9582_s4 + $0x20] sm:$0xff] %v5217_v48  ;;  %v5229_v47 = vadd.f32 %v6813_v14, %v5197_v0  ;;  %v5230_v28 = vadd.f32 %v6814_v33, %v5198_v29  ;;  %v6821_v0 = vld [vmem:[%s9582_s4 + $0xc0] sm:$0xff] }
 0x60b   :  { %5250 = vst [vmem:[%s9582_s4 + $0x28] sm:$0xff] %v5218_v56  ;;  %5251 = vst [vmem:[%s9582_s4 + $0x30] sm:$0xff] %v5219_v51  ;;  %v5231_v43 = vadd.f32 %v6815_v40, %v5199_v54  ;;  %v5232_v12 = vadd.f32 %v6816_v37, %v5200_v63  ;;  %v5233_v19 = vadd.f32 %v6817_v62, %v9352_v32  ;;  %v6822_v54 = vld [vmem:[%s9582_s4 + $0xc8] sm:$0xff]  ;;  %v6823_v32 = vld [vmem:[%s9582_s4 + $0xd0] sm:$0xff] }
 0x60c   :  { %5252 = vst [vmem:[%s9582_s4 + $0x38] sm:$0xff] %v5220_v41  ;;  %5253 = vst [vmem:[%s9582_s4 + $0x40] sm:$0xff] %v5221_v50  ;;  %v5234_v2 = vadd.f32 %v6818_v42, %v9354_v31  ;;  %v5235_v21 = vadd.f32 %v6819_v52, %v9356_v38  ;;  %v5236_v61 = vadd.f32 %v6820_v3, %v9358_v17  ;;  %v6824_v38 = vld [vmem:[%s9582_s4 + $0xd8] sm:$0xff] }
 0x60d   :  { %5254 = vst [vmem:[%s9582_s4 + $0x48] sm:$0xff] %v5222_v55  ;;  %5255 = vst [vmem:[%s9582_s4 + $0x50] sm:$0xff] %v5223_v36  ;;  %v5237_v29 = vadd.f32 %v6821_v0, %v9360_v59  ;;  %v5238_v63 = vadd.f32 %v6822_v54, %v9362_v57  ;;  %v5239_v31 = vadd.f32 %v6823_v32, %v9364_v18  ;;  %v6825_v59 = vld [vmem:[%s9582_s4 + $0xe0] sm:$0xff]  ;;  %v6826_v18 = vld [vmem:[%s9582_s4 + $0xe8] sm:$0xff] }
 0x60e   :  { %5256 = vst [vmem:[%s9582_s4 + $0x58] sm:$0xff] %v5224_v1  ;;  %5257 = vst [vmem:[%s9582_s4 + $0x60] sm:$0xff] %v5225_v34  ;;  %v5240_v17 = vadd.f32 %v6824_v38, %v9366_v25  ;;  %v5241_v57 = vadd.f32 %v6825_v59, %v9368_v58  ;;  %v5242_v25 = vadd.f32 %v6826_v18, %v9370_v53 }
 0x60f   :  { %5258 = vst [vmem:[%s9582_s4 + $0x68] sm:$0xff] %v5226_v39  ;;  %5259 = vst [vmem:[%s9582_s4 + $0x70] sm:$0xff] %v5227_v5  ;;  %v5243_v10 = vadd.f32 %v6827_v44, %v9372_v8  ;;  %v5244_v26 = vadd.f32 %v6828_v20, %v9374_v46 }
 0x610   :  { %5260 = vst [vmem:[%s9582_s4 + $0x78] sm:$0xff] %v5228_v60  ;;  %5261 = vst [vmem:[%s9582_s4 + $0x80] sm:$0xff] %v5229_v47 }
 0x611   :  { %5262 = vst [vmem:[%s9582_s4 + $0x88] sm:$0xff] %v5230_v28  ;;  %5263 = vst [vmem:[%s9582_s4 + $0x90] sm:$0xff] %v5231_v43 }
 0x612   :  { %5264 = vst [vmem:[%s9582_s4 + $0x98] sm:$0xff] %v5232_v12  ;;  %5265 = vst [vmem:[%s9582_s4 + $0xa0] sm:$0xff] %v5233_v19 }
 0x613   :  { %5266 = vst [vmem:[%s9582_s4 + $0xa8] sm:$0xff] %v5234_v2  ;;  %5267 = vst [vmem:[%s9582_s4 + $0xb0] sm:$0xff] %v5235_v21 }
 0x614   :  { %5268 = vst [vmem:[%s9582_s4 + $0xb8] sm:$0xff] %v5236_v61  ;;  %5269 = vst [vmem:[%s9582_s4 + $0xc0] sm:$0xff] %v5237_v29 }
 0x615   :  { %5270 = vst [vmem:[%s9582_s4 + $0xc8] sm:$0xff] %v5238_v63  ;;  %5271 = vst [vmem:[%s9582_s4 + $0xd0] sm:$0xff] %v5239_v31 }
 0x616   :  { %5272 = vst [vmem:[%s9582_s4 + $0xd8] sm:$0xff] %v5240_v17  ;;  %5273 = vst [vmem:[%s9582_s4 + $0xe0] sm:$0xff] %v5241_v57 }
 0x617   :  { %5274 = vst [vmem:[%s9582_s4 + $0xe8] sm:$0xff] %v5242_v25  ;;  %5275 = vst [vmem:[%s9582_s4 + $0xf0] sm:$0xff] %v5243_v10 }
 0x618   :  { %5276 = vst [vmem:[%s9582_s4 + $0xf8] sm:$0xff] %v5244_v26 }

</bundles_post_ra>
